<compile_context>
chip_gen: v5e
topology: v5e:2x2
jax: 0.10.0
libtpu: 0.0.40
codegen_flags: <defaults>
</compile_context>

<pallas_src>
import functools

import jax
import jax.numpy as jnp
from jax.experimental import pallas as pl
from jax.experimental.pallas import tpu as pltpu

LANE = 128


def _round_up(n, m):
    return ((n + m - 1) // m) * m


def _pad2(x, rows, cols):
    r, c = x.shape
    return jnp.pad(x, ((0, rows - r), (0, cols - c)))


def _leaky_relu(x):
    return jnp.where(x >= 0.0, x, 0.01 * x)


def _compiler_params():
    return pltpu.CompilerParams(
        dimension_semantics=("parallel", "arbitrary"),
        vmem_limit_bytes=48 * 1024 * 1024,   # headroom below v7x's 64 MiB physical
    )


# ----------------------------------------------------------------------------
# Kernel 1: go paths ('pa' + 'ps' fused along dst) + per-edge-type GIN MLP
# ----------------------------------------------------------------------------

def _go_kernel(type_ref,                                  # scalar prefetch (index_maps only)
               a_ref, hp_ref, hself_ref, eps1_ref,
               w1_ref, b1_ref, w2_ref, b2_ref,
               hpre_out, hact_out, acc_ref):
    k = pl.program_id(1)

    @pl.when(k == 0)
    def _init():
        # accumulator starts at (1 + eps_etype) * h_dst   (GIN self term)
        acc_ref[...] = eps1_ref[0] * hself_ref[...].astype(jnp.float32)

    # copy_u + sum message passing == dense SpMM: A[dst_tile, src_tile] @ h_src
    acc_ref[...] += jnp.dot(a_ref[...], hp_ref[...],
                            preferred_element_type=jnp.float32)

    @pl.when(k == pl.num_programs(1) - 1)
    def _finalize():
        x = acc_ref[...]
        # 2-layer MLP, eval BatchNorm folded into w1/b1
        z = jnp.dot(x.astype(jnp.bfloat16), w1_ref[0],
                    preferred_element_type=jnp.float32) + b1_ref[0]
        z = jnp.maximum(z, 0.0)
        h_new = jnp.dot(z.astype(jnp.bfloat16), w2_ref[0],
                        preferred_element_type=jnp.float32) + b2_ref[0]
        hpre_out[...] = h_new.astype(hpre_out.dtype)                 # feeds return path
        hact_out[...] = _leaky_relu(h_new).astype(hact_out.dtype)    # next layer self term


def hgin_go_call(layer, tile_type, a_all, hp, h_as, tile):
    m_as, n_p = a_all.shape
    f_in = hp.shape[1]
    f_out = layer["w2_go"].shape[2]
    grid = (m_as // tile, n_p // tile)

    grid_spec = pltpu.PrefetchScalarGridSpec(
        num_scalar_prefetch=1,                 # dst-tile -> edge-type table
        grid=grid,
        in_specs=[
            pl.BlockSpec((tile, tile), lambda i, k, t: (i, k)),            # A_all
            pl.BlockSpec((tile, f_in), lambda i, k, t: (k, 0)),            # h_paper (src)
            pl.BlockSpec((tile, f_in), lambda i, k, t: (i, 0)),            # h_dst (self)
            pl.BlockSpec((1, 1, f_in), lambda i, k, t: (t[i], 0, 0)),      # (1+eps) row
            pl.BlockSpec((1, f_in, f_out), lambda i, k, t: (t[i], 0, 0)),  # w1 (BN folded)
            pl.BlockSpec((1, 1, f_out), lambda i, k, t: (t[i], 0, 0)),     # b1
            pl.BlockSpec((1, f_out, f_out), lambda i, k, t: (t[i], 0, 0)),  # w2
            pl.BlockSpec((1, 1, f_out), lambda i, k, t: (t[i], 0, 0)),     # b2
        ],
        out_specs=[
            pl.BlockSpec((tile, f_out), lambda i, k, t: (i, 0)),           # pre-activation
            pl.BlockSpec((tile, f_out), lambda i, k, t: (i, 0)),           # leaky_relu'd
        ],
        scratch_shapes=[pltpu.VMEM((tile, f_in), jnp.float32)],
    )

    flops = 2 * m_as * n_p * f_in + 2 * m_as * f_in * f_out + 2 * m_as * f_out * f_out
    bytes_accessed = (m_as * n_p * 2                      # A_all (bf16)
                      + grid[0] * n_p * f_in * 2          # h_paper re-read per dst tile
                      + m_as * f_in * 2                   # self terms
                      + 2 * m_as * f_out * 2)             # two bf16 outputs

    return pl.pallas_call(
        _go_kernel,
        grid_spec=grid_spec,
        out_shape=(jax.ShapeDtypeStruct((m_as, f_out), jnp.bfloat16),
                   jax.ShapeDtypeStruct((m_as, f_out), jnp.bfloat16)),
        compiler_params=_compiler_params(),
        cost_estimate=pl.CostEstimate(flops=flops, transcendentals=0,
                                      bytes_accessed=bytes_accessed),
    )(tile_type, a_all, hp, h_as,
      layer["eps1_go"], layer["w1_go"], layer["b1_go"],
      layer["w2_go"], layer["b2_go"])


# ----------------------------------------------------------------------------
# Kernel 2: return paths ('ap' + 'sp' fused) + project + 'Return' GIN MLP
#           (+ optional fused `predict` Linear for the last layer)
# ----------------------------------------------------------------------------

def _return_accumulate(at_ref, haspre_ref, acc_ref):
    @pl.when(pl.program_id(1) == 0)
    def _():
        acc_ref[...] = jnp.zeros_like(acc_ref)
    # A^T[paper_tile, as_tile] @ h_{author|subject}'   (both edge types summed)
    acc_ref[...] += jnp.dot(at_ref[...], haspre_ref[...],
                            preferred_element_type=jnp.float32)


def _return_finalize(hp_ref, eps1_ref, wp_ref, bp_ref,
                     w1_ref, b1_ref, w2_ref, b2_ref, acc_ref):
    hp_proj = jnp.dot(hp_ref[...], wp_ref[...],
                      preferred_element_type=jnp.float32) + bp_ref[...]
    x = eps1_ref[...] * hp_proj + acc_ref[...]
    z = jnp.dot(x.astype(jnp.bfloat16), w1_ref[...],
                preferred_element_type=jnp.float32) + b1_ref[...]
    z = jnp.maximum(z, 0.0)
    h_new = jnp.dot(z.astype(jnp.bfloat16), w2_ref[...],
                    preferred_element_type=jnp.float32) + b2_ref[...]
    return _leaky_relu(h_new)        # per-layer epilogue (dropout == identity in eval)


def _return_kernel(at_ref, haspre_ref, hp_ref, eps1_ref,
                   wp_ref, bp_ref, w1_ref, b1_ref, w2_ref, b2_ref,
                   hp_out, acc_ref):
    _return_accumulate(at_ref, haspre_ref, acc_ref)

    @pl.when(pl.program_id(1) == pl.num_programs(1) - 1)
    def _():
        hp_out[...] = _return_finalize(hp_ref, eps1_ref, wp_ref, bp_ref,
                                       w1_ref, b1_ref, w2_ref, b2_ref,
                                       acc_ref).astype(hp_out.dtype)


def _return_predict_kernel(at_ref, haspre_ref, hp_ref, eps1_ref,
                           wp_ref, bp_ref, w1_ref, b1_ref, w2_ref, b2_ref,
                           wpr_ref, bpr_ref,
                           hp_out, logits_out, acc_ref):
    _return_accumulate(at_ref, haspre_ref, acc_ref)

    @pl.when(pl.program_id(1) == pl.num_programs(1) - 1)
    def _():
        hp_act = _return_finalize(hp_ref, eps1_ref, wp_ref, bp_ref,
                                  w1_ref, b1_ref, w2_ref, b2_ref, acc_ref)
        hp_out[...] = hp_act.astype(hp_out.dtype)
        # final `predict` Linear applied AFTER the last epilogue (matches reference)
        logits_out[...] = (jnp.dot(hp_act.astype(jnp.bfloat16), wpr_ref[...],
                                   preferred_element_type=jnp.float32)
                           + bpr_ref[...])


def hgin_return_call(layer, a_all_t, h_as_pre, hp, tile, predict=None):
    n_p, m_as = a_all_t.shape
    f_in = hp.shape[1]
    f_out = layer["w2_rt"].shape[1]
    grid = (n_p // tile, m_as // tile)

    in_specs = [
        pl.BlockSpec((tile, tile), lambda i, k: (i, k)),        # A^T (host-materialized)
        pl.BlockSpec((tile, f_out), lambda i, k: (k, 0)),       # h_{author|subject}' (src)
        pl.BlockSpec((tile, f_in), lambda i, k: (i, 0)),        # h_paper (self / project in)
        pl.BlockSpec((1, f_out), lambda i, k: (0, 0)),          # (1 + eps_Return) row
        pl.BlockSpec((f_in, f_out), lambda i, k: (0, 0)),       # project W
        pl.BlockSpec((1, f_out), lambda i, k: (0, 0)),          # project b
        pl.BlockSpec((f_out, f_out), lambda i, k: (0, 0)),      # Return MLP w1 (BN folded)
        pl.BlockSpec((1, f_out), lambda i, k: (0, 0)),          # b1
        pl.BlockSpec((f_out, f_out), lambda i, k: (0, 0)),      # w2
        pl.BlockSpec((1, f_out), lambda i, k: (0, 0)),          # b2
    ]
    out_specs = [pl.BlockSpec((tile, f_out), lambda i, k: (i, 0))]
    out_shape = [jax.ShapeDtypeStruct((n_p, f_out), jnp.bfloat16)]
    args = [a_all_t, h_as_pre, hp, layer["eps1_rt"],
            layer["wp"], layer["bp"],
            layer["w1_rt"], layer["b1_rt"], layer["w2_rt"], layer["b2_rt"]]
    kernel = _return_kernel

    flops = 2 * n_p * m_as * f_out + 2 * n_p * f_in * f_out + 4 * n_p * f_out * f_out
    bytes_accessed = (n_p * m_as * 2 + grid[0] * m_as * f_out * 2
                      + n_p * f_in * 2 + n_p * f_out * 2)

    if predict is not None:
        wpr, bpr = predict
        f_cls = wpr.shape[1]
        in_specs += [pl.BlockSpec((f_out, f_cls), lambda i, k: (0, 0)),
                     pl.BlockSpec((1, f_cls), lambda i, k: (0, 0))]
        out_specs.append(pl.BlockSpec((tile, f_cls), lambda i, k: (i, 0)))
        out_shape.append(jax.ShapeDtypeStruct((n_p, f_cls), jnp.float32))
        args += [wpr, bpr]
        kernel = _return_predict_kernel
        flops += 2 * n_p * f_out * f_cls
        bytes_accessed += n_p * f_cls * 4

    grid_spec = pltpu.PrefetchScalarGridSpec(
        num_scalar_prefetch=0, grid=grid,
        in_specs=in_specs, out_specs=out_specs,
        scratch_shapes=[pltpu.VMEM((tile, f_out), jnp.float32)],
    )
    outs = pl.pallas_call(
        kernel,
        grid_spec=grid_spec,
        out_shape=tuple(out_shape),
        compiler_params=_compiler_params(),
        cost_estimate=pl.CostEstimate(flops=flops, transcendentals=0,
                                      bytes_accessed=bytes_accessed),
    )(*args)
    if predict is None:
        return outs[0]
    return outs[0], outs[1]


# ----------------------------------------------------------------------------
# Forward: 2 fused gridded pallas_calls per HGIN layer
# ----------------------------------------------------------------------------

def hgin_forward(params, hp, h_as, a_all, a_all_t, tile_type, *, tile):
    logits = None
    n_layers = len(params["layers"])
    for idx, layer in enumerate(params["layers"]):
        h_as_pre, h_as_act = hgin_go_call(layer, tile_type, a_all, hp, h_as, tile)
        if idx == n_layers - 1:
            hp, logits = hgin_return_call(layer, a_all_t, h_as_pre, hp, tile,
                                          predict=params["predict"])
        else:
            hp = hgin_return_call(layer, a_all_t, h_as_pre, hp, tile)
        h_as = h_as_act
    return hp, logits


# ----------------------------------------------------------------------------
# Host-side prep: padding, edge-type concat, A^T materialization, param init
# ----------------------------------------------------------------------------

def prepare_graph(a_pa, a_ps, feat_paper, emb_author, emb_subject, tile):
    n_author, n_paper = a_pa.shape
    n_subject = a_ps.shape[0]
    f_in = feat_paper.shape[1]
    n_a_pad = _round_up(n_author, tile)
    n_s_pad = _round_up(n_subject, tile)
    n_p_pad = _round_up(n_paper, tile)
    f_pad = _round_up(f_in, LANE)

    # one dense adjacency [dst, src] per go edge type, concatenated along dst;
    # 0/1 adjacency is exact in bf16.
    a_all = jnp.concatenate([_pad2(a_pa, n_a_pad, n_p_pad),
                             _pad2(a_ps, n_s_pad, n_p_pad)],
                            axis=0).astype(jnp.bfloat16)
    a_all_t = jnp.transpose(a_all)   # materialized once, reused by every layer

    # dst-tile -> edge-type table (0 = 'pa' / author rows, 1 = 'ps' / subject rows)
    tile_type = jnp.concatenate([jnp.zeros((n_a_pad // tile,), jnp.int32),
                                 jnp.ones((n_s_pad // tile,), jnp.int32)])

    hp = _pad2(feat_paper, n_p_pad, f_pad).astype(jnp.bfloat16)
    h_as = jnp.concatenate([_pad2(emb_author, n_a_pad, f_pad),
                            _pad2(emb_subject, n_s_pad, f_pad)],
                           axis=0).astype(jnp.bfloat16)
    return a_all, a_all_t, tile_type, hp, h_as


def _uniform(key, shape, bound):
    return jax.random.uniform(key, shape, jnp.float32, -bound, bound)


def _init_linear(key, in_size, out_size, pad_in, pad_out):
    kw, kb = jax.random.split(key)
    bound = 1.0 / float(in_size) ** 0.5
    w = _uniform(kw, (in_size, out_size), bound)
    b = _uniform(kb, (1, out_size), bound)
    return (_pad2(w, pad_in, pad_out).astype(jnp.bfloat16),
            _pad2(b, 1, pad_out))                     # bias stays f32


def _init_mlp(key, in_size, hidden_size, out_size, pad_in, pad_hid, pad_out):
    """MLP(num_layers=2): Linear -> BatchNorm1d(eval) -> ReLU -> Linear.
    Eval BN is folded into the first Linear (w1'=w1*scale, b1'=b1*scale+shift)."""
    k1, kb1, k2, kb2, kbn = jax.random.split(key, 5)
    b1_bound = 1.0 / float(in_size) ** 0.5
    w1 = _uniform(k1, (in_size, hidden_size), b1_bound)
    b1 = _uniform(kb1, (1, hidden_size), b1_bound)
    b2_bound = 1.0 / float(hidden_size) ** 0.5
    w2 = _uniform(k2, (hidden_size, out_size), b2_bound)
    b2 = _uniform(kb2, (1, out_size), b2_bound)
    # deterministic pseudo running-stats / affine for eval-mode BatchNorm1d
    kg, kb, km, kv = jax.random.split(kbn, 4)
    gamma = 1.0 + 0.1 * jax.random.normal(kg, (1, hidden_size), jnp.float32)
    beta = 0.1 * jax.random.normal(kb, (1, hidden_size), jnp.float32)
    rmean = 0.1 * jax.random.normal(km, (1, hidden_size), jnp.float32)
    rvar = jnp.abs(jax.random.normal(kv, (1, hidden_size), jnp.float32)) + 0.5
    scale = gamma / jnp.sqrt(rvar + 1e-5)
    shift = beta - rmean * scale
    w1f = w1 * scale
    b1f = b1 * scale + shift
    return (_pad2(w1f, pad_in, pad_hid).astype(jnp.bfloat16),
            _pad2(b1f, 1, pad_hid),
            _pad2(w2, pad_hid, pad_out).astype(jnp.bfloat16),
            _pad2(b2, 1, pad_out))


def init_hgin_layer(key, in_size, out_size):
    pad_in = _round_up(in_size, LANE)
    pad_out = _round_up(out_size, LANE)
    k_pa, k_ps, k_rt, k_pr = jax.random.split(key, 4)
    w1_pa, b1_pa, w2_pa, b2_pa = _init_mlp(k_pa, in_size, out_size, out_size,
                                           pad_in, pad_out, pad_out)
    w1_ps, b1_ps, w2_ps, b2_ps = _init_mlp(k_ps, in_size, out_size, out_size,
                                           pad_in, pad_out, pad_out)
    w1_rt, b1_rt, w2_rt, b2_rt = _init_mlp(k_rt, out_size, out_size, out_size,
                                           pad_out, pad_out, pad_out)
    wp, bp = _init_linear(k_pr, in_size, out_size, pad_in, pad_out)
    eps_go = jnp.zeros((2,), jnp.float32)   # [eps_pa, eps_ps]   (torch.zeros(1) each)
    eps_rt = jnp.zeros((1,), jnp.float32)   # eps_Return
    return dict(
        # (1+eps) carried as a broadcast row so it rides the same stacked /
        # type-indexed BlockSpec machinery as the biases (no SMEM scalars).
        eps1_go=(1.0 + eps_go)[:, None, None] * jnp.ones((2, 1, pad_in), jnp.float32),
        eps1_rt=(1.0 + eps_rt)[:, None] * jnp.ones((1, pad_out), jnp.float32),
        # go-path MLP weights stacked over edge type: index 0 = 'pa', 1 = 'ps'
        w1_go=jnp.stack([w1_pa, w1_ps]), b1_go=jnp.stack([b1_pa, b1_ps]),
        w2_go=jnp.stack([w2_pa, w2_ps]), b2_go=jnp.stack([b2_pa, b2_ps]),
        wp=wp, bp=bp,
        w1_rt=w1_rt, b1_rt=b1_rt, w2_rt=w2_rt, b2_rt=b2_rt,
    )


# ----------------------------------------------------------------------------
# Demo (ACM-style: target 'paper', metapaths [('pa','ap'), ('ps','sp')])
# ----------------------------------------------------------------------------

if __name__ == "__main__":
    key = jax.random.PRNGKey(0)

    in_size, hidden_size, out_size = 16, 32, 8
    num_layers = 2
    n_paper, n_author, n_subject = 16, 8, 8
    # Tile for dst rows and reduction dim.  128 keeps the toy demo small; use
    # 256-512 on v6e/v7x real graphs (largest multiple of the MXU width that
    # keeps double-buffered A tiles + accumulator under the VMEM budget).
    TILE = 128

    (k_feat, k_emb_a, k_emb_s, k_adj1, k_adj2,
     k_l0, k_l1, k_pred) = jax.random.split(key, 8)

    # target node type gets `features`; others get xavier_uniform embeddings
    feat_paper = jax.random.normal(k_feat, (n_paper, in_size), jnp.float32)
    bound_a = (6.0 / (n_author + in_size)) ** 0.5
    bound_s = (6.0 / (n_subject + in_size)) ** 0.5
    emb_author = jax.random.uniform(k_emb_a, (n_author, in_size), jnp.float32,
                                    -bound_a, bound_a)
    emb_subject = jax.random.uniform(k_emb_s, (n_subject, in_size), jnp.float32,
                                     -bound_s, bound_s)

    a_pa = (jax.random.uniform(k_adj1, (n_author, n_paper)) < 0.3).astype(jnp.float32)
    a_ps = (jax.random.uniform(k_adj2, (n_subject, n_paper)) < 0.3).astype(jnp.float32)

    a_all, a_all_t, tile_type, hp0, h_as0 = prepare_graph(
        a_pa, a_ps, feat_paper, emb_author, emb_subject, TILE)

    pad_hid = _round_up(hidden_size, LANE)
    pad_cls = _round_up(out_size, LANE)
    layer_keys = [k_l0, k_l1]
    params = dict(
        layers=[init_hgin_layer(layer_keys[0], in_size, hidden_size)]
               + [init_hgin_layer(layer_keys[i], hidden_size, hidden_size)
                  for i in range(1, num_layers)],
        predict=_init_linear(k_pred, hidden_size, out_size, pad_hid, pad_cls),
    )

    fwd = jax.jit(functools.partial(hgin_forward, tile=TILE))
    embeds_pad, logits_pad = fwd(params, hp0, h_as0, a_all, a_all_t, tile_type)
    jax.block_until_ready((embeds_pad, logits_pad))

    embeds = embeds_pad[:n_paper, :hidden_size].astype(jnp.float32)
    logits = logits_pad[:n_paper, :out_size]

    assert embeds.shape == (n_paper, hidden_size)
    assert logits.shape == (n_paper, out_size)
    assert bool(jnp.all(jnp.isfinite(embeds))) and bool(jnp.all(jnp.isfinite(logits)))
    print("KERNEL_OK")
</pallas_src>

<mosaic_0001>
module attributes {stable_mosaic.version = 11 : i64} {
  func.func @_go_kernel(%arg0: i32, %arg1: i32, %arg2: memref<2xi32, #tpu.memory_space<smem>>, %arg3: memref<128x128xbf16, #tpu.memory_space<vmem>>, %arg4: memref<128x128xbf16, #tpu.memory_space<vmem>>, %arg5: memref<128x128xbf16, #tpu.memory_space<vmem>>, %arg6: memref<1x1x128xf32, #tpu.memory_space<vmem>>, %arg7: memref<1x128x128xbf16, #tpu.memory_space<vmem>>, %arg8: memref<1x1x128xf32, #tpu.memory_space<vmem>>, %arg9: memref<1x128x128xbf16, #tpu.memory_space<vmem>>, %arg10: memref<1x1x128xf32, #tpu.memory_space<vmem>>, %arg11: memref<128x128xbf16, #tpu.memory_space<vmem>>, %arg12: memref<128x128xbf16, #tpu.memory_space<vmem>>, %arg13: memref<128x128xf32, #tpu.memory_space<vmem>>) attributes {dimension_semantics = [#tpu.dimension_semantics<parallel>, #tpu.dimension_semantics<arbitrary>], iteration_bounds = array<i64: 2, 1>, scalar_prefetch = 1 : i64, scratch_operands = 1 : i64, tpu.core_type = #tpu.core_type<tc>, window_params = [{transform_indices = @transform_0, window_bounds = array<i64: 128, 128>}, {transform_indices = @transform_1, window_bounds = array<i64: 128, 128>}, {transform_indices = @transform_2, window_bounds = array<i64: 128, 128>}, {transform_indices = @transform_3, window_bounds = array<i64: 1, 1, 128>}, {transform_indices = @transform_4, window_bounds = array<i64: 1, 128, 128>}, {transform_indices = @transform_5, window_bounds = array<i64: 1, 1, 128>}, {transform_indices = @transform_6, window_bounds = array<i64: 1, 128, 128>}, {transform_indices = @transform_7, window_bounds = array<i64: 1, 1, 128>}, {transform_indices = @transform_8, window_bounds = array<i64: 128, 128>}, {transform_indices = @transform_9, window_bounds = array<i64: 128, 128>}]} {
    %c0_i32 = arith.constant 0 : i32
    %0 = arith.cmpi eq, %arg1, %c0_i32 : i32
    %1 = arith.extui %0 : i1 to i32
    %c0_i32_0 = arith.constant 0 : i32
    %2 = arith.cmpi ne, %1, %c0_i32_0 : i32
    scf.if %2 {
      %c0_10 = arith.constant 0 : index
      %c0_11 = arith.constant 0 : index
      %c0_12 = arith.constant 0 : index
      %12 = vector.load %arg6[%c0_10, %c0_11, %c0_12] : memref<1x1x128xf32, #tpu.memory_space<vmem>>, vector<1x1x128xf32>
      %13 = vector.shape_cast %12 : vector<1x1x128xf32> to vector<1x128xf32>
      %c0_13 = arith.constant 0 : index
      %c0_14 = arith.constant 0 : index
      %14 = vector.load %arg5[%c0_13, %c0_14] : memref<128x128xbf16, #tpu.memory_space<vmem>>, vector<128x128xbf16>
      %15 = arith.extf %14 : vector<128x128xbf16> to vector<128x128xf32>
      %16 = vector.broadcast %13 : vector<1x128xf32> to vector<128x128xf32>
      %17 = arith.mulf %16, %15 : vector<128x128xf32>
      %c0_15 = arith.constant 0 : index
      %c0_16 = arith.constant 0 : index
      %18 = vector.load %arg13[%c0_15, %c0_16] : memref<128x128xf32, #tpu.memory_space<vmem>>, vector<128x128xf32>
      tpu.vector_store %arg13[%c0_15, %c0_16], %17 {strides = array<i32>} : memref<128x128xf32, #tpu.memory_space<vmem>>, vector<128x128xf32>,
    } else {
    }
    %c0 = arith.constant 0 : index
    %c0_1 = arith.constant 0 : index
    %3 = vector.load %arg13[%c0, %c0_1] : memref<128x128xf32, #tpu.memory_space<vmem>>, vector<128x128xf32>
    %c0_2 = arith.constant 0 : index
    %c0_3 = arith.constant 0 : index
    %4 = vector.load %arg3[%c0_2, %c0_3] : memref<128x128xbf16, #tpu.memory_space<vmem>>, vector<128x128xbf16>
    %c0_4 = arith.constant 0 : index
    %c0_5 = arith.constant 0 : index
    %5 = vector.load %arg4[%c0_4, %c0_5] : memref<128x128xbf16, #tpu.memory_space<vmem>>, vector<128x128xbf16>
    %cst = arith.constant dense<0.000000e+00> : vector<128x128xf32>
    %6 = tpu.matmul %4, %5, %cst {dimension_numbers = #tpu.dot_dimension_numbers<[1], [0], [0], [1], [0, 0, 1, 1], [], []>} : vector<128x128xbf16>, vector<128x128xbf16>, vector<128x128xf32> -> vector<128x128xf32>
    %7 = arith.addf %3, %6 : vector<128x128xf32>
    %c0_6 = arith.constant 0 : index
    %c0_7 = arith.constant 0 : index
    %8 = vector.load %arg13[%c0_6, %c0_7] : memref<128x128xf32, #tpu.memory_space<vmem>>, vector<128x128xf32>
    tpu.vector_store %arg13[%c0_6, %c0_7], %7 {strides = array<i32>} : memref<128x128xf32, #tpu.memory_space<vmem>>, vector<128x128xf32>,
    %c0_i32_8 = arith.constant 0 : i32
    %9 = arith.cmpi eq, %arg1, %c0_i32_8 : i32
    %10 = arith.extui %9 : i1 to i32
    %c0_i32_9 = arith.constant 0 : i32
    %11 = arith.cmpi ne, %10, %c0_i32_9 : i32
    scf.if %11 {
      %c0_10 = arith.constant 0 : index
      %c0_11 = arith.constant 0 : index
      %12 = vector.load %arg13[%c0_10, %c0_11] : memref<128x128xf32, #tpu.memory_space<vmem>>, vector<128x128xf32>
      %13 = arith.truncf %12 : vector<128x128xf32> to vector<128x128xbf16>
      %c0_12 = arith.constant 0 : index
      %c0_13 = arith.constant 0 : index
      %c0_14 = arith.constant 0 : index
      %14 = vector.load %arg7[%c0_12, %c0_13, %c0_14] : memref<1x128x128xbf16, #tpu.memory_space<vmem>>, vector<1x128x128xbf16>
      %15 = vector.shape_cast %14 : vector<1x128x128xbf16> to vector<128x128xbf16>
      %cst_15 = arith.constant dense<0.000000e+00> : vector<128x128xf32>
      %16 = tpu.matmul %13, %15, %cst_15 {dimension_numbers = #tpu.dot_dimension_numbers<[1], [0], [0], [1], [0, 0, 1, 1], [], []>} : vector<128x128xbf16>, vector<128x128xbf16>, vector<128x128xf32> -> vector<128x128xf32>
      %c0_16 = arith.constant 0 : index
      %c0_17 = arith.constant 0 : index
      %c0_18 = arith.constant 0 : index
      %17 = vector.load %arg8[%c0_16, %c0_17, %c0_18] : memref<1x1x128xf32, #tpu.memory_space<vmem>>, vector<1x1x128xf32>
      %18 = vector.shape_cast %17 : vector<1x1x128xf32> to vector<1x128xf32>
      %19 = vector.broadcast %18 : vector<1x128xf32> to vector<128x128xf32>
      %20 = arith.addf %16, %19 : vector<128x128xf32>
      %cst_19 = arith.constant 0.000000e+00 : f32
      %21 = vector.broadcast %cst_19 : f32 to vector<128x128xf32>
      %22 = arith.maximumf %20, %21 : vector<128x128xf32>
      %23 = arith.truncf %22 : vector<128x128xf32> to vector<128x128xbf16>
      %c0_20 = arith.constant 0 : index
      %c0_21 = arith.constant 0 : index
      %c0_22 = arith.constant 0 : index
      %24 = vector.load %arg9[%c0_20, %c0_21, %c0_22] : memref<1x128x128xbf16, #tpu.memory_space<vmem>>, vector<1x128x128xbf16>
      %25 = vector.shape_cast %24 : vector<1x128x128xbf16> to vector<128x128xbf16>
      %cst_23 = arith.constant dense<0.000000e+00> : vector<128x128xf32>
      %26 = tpu.matmul %23, %25, %cst_23 {dimension_numbers = #tpu.dot_dimension_numbers<[1], [0], [0], [1], [0, 0, 1, 1], [], []>} : vector<128x128xbf16>, vector<128x128xbf16>, vector<128x128xf32> -> vector<128x128xf32>
      %c0_24 = arith.constant 0 : index
      %c0_25 = arith.constant 0 : index
      %c0_26 = arith.constant 0 : index
      %27 = vector.load %arg10[%c0_24, %c0_25, %c0_26] : memref<1x1x128xf32, #tpu.memory_space<vmem>>, vector<1x1x128xf32>
      %28 = vector.shape_cast %27 : vector<1x1x128xf32> to vector<1x128xf32>
      %29 = vector.broadcast %28 : vector<1x128xf32> to vector<128x128xf32>
      %30 = arith.addf %26, %29 : vector<128x128xf32>
      %31 = arith.truncf %30 : vector<128x128xf32> to vector<128x128xbf16>
      %c0_27 = arith.constant 0 : index
      %c0_28 = arith.constant 0 : index
      %32 = vector.load %arg11[%c0_27, %c0_28] : memref<128x128xbf16, #tpu.memory_space<vmem>>, vector<128x128xbf16>
      tpu.vector_store %arg11[%c0_27, %c0_28], %31 {strides = array<i32>} : memref<128x128xbf16, #tpu.memory_space<vmem>>, vector<128x128xbf16>,
      %cst_29 = arith.constant 0.000000e+00 : f32
      %33 = vector.broadcast %cst_29 : f32 to vector<128x128xf32>
      %34 = arith.cmpf oge, %30, %33 : vector<128x128xf32>
      %cst_30 = arith.constant 0.00999999977 : f32
      %35 = vector.broadcast %cst_30 : f32 to vector<128x128xf32>
      %36 = arith.mulf %35, %30 : vector<128x128xf32>
      %37 = arith.select %34, %30, %36 : vector<128x128xi1>, vector<128x128xf32>
      %38 = arith.truncf %37 : vector<128x128xf32> to vector<128x128xbf16>
      %c0_31 = arith.constant 0 : index
      %c0_32 = arith.constant 0 : index
      %39 = vector.load %arg12[%c0_31, %c0_32] : memref<128x128xbf16, #tpu.memory_space<vmem>>, vector<128x128xbf16>
      tpu.vector_store %arg12[%c0_31, %c0_32], %38 {strides = array<i32>} : memref<128x128xbf16, #tpu.memory_space<vmem>>, vector<128x128xbf16>,
    } else {
    }
    return
  }
  func.func @transform_0(%arg0: i32, %arg1: i32, %arg2: memref<2xi32, #tpu.memory_space<smem>>) -> (i32, i32) {
    %c0_i32 = arith.constant 0 : i32
    return %arg0, %arg1 : i32, i32
  }
  func.func @transform_1(%arg0: i32, %arg1: i32, %arg2: memref<2xi32, #tpu.memory_space<smem>>) -> (i32, i32) {
    %c0_i32 = arith.constant 0 : i32
    %c0_i32_0 = arith.constant 0 : i32
    return %arg1, %c0_i32 : i32, i32
  }
  func.func @transform_2(%arg0: i32, %arg1: i32, %arg2: memref<2xi32, #tpu.memory_space<smem>>) -> (i32, i32) {
    %c0_i32 = arith.constant 0 : i32
    %c0_i32_0 = arith.constant 0 : i32
    return %arg0, %c0_i32 : i32, i32
  }
  func.func @transform_3(%arg0: i32, %arg1: i32, %arg2: memref<2xi32, #tpu.memory_space<smem>>) -> (i32, i32, i32) {
    %0 = arith.index_cast %arg0 : i32 to index
    %1 = memref.load %arg2[%0] : memref<2xi32, #tpu.memory_space<smem>>
    %c0_i32 = arith.constant 0 : i32
    %c0_i32_0 = arith.constant 0 : i32
    %c0_i32_1 = arith.constant 0 : i32
    return %1, %c0_i32, %c0_i32_0 : i32, i32, i32
  }
  func.func @transform_4(%arg0: i32, %arg1: i32, %arg2: memref<2xi32, #tpu.memory_space<smem>>) -> (i32, i32, i32) {
    %0 = arith.index_cast %arg0 : i32 to index
    %1 = memref.load %arg2[%0] : memref<2xi32, #tpu.memory_space<smem>>
    %c0_i32 = arith.constant 0 : i32
    %c0_i32_0 = arith.constant 0 : i32
    %c0_i32_1 = arith.constant 0 : i32
    return %1, %c0_i32, %c0_i32_0 : i32, i32, i32
  }
  func.func @transform_5(%arg0: i32, %arg1: i32, %arg2: memref<2xi32, #tpu.memory_space<smem>>) -> (i32, i32, i32) {
    %0 = arith.index_cast %arg0 : i32 to index
    %1 = memref.load %arg2[%0] : memref<2xi32, #tpu.memory_space<smem>>
    %c0_i32 = arith.constant 0 : i32
    %c0_i32_0 = arith.constant 0 : i32
    %c0_i32_1 = arith.constant 0 : i32
    return %1, %c0_i32, %c0_i32_0 : i32, i32, i32
  }
  func.func @transform_6(%arg0: i32, %arg1: i32, %arg2: memref<2xi32, #tpu.memory_space<smem>>) -> (i32, i32, i32) {
    %0 = arith.index_cast %arg0 : i32 to index
    %1 = memref.load %arg2[%0] : memref<2xi32, #tpu.memory_space<smem>>
    %c0_i32 = arith.constant 0 : i32
    %c0_i32_0 = arith.constant 0 : i32
    %c0_i32_1 = arith.constant 0 : i32
    return %1, %c0_i32, %c0_i32_0 : i32, i32, i32
  }
  func.func @transform_7(%arg0: i32, %arg1: i32, %arg2: memref<2xi32, #tpu.memory_space<smem>>) -> (i32, i32, i32) {
    %0 = arith.index_cast %arg0 : i32 to index
    %1 = memref.load %arg2[%0] : memref<2xi32, #tpu.memory_space<smem>>
    %c0_i32 = arith.constant 0 : i32
    %c0_i32_0 = arith.constant 0 : i32
    %c0_i32_1 = arith.constant 0 : i32
    return %1, %c0_i32, %c0_i32_0 : i32, i32, i32
  }
  func.func @transform_8(%arg0: i32, %arg1: i32, %arg2: memref<2xi32, #tpu.memory_space<smem>>) -> (i32, i32) {
    %c0_i32 = arith.constant 0 : i32
    %c0_i32_0 = arith.constant 0 : i32
    return %arg0, %c0_i32 : i32, i32
  }
  func.func @transform_9(%arg0: i32, %arg1: i32, %arg2: memref<2xi32, #tpu.memory_space<smem>>) -> (i32, i32) {
    %c0_i32 = arith.constant 0 : i32
    %c0_i32_0 = arith.constant 0 : i32
    return %arg0, %c0_i32 : i32, i32
  }
}

module attributes {stable_mosaic.version = 11 : i64} {
  func.func @_return_predict_kernel(%arg0: i32, %arg1: i32, %arg2: memref<128x128xbf16, #tpu.memory_space<vmem>>, %arg3: memref<128x128xbf16, #tpu.memory_space<vmem>>, %arg4: memref<128x128xbf16, #tpu.memory_space<vmem>>, %arg5: memref<1x128xf32, #tpu.memory_space<vmem>>, %arg6: memref<128x128xbf16, #tpu.memory_space<vmem>>, %arg7: memref<1x128xf32, #tpu.memory_space<vmem>>, %arg8: memref<128x128xbf16, #tpu.memory_space<vmem>>, %arg9: memref<1x128xf32, #tpu.memory_space<vmem>>, %arg10: memref<128x128xbf16, #tpu.memory_space<vmem>>, %arg11: memref<1x128xf32, #tpu.memory_space<vmem>>, %arg12: memref<128x128xbf16, #tpu.memory_space<vmem>>, %arg13: memref<1x128xf32, #tpu.memory_space<vmem>>, %arg14: memref<128x128xbf16, #tpu.memory_space<vmem>>, %arg15: memref<128x128xf32, #tpu.memory_space<vmem>>, %arg16: memref<128x128xf32, #tpu.memory_space<vmem>>) attributes {dimension_semantics = [#tpu.dimension_semantics<parallel>, #tpu.dimension_semantics<arbitrary>], iteration_bounds = array<i64: 1, 2>, scalar_prefetch = 0 : i64, scratch_operands = 1 : i64, tpu.core_type = #tpu.core_type<tc>, window_params = [{transform_indices = @transform_0, window_bounds = array<i64: 128, 128>}, {transform_indices = @transform_1, window_bounds = array<i64: 128, 128>}, {transform_indices = @transform_2, window_bounds = array<i64: 128, 128>}, {pipeline_mode = #tpu.pipeline_mode<synchronous>, transform_indices = @transform_3, window_bounds = array<i64: 1, 128>}, {pipeline_mode = #tpu.pipeline_mode<synchronous>, transform_indices = @transform_4, window_bounds = array<i64: 128, 128>}, {pipeline_mode = #tpu.pipeline_mode<synchronous>, transform_indices = @transform_5, window_bounds = array<i64: 1, 128>}, {pipeline_mode = #tpu.pipeline_mode<synchronous>, transform_indices = @transform_6, window_bounds = array<i64: 128, 128>}, {pipeline_mode = #tpu.pipeline_mode<synchronous>, transform_indices = @transform_7, window_bounds = array<i64: 1, 128>}, {pipeline_mode = #tpu.pipeline_mode<synchronous>, transform_indices = @transform_8, window_bounds = array<i64: 128, 128>}, {pipeline_mode = #tpu.pipeline_mode<synchronous>, transform_indices = @transform_9, window_bounds = array<i64: 1, 128>}, {pipeline_mode = #tpu.pipeline_mode<synchronous>, transform_indices = @transform_10, window_bounds = array<i64: 128, 128>}, {pipeline_mode = #tpu.pipeline_mode<synchronous>, transform_indices = @transform_11, window_bounds = array<i64: 1, 128>}, {transform_indices = @transform_12, window_bounds = array<i64: 128, 128>}, {transform_indices = @transform_13, window_bounds = array<i64: 128, 128>}]} {
    %c0_i32 = arith.constant 0 : i32
    %0 = arith.cmpi eq, %arg1, %c0_i32 : i32
    %1 = arith.extui %0 : i1 to i32
    %c0_i32_0 = arith.constant 0 : i32
    %2 = arith.cmpi ne, %1, %c0_i32_0 : i32
    scf.if %2 {
      %cst_9 = arith.constant 0.000000e+00 : f32
      %12 = vector.broadcast %cst_9 : f32 to vector<128x128xf32>
      %c0_10 = arith.constant 0 : index
      %c0_11 = arith.constant 0 : index
      %13 = vector.load %arg16[%c0_10, %c0_11] : memref<128x128xf32, #tpu.memory_space<vmem>>, vector<128x128xf32>
      tpu.vector_store %arg16[%c0_10, %c0_11], %12 {strides = array<i32>} : memref<128x128xf32, #tpu.memory_space<vmem>>, vector<128x128xf32>,
    } else {
    }
    %c0 = arith.constant 0 : index
    %c0_1 = arith.constant 0 : index
    %3 = vector.load %arg16[%c0, %c0_1] : memref<128x128xf32, #tpu.memory_space<vmem>>, vector<128x128xf32>
    %c0_2 = arith.constant 0 : index
    %c0_3 = arith.constant 0 : index
    %4 = vector.load %arg2[%c0_2, %c0_3] : memref<128x128xbf16, #tpu.memory_space<vmem>>, vector<128x128xbf16>
    %c0_4 = arith.constant 0 : index
    %c0_5 = arith.constant 0 : index
    %5 = vector.load %arg3[%c0_4, %c0_5] : memref<128x128xbf16, #tpu.memory_space<vmem>>, vector<128x128xbf16>
    %cst = arith.constant dense<0.000000e+00> : vector<128x128xf32>
    %6 = tpu.matmul %4, %5, %cst {dimension_numbers = #tpu.dot_dimension_numbers<[1], [0], [0], [1], [0, 0, 1, 1], [], []>} : vector<128x128xbf16>, vector<128x128xbf16>, vector<128x128xf32> -> vector<128x128xf32>
    %7 = arith.addf %3, %6 : vector<128x128xf32>
    %c0_6 = arith.constant 0 : index
    %c0_7 = arith.constant 0 : index
    %8 = vector.load %arg16[%c0_6, %c0_7] : memref<128x128xf32, #tpu.memory_space<vmem>>, vector<128x128xf32>
    tpu.vector_store %arg16[%c0_6, %c0_7], %7 {strides = array<i32>} : memref<128x128xf32, #tpu.memory_space<vmem>>, vector<128x128xf32>,
    %c1_i32 = arith.constant 1 : i32
    %9 = arith.cmpi eq, %arg1, %c1_i32 : i32
    %10 = arith.extui %9 : i1 to i32
    %c0_i32_8 = arith.constant 0 : i32
    %11 = arith.cmpi ne, %10, %c0_i32_8 : i32
    scf.if %11 {
      %c0_9 = arith.constant 0 : index
      %c0_10 = arith.constant 0 : index
      %12 = vector.load %arg4[%c0_9, %c0_10] : memref<128x128xbf16, #tpu.memory_space<vmem>>, vector<128x128xbf16>
      %c0_11 = arith.constant 0 : index
      %c0_12 = arith.constant 0 : index
      %13 = vector.load %arg6[%c0_11, %c0_12] : memref<128x128xbf16, #tpu.memory_space<vmem>>, vector<128x128xbf16>
      %cst_13 = arith.constant dense<0.000000e+00> : vector<128x128xf32>
      %14 = tpu.matmul %12, %13, %cst_13 {dimension_numbers = #tpu.dot_dimension_numbers<[1], [0], [0], [1], [0, 0, 1, 1], [], []>} : vector<128x128xbf16>, vector<128x128xbf16>, vector<128x128xf32> -> vector<128x128xf32>
      %c0_14 = arith.constant 0 : index
      %c0_15 = arith.constant 0 : index
      %15 = vector.load %arg7[%c0_14, %c0_15] : memref<1x128xf32, #tpu.memory_space<vmem>>, vector<1x128xf32>
      %16 = vector.broadcast %15 : vector<1x128xf32> to vector<128x128xf32>
      %17 = arith.addf %14, %16 : vector<128x128xf32>
      %c0_16 = arith.constant 0 : index
      %c0_17 = arith.constant 0 : index
      %18 = vector.load %arg5[%c0_16, %c0_17] : memref<1x128xf32, #tpu.memory_space<vmem>>, vector<1x128xf32>
      %19 = vector.broadcast %18 : vector<1x128xf32> to vector<128x128xf32>
      %20 = arith.mulf %19, %17 : vector<128x128xf32>
      %c0_18 = arith.constant 0 : index
      %c0_19 = arith.constant 0 : index
      %21 = vector.load %arg16[%c0_18, %c0_19] : memref<128x128xf32, #tpu.memory_space<vmem>>, vector<128x128xf32>
      %22 = arith.addf %20, %21 : vector<128x128xf32>
      %23 = arith.truncf %22 : vector<128x128xf32> to vector<128x128xbf16>
      %c0_20 = arith.constant 0 : index
      %c0_21 = arith.constant 0 : index
      %24 = vector.load %arg8[%c0_20, %c0_21] : memref<128x128xbf16, #tpu.memory_space<vmem>>, vector<128x128xbf16>
      %cst_22 = arith.constant dense<0.000000e+00> : vector<128x128xf32>
      %25 = tpu.matmul %23, %24, %cst_22 {dimension_numbers = #tpu.dot_dimension_numbers<[1], [0], [0], [1], [0, 0, 1, 1], [], []>} : vector<128x128xbf16>, vector<128x128xbf16>, vector<128x128xf32> -> vector<128x128xf32>
      %c0_23 = arith.constant 0 : index
      %c0_24 = arith.constant 0 : index
      %26 = vector.load %arg9[%c0_23, %c0_24] : memref<1x128xf32, #tpu.memory_space<vmem>>, vector<1x128xf32>
      %27 = vector.broadcast %26 : vector<1x128xf32> to vector<128x128xf32>
      %28 = arith.addf %25, %27 : vector<128x128xf32>
      %cst_25 = arith.constant 0.000000e+00 : f32
      %29 = vector.broadcast %cst_25 : f32 to vector<128x128xf32>
      %30 = arith.maximumf %28, %29 : vector<128x128xf32>
      %31 = arith.truncf %30 : vector<128x128xf32> to vector<128x128xbf16>
      %c0_26 = arith.constant 0 : index
      %c0_27 = arith.constant 0 : index
      %32 = vector.load %arg10[%c0_26, %c0_27] : memref<128x128xbf16, #tpu.memory_space<vmem>>, vector<128x128xbf16>
      %cst_28 = arith.constant dense<0.000000e+00> : vector<128x128xf32>
      %33 = tpu.matmul %31, %32, %cst_28 {dimension_numbers = #tpu.dot_dimension_numbers<[1], [0], [0], [1], [0, 0, 1, 1], [], []>} : vector<128x128xbf16>, vector<128x128xbf16>, vector<128x128xf32> -> vector<128x128xf32>
      %c0_29 = arith.constant 0 : index
      %c0_30 = arith.constant 0 : index
      %34 = vector.load %arg11[%c0_29, %c0_30] : memref<1x128xf32, #tpu.memory_space<vmem>>, vector<1x128xf32>
      %35 = vector.broadcast %34 : vector<1x128xf32> to vector<128x128xf32>
      %36 = arith.addf %33, %35 : vector<128x128xf32>
      %cst_31 = arith.constant 0.000000e+00 : f32
      %37 = vector.broadcast %cst_31 : f32 to vector<128x128xf32>
      %38 = arith.cmpf oge, %36, %37 : vector<128x128xf32>
      %cst_32 = arith.constant 0.00999999977 : f32
      %39 = vector.broadcast %cst_32 : f32 to vector<128x128xf32>
      %40 = arith.mulf %39, %36 : vector<128x128xf32>
      %41 = arith.select %38, %36, %40 : vector<128x128xi1>, vector<128x128xf32>
      %42 = arith.truncf %41 : vector<128x128xf32> to vector<128x128xbf16>
      %c0_33 = arith.constant 0 : index
      %c0_34 = arith.constant 0 : index
      %43 = vector.load %arg14[%c0_33, %c0_34] : memref<128x128xbf16, #tpu.memory_space<vmem>>, vector<128x128xbf16>
      tpu.vector_store %arg14[%c0_33, %c0_34], %42 {strides = array<i32>} : memref<128x128xbf16, #tpu.memory_space<vmem>>, vector<128x128xbf16>,
      %44 = arith.truncf %41 : vector<128x128xf32> to vector<128x128xbf16>
      %c0_35 = arith.constant 0 : index
      %c0_36 = arith.constant 0 : index
      %45 = vector.load %arg12[%c0_35, %c0_36] : memref<128x128xbf16, #tpu.memory_space<vmem>>, vector<128x128xbf16>
      %cst_37 = arith.constant dense<0.000000e+00> : vector<128x128xf32>
      %46 = tpu.matmul %44, %45, %cst_37 {dimension_numbers = #tpu.dot_dimension_numbers<[1], [0], [0], [1], [0, 0, 1, 1], [], []>} : vector<128x128xbf16>, vector<128x128xbf16>, vector<128x128xf32> -> vector<128x128xf32>
      %c0_38 = arith.constant 0 : index
      %c0_39 = arith.constant 0 : index
      %47 = vector.load %arg13[%c0_38, %c0_39] : memref<1x128xf32, #tpu.memory_space<vmem>>, vector<1x128xf32>
      %48 = vector.broadcast %47 : vector<1x128xf32> to vector<128x128xf32>
      %49 = arith.addf %46, %48 : vector<128x128xf32>
      %c0_40 = arith.constant 0 : index
      %c0_41 = arith.constant 0 : index
      %50 = vector.load %arg15[%c0_40, %c0_41] : memref<128x128xf32, #tpu.memory_space<vmem>>, vector<128x128xf32>
      tpu.vector_store %arg15[%c0_40, %c0_41], %49 {strides = array<i32>} : memref<128x128xf32, #tpu.memory_space<vmem>>, vector<128x128xf32>,
    } else {
    }
    return
  }
  func.func @transform_0(%arg0: i32, %arg1: i32) -> (i32, i32) {
    %c0_i32 = arith.constant 0 : i32
    return %arg0, %arg1 : i32, i32
  }
  func.func @transform_1(%arg0: i32, %arg1: i32) -> (i32, i32) {
    %c0_i32 = arith.constant 0 : i32
    %c0_i32_0 = arith.constant 0 : i32
    return %arg1, %c0_i32 : i32, i32
  }
  func.func @transform_2(%arg0: i32, %arg1: i32) -> (i32, i32) {
    %c0_i32 = arith.constant 0 : i32
    %c0_i32_0 = arith.constant 0 : i32
    return %arg0, %c0_i32 : i32, i32
  }
  func.func @transform_3(%arg0: i32, %arg1: i32) -> (i32, i32) {
    %c0_i32 = arith.constant 0 : i32
    %c0_i32_0 = arith.constant 0 : i32
    %c0_i32_1 = arith.constant 0 : i32
    return %c0_i32, %c0_i32_0 : i32, i32
  }
  func.func @transform_4(%arg0: i32, %arg1: i32) -> (i32, i32) {
    %c0_i32 = arith.constant 0 : i32
    %c0_i32_0 = arith.constant 0 : i32
    %c0_i32_1 = arith.constant 0 : i32
    return %c0_i32, %c0_i32_0 : i32, i32
  }
  func.func @transform_5(%arg0: i32, %arg1: i32) -> (i32, i32) {
    %c0_i32 = arith.constant 0 : i32
    %c0_i32_0 = arith.constant 0 : i32
    %c0_i32_1 = arith.constant 0 : i32
    return %c0_i32, %c0_i32_0 : i32, i32
  }
  func.func @transform_6(%arg0: i32, %arg1: i32) -> (i32, i32) {
    %c0_i32 = arith.constant 0 : i32
    %c0_i32_0 = arith.constant 0 : i32
    %c0_i32_1 = arith.constant 0 : i32
    return %c0_i32, %c0_i32_0 : i32, i32
  }
  func.func @transform_7(%arg0: i32, %arg1: i32) -> (i32, i32) {
    %c0_i32 = arith.constant 0 : i32
    %c0_i32_0 = arith.constant 0 : i32
    %c0_i32_1 = arith.constant 0 : i32
    return %c0_i32, %c0_i32_0 : i32, i32
  }
  func.func @transform_8(%arg0: i32, %arg1: i32) -> (i32, i32) {
    %c0_i32 = arith.constant 0 : i32
    %c0_i32_0 = arith.constant 0 : i32
    %c0_i32_1 = arith.constant 0 : i32
    return %c0_i32, %c0_i32_0 : i32, i32
  }
  func.func @transform_9(%arg0: i32, %arg1: i32) -> (i32, i32) {
    %c0_i32 = arith.constant 0 : i32
    %c0_i32_0 = arith.constant 0 : i32
    %c0_i32_1 = arith.constant 0 : i32
    return %c0_i32, %c0_i32_0 : i32, i32
  }
  func.func @transform_10(%arg0: i32, %arg1: i32) -> (i32, i32) {
    %c0_i32 = arith.constant 0 : i32
    %c0_i32_0 = arith.constant 0 : i32
    %c0_i32_1 = arith.constant 0 : i32
    return %c0_i32, %c0_i32_0 : i32, i32
  }
  func.func @transform_11(%arg0: i32, %arg1: i32) -> (i32, i32) {
    %c0_i32 = arith.constant 0 : i32
    %c0_i32_0 = arith.constant 0 : i32
    %c0_i32_1 = arith.constant 0 : i32
    return %c0_i32, %c0_i32_0 : i32, i32
  }
  func.func @transform_12(%arg0: i32, %arg1: i32) -> (i32, i32) {
    %c0_i32 = arith.constant 0 : i32
    %c0_i32_0 = arith.constant 0 : i32
    return %arg0, %c0_i32 : i32, i32
  }
  func.func @transform_13(%arg0: i32, %arg1: i32) -> (i32, i32) {
    %c0_i32 = arith.constant 0 : i32
    %c0_i32_0 = arith.constant 0 : i32
    return %arg0, %c0_i32 : i32, i32
  }
}

module attributes {stable_mosaic.version = 11 : i64} {
  func.func @_go_kernel(%arg0: i32, %arg1: i32, %arg2: memref<2xi32, #tpu.memory_space<smem>>, %arg3: memref<128x128xbf16, #tpu.memory_space<vmem>>, %arg4: memref<128x128xbf16, #tpu.memory_space<vmem>>, %arg5: memref<128x128xbf16, #tpu.memory_space<vmem>>, %arg6: memref<1x1x128xf32, #tpu.memory_space<vmem>>, %arg7: memref<1x128x128xbf16, #tpu.memory_space<vmem>>, %arg8: memref<1x1x128xf32, #tpu.memory_space<vmem>>, %arg9: memref<1x128x128xbf16, #tpu.memory_space<vmem>>, %arg10: memref<1x1x128xf32, #tpu.memory_space<vmem>>, %arg11: memref<128x128xbf16, #tpu.memory_space<vmem>>, %arg12: memref<128x128xbf16, #tpu.memory_space<vmem>>, %arg13: memref<128x128xf32, #tpu.memory_space<vmem>>) attributes {dimension_semantics = [#tpu.dimension_semantics<parallel>, #tpu.dimension_semantics<arbitrary>], iteration_bounds = array<i64: 2, 1>, scalar_prefetch = 1 : i64, scratch_operands = 1 : i64, tpu.core_type = #tpu.core_type<tc>, window_params = [{transform_indices = @transform_0, window_bounds = array<i64: 128, 128>}, {transform_indices = @transform_1, window_bounds = array<i64: 128, 128>}, {transform_indices = @transform_2, window_bounds = array<i64: 128, 128>}, {transform_indices = @transform_3, window_bounds = array<i64: 1, 1, 128>}, {transform_indices = @transform_4, window_bounds = array<i64: 1, 128, 128>}, {transform_indices = @transform_5, window_bounds = array<i64: 1, 1, 128>}, {transform_indices = @transform_6, window_bounds = array<i64: 1, 128, 128>}, {transform_indices = @transform_7, window_bounds = array<i64: 1, 1, 128>}, {transform_indices = @transform_8, window_bounds = array<i64: 128, 128>}, {transform_indices = @transform_9, window_bounds = array<i64: 128, 128>}]} {
    %c0_i32 = arith.constant 0 : i32
    %0 = arith.cmpi eq, %arg1, %c0_i32 : i32
    %1 = arith.extui %0 : i1 to i32
    %c0_i32_0 = arith.constant 0 : i32
    %2 = arith.cmpi ne, %1, %c0_i32_0 : i32
    scf.if %2 {
      %c0_10 = arith.constant 0 : index
      %c0_11 = arith.constant 0 : index
      %c0_12 = arith.constant 0 : index
      %12 = vector.load %arg6[%c0_10, %c0_11, %c0_12] : memref<1x1x128xf32, #tpu.memory_space<vmem>>, vector<1x1x128xf32>
      %13 = vector.shape_cast %12 : vector<1x1x128xf32> to vector<1x128xf32>
      %c0_13 = arith.constant 0 : index
      %c0_14 = arith.constant 0 : index
      %14 = vector.load %arg5[%c0_13, %c0_14] : memref<128x128xbf16, #tpu.memory_space<vmem>>, vector<128x128xbf16>
      %15 = arith.extf %14 : vector<128x128xbf16> to vector<128x128xf32>
      %16 = vector.broadcast %13 : vector<1x128xf32> to vector<128x128xf32>
      %17 = arith.mulf %16, %15 : vector<128x128xf32>
      %c0_15 = arith.constant 0 : index
      %c0_16 = arith.constant 0 : index
      %18 = vector.load %arg13[%c0_15, %c0_16] : memref<128x128xf32, #tpu.memory_space<vmem>>, vector<128x128xf32>
      tpu.vector_store %arg13[%c0_15, %c0_16], %17 {strides = array<i32>} : memref<128x128xf32, #tpu.memory_space<vmem>>, vector<128x128xf32>,
    } else {
    }
    %c0 = arith.constant 0 : index
    %c0_1 = arith.constant 0 : index
    %3 = vector.load %arg13[%c0, %c0_1] : memref<128x128xf32, #tpu.memory_space<vmem>>, vector<128x128xf32>
    %c0_2 = arith.constant 0 : index
    %c0_3 = arith.constant 0 : index
    %4 = vector.load %arg3[%c0_2, %c0_3] : memref<128x128xbf16, #tpu.memory_space<vmem>>, vector<128x128xbf16>
    %c0_4 = arith.constant 0 : index
    %c0_5 = arith.constant 0 : index
    %5 = vector.load %arg4[%c0_4, %c0_5] : memref<128x128xbf16, #tpu.memory_space<vmem>>, vector<128x128xbf16>
    %cst = arith.constant dense<0.000000e+00> : vector<128x128xf32>
    %6 = tpu.matmul %4, %5, %cst {dimension_numbers = #tpu.dot_dimension_numbers<[1], [0], [0], [1], [0, 0, 1, 1], [], []>} : vector<128x128xbf16>, vector<128x128xbf16>, vector<128x128xf32> -> vector<128x128xf32>
    %7 = arith.addf %3, %6 : vector<128x128xf32>
    %c0_6 = arith.constant 0 : index
    %c0_7 = arith.constant 0 : index
    %8 = vector.load %arg13[%c0_6, %c0_7] : memref<128x128xf32, #tpu.memory_space<vmem>>, vector<128x128xf32>
    tpu.vector_store %arg13[%c0_6, %c0_7], %7 {strides = array<i32>} : memref<128x128xf32, #tpu.memory_space<vmem>>, vector<128x128xf32>,
    %c0_i32_8 = arith.constant 0 : i32
    %9 = arith.cmpi eq, %arg1, %c0_i32_8 : i32
    %10 = arith.extui %9 : i1 to i32
    %c0_i32_9 = arith.constant 0 : i32
    %11 = arith.cmpi ne, %10, %c0_i32_9 : i32
    scf.if %11 {
      %c0_10 = arith.constant 0 : index
      %c0_11 = arith.constant 0 : index
      %12 = vector.load %arg13[%c0_10, %c0_11] : memref<128x128xf32, #tpu.memory_space<vmem>>, vector<128x128xf32>
      %13 = arith.truncf %12 : vector<128x128xf32> to vector<128x128xbf16>
      %c0_12 = arith.constant 0 : index
      %c0_13 = arith.constant 0 : index
      %c0_14 = arith.constant 0 : index
      %14 = vector.load %arg7[%c0_12, %c0_13, %c0_14] : memref<1x128x128xbf16, #tpu.memory_space<vmem>>, vector<1x128x128xbf16>
      %15 = vector.shape_cast %14 : vector<1x128x128xbf16> to vector<128x128xbf16>
      %cst_15 = arith.constant dense<0.000000e+00> : vector<128x128xf32>
      %16 = tpu.matmul %13, %15, %cst_15 {dimension_numbers = #tpu.dot_dimension_numbers<[1], [0], [0], [1], [0, 0, 1, 1], [], []>} : vector<128x128xbf16>, vector<128x128xbf16>, vector<128x128xf32> -> vector<128x128xf32>
      %c0_16 = arith.constant 0 : index
      %c0_17 = arith.constant 0 : index
      %c0_18 = arith.constant 0 : index
      %17 = vector.load %arg8[%c0_16, %c0_17, %c0_18] : memref<1x1x128xf32, #tpu.memory_space<vmem>>, vector<1x1x128xf32>
      %18 = vector.shape_cast %17 : vector<1x1x128xf32> to vector<1x128xf32>
      %19 = vector.broadcast %18 : vector<1x128xf32> to vector<128x128xf32>
      %20 = arith.addf %16, %19 : vector<128x128xf32>
      %cst_19 = arith.constant 0.000000e+00 : f32
      %21 = vector.broadcast %cst_19 : f32 to vector<128x128xf32>
      %22 = arith.maximumf %20, %21 : vector<128x128xf32>
      %23 = arith.truncf %22 : vector<128x128xf32> to vector<128x128xbf16>
      %c0_20 = arith.constant 0 : index
      %c0_21 = arith.constant 0 : index
      %c0_22 = arith.constant 0 : index
      %24 = vector.load %arg9[%c0_20, %c0_21, %c0_22] : memref<1x128x128xbf16, #tpu.memory_space<vmem>>, vector<1x128x128xbf16>
      %25 = vector.shape_cast %24 : vector<1x128x128xbf16> to vector<128x128xbf16>
      %cst_23 = arith.constant dense<0.000000e+00> : vector<128x128xf32>
      %26 = tpu.matmul %23, %25, %cst_23 {dimension_numbers = #tpu.dot_dimension_numbers<[1], [0], [0], [1], [0, 0, 1, 1], [], []>} : vector<128x128xbf16>, vector<128x128xbf16>, vector<128x128xf32> -> vector<128x128xf32>
      %c0_24 = arith.constant 0 : index
      %c0_25 = arith.constant 0 : index
      %c0_26 = arith.constant 0 : index
      %27 = vector.load %arg10[%c0_24, %c0_25, %c0_26] : memref<1x1x128xf32, #tpu.memory_space<vmem>>, vector<1x1x128xf32>
      %28 = vector.shape_cast %27 : vector<1x1x128xf32> to vector<1x128xf32>
      %29 = vector.broadcast %28 : vector<1x128xf32> to vector<128x128xf32>
      %30 = arith.addf %26, %29 : vector<128x128xf32>
      %31 = arith.truncf %30 : vector<128x128xf32> to vector<128x128xbf16>
      %c0_27 = arith.constant 0 : index
      %c0_28 = arith.constant 0 : index
      %32 = vector.load %arg11[%c0_27, %c0_28] : memref<128x128xbf16, #tpu.memory_space<vmem>>, vector<128x128xbf16>
      tpu.vector_store %arg11[%c0_27, %c0_28], %31 {strides = array<i32>} : memref<128x128xbf16, #tpu.memory_space<vmem>>, vector<128x128xbf16>,
      %cst_29 = arith.constant 0.000000e+00 : f32
      %33 = vector.broadcast %cst_29 : f32 to vector<128x128xf32>
      %34 = arith.cmpf oge, %30, %33 : vector<128x128xf32>
      %cst_30 = arith.constant 0.00999999977 : f32
      %35 = vector.broadcast %cst_30 : f32 to vector<128x128xf32>
      %36 = arith.mulf %35, %30 : vector<128x128xf32>
      %37 = arith.select %34, %30, %36 : vector<128x128xi1>, vector<128x128xf32>
      %38 = arith.truncf %37 : vector<128x128xf32> to vector<128x128xbf16>
      %c0_31 = arith.constant 0 : index
      %c0_32 = arith.constant 0 : index
      %39 = vector.load %arg12[%c0_31, %c0_32] : memref<128x128xbf16, #tpu.memory_space<vmem>>, vector<128x128xbf16>
      tpu.vector_store %arg12[%c0_31, %c0_32], %38 {strides = array<i32>} : memref<128x128xbf16, #tpu.memory_space<vmem>>, vector<128x128xbf16>,
    } else {
    }
    return
  }
  func.func @transform_0(%arg0: i32, %arg1: i32, %arg2: memref<2xi32, #tpu.memory_space<smem>>) -> (i32, i32) {
    %c0_i32 = arith.constant 0 : i32
    return %arg0, %arg1 : i32, i32
  }
  func.func @transform_1(%arg0: i32, %arg1: i32, %arg2: memref<2xi32, #tpu.memory_space<smem>>) -> (i32, i32) {
    %c0_i32 = arith.constant 0 : i32
    %c0_i32_0 = arith.constant 0 : i32
    return %arg1, %c0_i32 : i32, i32
  }
  func.func @transform_2(%arg0: i32, %arg1: i32, %arg2: memref<2xi32, #tpu.memory_space<smem>>) -> (i32, i32) {
    %c0_i32 = arith.constant 0 : i32
    %c0_i32_0 = arith.constant 0 : i32
    return %arg0, %c0_i32 : i32, i32
  }
  func.func @transform_3(%arg0: i32, %arg1: i32, %arg2: memref<2xi32, #tpu.memory_space<smem>>) -> (i32, i32, i32) {
    %0 = arith.index_cast %arg0 : i32 to index
    %1 = memref.load %arg2[%0] : memref<2xi32, #tpu.memory_space<smem>>
    %c0_i32 = arith.constant 0 : i32
    %c0_i32_0 = arith.constant 0 : i32
    %c0_i32_1 = arith.constant 0 : i32
    return %1, %c0_i32, %c0_i32_0 : i32, i32, i32
  }
  func.func @transform_4(%arg0: i32, %arg1: i32, %arg2: memref<2xi32, #tpu.memory_space<smem>>) -> (i32, i32, i32) {
    %0 = arith.index_cast %arg0 : i32 to index
    %1 = memref.load %arg2[%0] : memref<2xi32, #tpu.memory_space<smem>>
    %c0_i32 = arith.constant 0 : i32
    %c0_i32_0 = arith.constant 0 : i32
    %c0_i32_1 = arith.constant 0 : i32
    return %1, %c0_i32, %c0_i32_0 : i32, i32, i32
  }
  func.func @transform_5(%arg0: i32, %arg1: i32, %arg2: memref<2xi32, #tpu.memory_space<smem>>) -> (i32, i32, i32) {
    %0 = arith.index_cast %arg0 : i32 to index
    %1 = memref.load %arg2[%0] : memref<2xi32, #tpu.memory_space<smem>>
    %c0_i32 = arith.constant 0 : i32
    %c0_i32_0 = arith.constant 0 : i32
    %c0_i32_1 = arith.constant 0 : i32
    return %1, %c0_i32, %c0_i32_0 : i32, i32, i32
  }
  func.func @transform_6(%arg0: i32, %arg1: i32, %arg2: memref<2xi32, #tpu.memory_space<smem>>) -> (i32, i32, i32) {
    %0 = arith.index_cast %arg0 : i32 to index
    %1 = memref.load %arg2[%0] : memref<2xi32, #tpu.memory_space<smem>>
    %c0_i32 = arith.constant 0 : i32
    %c0_i32_0 = arith.constant 0 : i32
    %c0_i32_1 = arith.constant 0 : i32
    return %1, %c0_i32, %c0_i32_0 : i32, i32, i32
  }
  func.func @transform_7(%arg0: i32, %arg1: i32, %arg2: memref<2xi32, #tpu.memory_space<smem>>) -> (i32, i32, i32) {
    %0 = arith.index_cast %arg0 : i32 to index
    %1 = memref.load %arg2[%0] : memref<2xi32, #tpu.memory_space<smem>>
    %c0_i32 = arith.constant 0 : i32
    %c0_i32_0 = arith.constant 0 : i32
    %c0_i32_1 = arith.constant 0 : i32
    return %1, %c0_i32, %c0_i32_0 : i32, i32, i32
  }
  func.func @transform_8(%arg0: i32, %arg1: i32, %arg2: memref<2xi32, #tpu.memory_space<smem>>) -> (i32, i32) {
    %c0_i32 = arith.constant 0 : i32
    %c0_i32_0 = arith.constant 0 : i32
    return %arg0, %c0_i32 : i32, i32
  }
  func.func @transform_9(%arg0: i32, %arg1: i32, %arg2: memref<2xi32, #tpu.memory_space<smem>>) -> (i32, i32) {
    %c0_i32 = arith.constant 0 : i32
    %c0_i32_0 = arith.constant 0 : i32
    return %arg0, %c0_i32 : i32, i32
  }
}

module attributes {stable_mosaic.version = 11 : i64} {
  func.func @_return_kernel(%arg0: i32, %arg1: i32, %arg2: memref<128x128xbf16, #tpu.memory_space<vmem>>, %arg3: memref<128x128xbf16, #tpu.memory_space<vmem>>, %arg4: memref<128x128xbf16, #tpu.memory_space<vmem>>, %arg5: memref<1x128xf32, #tpu.memory_space<vmem>>, %arg6: memref<128x128xbf16, #tpu.memory_space<vmem>>, %arg7: memref<1x128xf32, #tpu.memory_space<vmem>>, %arg8: memref<128x128xbf16, #tpu.memory_space<vmem>>, %arg9: memref<1x128xf32, #tpu.memory_space<vmem>>, %arg10: memref<128x128xbf16, #tpu.memory_space<vmem>>, %arg11: memref<1x128xf32, #tpu.memory_space<vmem>>, %arg12: memref<128x128xbf16, #tpu.memory_space<vmem>>, %arg13: memref<128x128xf32, #tpu.memory_space<vmem>>) attributes {dimension_semantics = [#tpu.dimension_semantics<parallel>, #tpu.dimension_semantics<arbitrary>], iteration_bounds = array<i64: 1, 2>, scalar_prefetch = 0 : i64, scratch_operands = 1 : i64, tpu.core_type = #tpu.core_type<tc>, window_params = [{transform_indices = @transform_0, window_bounds = array<i64: 128, 128>}, {transform_indices = @transform_1, window_bounds = array<i64: 128, 128>}, {transform_indices = @transform_2, window_bounds = array<i64: 128, 128>}, {pipeline_mode = #tpu.pipeline_mode<synchronous>, transform_indices = @transform_3, window_bounds = array<i64: 1, 128>}, {pipeline_mode = #tpu.pipeline_mode<synchronous>, transform_indices = @transform_4, window_bounds = array<i64: 128, 128>}, {pipeline_mode = #tpu.pipeline_mode<synchronous>, transform_indices = @transform_5, window_bounds = array<i64: 1, 128>}, {pipeline_mode = #tpu.pipeline_mode<synchronous>, transform_indices = @transform_6, window_bounds = array<i64: 128, 128>}, {pipeline_mode = #tpu.pipeline_mode<synchronous>, transform_indices = @transform_7, window_bounds = array<i64: 1, 128>}, {pipeline_mode = #tpu.pipeline_mode<synchronous>, transform_indices = @transform_8, window_bounds = array<i64: 128, 128>}, {pipeline_mode = #tpu.pipeline_mode<synchronous>, transform_indices = @transform_9, window_bounds = array<i64: 1, 128>}, {transform_indices = @transform_10, window_bounds = array<i64: 128, 128>}]} {
    %c0_i32 = arith.constant 0 : i32
    %0 = arith.cmpi eq, %arg1, %c0_i32 : i32
    %1 = arith.extui %0 : i1 to i32
    %c0_i32_0 = arith.constant 0 : i32
    %2 = arith.cmpi ne, %1, %c0_i32_0 : i32
    scf.if %2 {
      %cst_9 = arith.constant 0.000000e+00 : f32
      %12 = vector.broadcast %cst_9 : f32 to vector<128x128xf32>
      %c0_10 = arith.constant 0 : index
      %c0_11 = arith.constant 0 : index
      %13 = vector.load %arg13[%c0_10, %c0_11] : memref<128x128xf32, #tpu.memory_space<vmem>>, vector<128x128xf32>
      tpu.vector_store %arg13[%c0_10, %c0_11], %12 {strides = array<i32>} : memref<128x128xf32, #tpu.memory_space<vmem>>, vector<128x128xf32>,
    } else {
    }
    %c0 = arith.constant 0 : index
    %c0_1 = arith.constant 0 : index
    %3 = vector.load %arg13[%c0, %c0_1] : memref<128x128xf32, #tpu.memory_space<vmem>>, vector<128x128xf32>
    %c0_2 = arith.constant 0 : index
    %c0_3 = arith.constant 0 : index
    %4 = vector.load %arg2[%c0_2, %c0_3] : memref<128x128xbf16, #tpu.memory_space<vmem>>, vector<128x128xbf16>
    %c0_4 = arith.constant 0 : index
    %c0_5 = arith.constant 0 : index
    %5 = vector.load %arg3[%c0_4, %c0_5] : memref<128x128xbf16, #tpu.memory_space<vmem>>, vector<128x128xbf16>
    %cst = arith.constant dense<0.000000e+00> : vector<128x128xf32>
    %6 = tpu.matmul %4, %5, %cst {dimension_numbers = #tpu.dot_dimension_numbers<[1], [0], [0], [1], [0, 0, 1, 1], [], []>} : vector<128x128xbf16>, vector<128x128xbf16>, vector<128x128xf32> -> vector<128x128xf32>
    %7 = arith.addf %3, %6 : vector<128x128xf32>
    %c0_6 = arith.constant 0 : index
    %c0_7 = arith.constant 0 : index
    %8 = vector.load %arg13[%c0_6, %c0_7] : memref<128x128xf32, #tpu.memory_space<vmem>>, vector<128x128xf32>
    tpu.vector_store %arg13[%c0_6, %c0_7], %7 {strides = array<i32>} : memref<128x128xf32, #tpu.memory_space<vmem>>, vector<128x128xf32>,
    %c1_i32 = arith.constant 1 : i32
    %9 = arith.cmpi eq, %arg1, %c1_i32 : i32
    %10 = arith.extui %9 : i1 to i32
    %c0_i32_8 = arith.constant 0 : i32
    %11 = arith.cmpi ne, %10, %c0_i32_8 : i32
    scf.if %11 {
      %c0_9 = arith.constant 0 : index
      %c0_10 = arith.constant 0 : index
      %12 = vector.load %arg4[%c0_9, %c0_10] : memref<128x128xbf16, #tpu.memory_space<vmem>>, vector<128x128xbf16>
      %c0_11 = arith.constant 0 : index
      %c0_12 = arith.constant 0 : index
      %13 = vector.load %arg6[%c0_11, %c0_12] : memref<128x128xbf16, #tpu.memory_space<vmem>>, vector<128x128xbf16>
      %cst_13 = arith.constant dense<0.000000e+00> : vector<128x128xf32>
      %14 = tpu.matmul %12, %13, %cst_13 {dimension_numbers = #tpu.dot_dimension_numbers<[1], [0], [0], [1], [0, 0, 1, 1], [], []>} : vector<128x128xbf16>, vector<128x128xbf16>, vector<128x128xf32> -> vector<128x128xf32>
      %c0_14 = arith.constant 0 : index
      %c0_15 = arith.constant 0 : index
      %15 = vector.load %arg7[%c0_14, %c0_15] : memref<1x128xf32, #tpu.memory_space<vmem>>, vector<1x128xf32>
      %16 = vector.broadcast %15 : vector<1x128xf32> to vector<128x128xf32>
      %17 = arith.addf %14, %16 : vector<128x128xf32>
      %c0_16 = arith.constant 0 : index
      %c0_17 = arith.constant 0 : index
      %18 = vector.load %arg5[%c0_16, %c0_17] : memref<1x128xf32, #tpu.memory_space<vmem>>, vector<1x128xf32>
      %19 = vector.broadcast %18 : vector<1x128xf32> to vector<128x128xf32>
      %20 = arith.mulf %19, %17 : vector<128x128xf32>
      %c0_18 = arith.constant 0 : index
      %c0_19 = arith.constant 0 : index
      %21 = vector.load %arg13[%c0_18, %c0_19] : memref<128x128xf32, #tpu.memory_space<vmem>>, vector<128x128xf32>
      %22 = arith.addf %20, %21 : vector<128x128xf32>
      %23 = arith.truncf %22 : vector<128x128xf32> to vector<128x128xbf16>
      %c0_20 = arith.constant 0 : index
      %c0_21 = arith.constant 0 : index
      %24 = vector.load %arg8[%c0_20, %c0_21] : memref<128x128xbf16, #tpu.memory_space<vmem>>, vector<128x128xbf16>
      %cst_22 = arith.constant dense<0.000000e+00> : vector<128x128xf32>
      %25 = tpu.matmul %23, %24, %cst_22 {dimension_numbers = #tpu.dot_dimension_numbers<[1], [0], [0], [1], [0, 0, 1, 1], [], []>} : vector<128x128xbf16>, vector<128x128xbf16>, vector<128x128xf32> -> vector<128x128xf32>
      %c0_23 = arith.constant 0 : index
      %c0_24 = arith.constant 0 : index
      %26 = vector.load %arg9[%c0_23, %c0_24] : memref<1x128xf32, #tpu.memory_space<vmem>>, vector<1x128xf32>
      %27 = vector.broadcast %26 : vector<1x128xf32> to vector<128x128xf32>
      %28 = arith.addf %25, %27 : vector<128x128xf32>
      %cst_25 = arith.constant 0.000000e+00 : f32
      %29 = vector.broadcast %cst_25 : f32 to vector<128x128xf32>
      %30 = arith.maximumf %28, %29 : vector<128x128xf32>
      %31 = arith.truncf %30 : vector<128x128xf32> to vector<128x128xbf16>
      %c0_26 = arith.constant 0 : index
      %c0_27 = arith.constant 0 : index
      %32 = vector.load %arg10[%c0_26, %c0_27] : memref<128x128xbf16, #tpu.memory_space<vmem>>, vector<128x128xbf16>
      %cst_28 = arith.constant dense<0.000000e+00> : vector<128x128xf32>
      %33 = tpu.matmul %31, %32, %cst_28 {dimension_numbers = #tpu.dot_dimension_numbers<[1], [0], [0], [1], [0, 0, 1, 1], [], []>} : vector<128x128xbf16>, vector<128x128xbf16>, vector<128x128xf32> -> vector<128x128xf32>
      %c0_29 = arith.constant 0 : index
      %c0_30 = arith.constant 0 : index
      %34 = vector.load %arg11[%c0_29, %c0_30] : memref<1x128xf32, #tpu.memory_space<vmem>>, vector<1x128xf32>
      %35 = vector.broadcast %34 : vector<1x128xf32> to vector<128x128xf32>
      %36 = arith.addf %33, %35 : vector<128x128xf32>
      %cst_31 = arith.constant 0.000000e+00 : f32
      %37 = vector.broadcast %cst_31 : f32 to vector<128x128xf32>
      %38 = arith.cmpf oge, %36, %37 : vector<128x128xf32>
      %cst_32 = arith.constant 0.00999999977 : f32
      %39 = vector.broadcast %cst_32 : f32 to vector<128x128xf32>
      %40 = arith.mulf %39, %36 : vector<128x128xf32>
      %41 = arith.select %38, %36, %40 : vector<128x128xi1>, vector<128x128xf32>
      %42 = arith.truncf %41 : vector<128x128xf32> to vector<128x128xbf16>
      %c0_33 = arith.constant 0 : index
      %c0_34 = arith.constant 0 : index
      %43 = vector.load %arg12[%c0_33, %c0_34] : memref<128x128xbf16, #tpu.memory_space<vmem>>, vector<128x128xbf16>
      tpu.vector_store %arg12[%c0_33, %c0_34], %42 {strides = array<i32>} : memref<128x128xbf16, #tpu.memory_space<vmem>>, vector<128x128xbf16>,
    } else {
    }
    return
  }
  func.func @transform_0(%arg0: i32, %arg1: i32) -> (i32, i32) {
    %c0_i32 = arith.constant 0 : i32
    return %arg0, %arg1 : i32, i32
  }
  func.func @transform_1(%arg0: i32, %arg1: i32) -> (i32, i32) {
    %c0_i32 = arith.constant 0 : i32
    %c0_i32_0 = arith.constant 0 : i32
    return %arg1, %c0_i32 : i32, i32
  }
  func.func @transform_2(%arg0: i32, %arg1: i32) -> (i32, i32) {
    %c0_i32 = arith.constant 0 : i32
    %c0_i32_0 = arith.constant 0 : i32
    return %arg0, %c0_i32 : i32, i32
  }
  func.func @transform_3(%arg0: i32, %arg1: i32) -> (i32, i32) {
    %c0_i32 = arith.constant 0 : i32
    %c0_i32_0 = arith.constant 0 : i32
    %c0_i32_1 = arith.constant 0 : i32
    return %c0_i32, %c0_i32_0 : i32, i32
  }
  func.func @transform_4(%arg0: i32, %arg1: i32) -> (i32, i32) {
    %c0_i32 = arith.constant 0 : i32
    %c0_i32_0 = arith.constant 0 : i32
    %c0_i32_1 = arith.constant 0 : i32
    return %c0_i32, %c0_i32_0 : i32, i32
  }
  func.func @transform_5(%arg0: i32, %arg1: i32) -> (i32, i32) {
    %c0_i32 = arith.constant 0 : i32
    %c0_i32_0 = arith.constant 0 : i32
    %c0_i32_1 = arith.constant 0 : i32
    return %c0_i32, %c0_i32_0 : i32, i32
  }
  func.func @transform_6(%arg0: i32, %arg1: i32) -> (i32, i32) {
    %c0_i32 = arith.constant 0 : i32
    %c0_i32_0 = arith.constant 0 : i32
    %c0_i32_1 = arith.constant 0 : i32
    return %c0_i32, %c0_i32_0 : i32, i32
  }
  func.func @transform_7(%arg0: i32, %arg1: i32) -> (i32, i32) {
    %c0_i32 = arith.constant 0 : i32
    %c0_i32_0 = arith.constant 0 : i32
    %c0_i32_1 = arith.constant 0 : i32
    return %c0_i32, %c0_i32_0 : i32, i32
  }
  func.func @transform_8(%arg0: i32, %arg1: i32) -> (i32, i32) {
    %c0_i32 = arith.constant 0 : i32
    %c0_i32_0 = arith.constant 0 : i32
    %c0_i32_1 = arith.constant 0 : i32
    return %c0_i32, %c0_i32_0 : i32, i32
  }
  func.func @transform_9(%arg0: i32, %arg1: i32) -> (i32, i32) {
    %c0_i32 = arith.constant 0 : i32
    %c0_i32_0 = arith.constant 0 : i32
    %c0_i32_1 = arith.constant 0 : i32
    return %c0_i32, %c0_i32_0 : i32, i32
  }
  func.func @transform_10(%arg0: i32, %arg1: i32) -> (i32, i32) {
    %c0_i32 = arith.constant 0 : i32
    %c0_i32_0 = arith.constant 0 : i32
    return %arg0, %c0_i32 : i32, i32
  }
}

</mosaic_0001>

<bundles_post_ra>
// kernel: hgin_forward.4
= control target key start
LH: loop header
LB: loop body
LE: loop exit
PB: predicated region body
PF: predicated region fallthrough
CT: control target
= control target key end

     0   :  { %s2514_s16 = smov [#allocation4]   ;;  %s3196_s0 = inlined_call_operand.vmem [shape: s32[2], index: 0, kind: input, shape index: {}]   ;;  %s3197_s1 = inlined_call_operand.hbm [shape: bf16[256,128], index: 1, kind: input, shape index: {}]   ;;  %s3198_s2 = inlined_call_operand.hbm [shape: bf16[128,128], index: 2, kind: input, shape index: {}]   ;;  %s3199_s3 = inlined_call_operand.hbm [shape: bf16[256,128], index: 3, kind: input, shape index: {}]   ;;  %s3200_s4 = inlined_call_operand.vmem [shape: f32[2,1,128], index: 4, kind: input, shape index: {}]   ;;  %s3201_s5 = inlined_call_operand.hbm [shape: bf16[2,128,128], index: 5, kind: input, shape index: {}]   ;;  %s3202_s6 = inlined_call_operand.hbm [shape: f32[2,1,128], index: 6, kind: input, shape index: {}]   ;;  %s3203_s7 = inlined_call_operand.hbm [shape: bf16[2,128,128], index: 7, kind: input, shape index: {}]   ;;  %s3204_s8 = inlined_call_operand.hbm [shape: f32[2,1,128], index: 8, kind: input, shape index: {}]   ;;  %s3205_s9 = inlined_call_operand.vmem [shape: bf16[256,128], index: 9, kind: output, shape index: {0}]   ;;  %s3206_s10 = inlined_call_operand.vmem [shape: bf16[256,128], index: 10, kind: output, shape index: {1}]  }
   0x1   :  { %3235 = sst [smem:[#allocation45_spill]] %s3197_s1  ;;  %s17_s15 = sshll.u32 %s3196_s0, 4  ;;  %s18_s15 = int_to_ptr.vmem [resolvable:$true] %s17_s15 }
   0x2   :  { %3236 = sst [smem:[#allocation46_spill]] %s3198_s2 }
   0x3   :  { %3237 = sst [smem:[#allocation47_spill]] %s3199_s3 }
   0x4   :  { %3238 = sst [smem:[#allocation48_spill]] %s3200_s4 }
   0x5   :  { %3239 = sst [smem:[#allocation49_spill]] %s3201_s5 }
   0x6   :  { %3240 = sst [smem:[#allocation50_spill]] %s3202_s6 }
   0x7   :  { %3241 = sst [smem:[#allocation51_spill]] %s3203_s7 }
   0x8   :  { %3242 = sst [smem:[#allocation52_spill]] %s3204_s8 }
   0x9   :  { %3243 = sst [smem:[#allocation53_spill]] %s3205_s9 }
   0xa   :  { %3244 = sst [smem:[#allocation54_spill]] %s3206_s10 }
   0xb   :  { %20 = dma.vmem_to_smem %s18_s15, 16, %s2514_s16, [#allocation3] }
   0xc   :  { %2412 = dma.done.wait [#allocation3], 16 }
   0xd   :  { %2413 = vsyncadd [#allocation3], 4294967280 }
   0xe   :  { %23 = sfence }
   0xf   :  { %24 = vsyncpa [#allocation6], 0 }
  0x10   :  { %26 = vsyncpa [#allocation6 + $0x1], 0 }
  0x11   :  { %27 = vsyncpa [#allocation8], 0  ;;  %s2576_s17 = smov 0   ;;  %s2578_s18 = smov 0  }
  0x12   :  { %s2580_s19 = smov 0   ;;  %s2582_s20 = smov 0  }
  0x13   :  { %s2584_s21 = smov 0   ;;  %s2586_s0 = smov 0  }
  0x14   :  { %s2588_s22 = smov 0   ;;  %s2590_s23 = smov 0  }
  0x15   :  { %s2592_s24 = smov 0   ;;  %s2594_s25 = smov 0  }
  0x16   :  { %s2596_s26 = smov 0   ;;  %s2598_s27 = smov 0  }
  0x17   :  { %s2600_s28 = smov 0   ;;  %s2602_s29 = smov 0  }
  0x18   :  { %s2604_s30 = smov 0   ;;  %s2606_s11 = smov 0  }
  0x19   :  { %s2608_s12 = smov 0   ;;  %s2610_s13 = smov 0  }
  0x1a LB: > { %3245 = sst [smem:[#allocation30_spill]] %s2444_s17  ;;  %s3214_s14 = sadd.s32 4294967295, %s2512_s13   ;;  %s2512_s13 = sphi %s2610_s13, %s33_s13   ;;  %s2508_s12 = sphi %s2608_s12, %s3343_s12   ;;  %s2504_s11 = sphi %s2606_s11, %s3328_s11   ;;  %s2500_s30 = sphi %s2604_s30, %s3327_s30   ;;  %s2496_s29 = sphi %s2602_s29, %s3342_s29   ;;  %s2492_s28 = sphi %s2600_s28, %s3341_s28   ;;  %s2488_s27 = sphi %s2598_s27, %s3340_s27   ;;  %s2484_s26 = sphi %s2596_s26, %s3339_s26   ;;  %s2480_s25 = sphi %s2594_s25, %s3338_s25   ;;  %s2476_s24 = sphi %s2592_s24, %s3337_s24   ;;  %s2472_s23 = sphi %s2590_s23, %s3336_s23   ;;  %s2468_s22 = sphi %s2588_s22, %s3335_s22   ;;  %s2464_s0 = sphi %s2586_s0, %s3334_s0   ;;  %s2460_s21 = sphi %s2584_s21, %s3333_s21   ;;  %s2456_s20 = sphi %s2582_s20, %s3332_s20   ;;  %s2452_s19 = sphi %s2580_s19, %s3330_s19   ;;  %s2448_s18 = sphi %s2578_s18, %s3320_s18   ;;  %s2444_s17 = sphi %s2576_s17, %s3319_s17  }
  0x1b   : > { %3246 = sst [smem:[#allocation31_spill]] %s2448_s18  ;;  %s45_s15 = sadd.s32 1, %s2508_s12 }
  0x1c   : > { %3247 = sst [smem:[#allocation32_spill]] %s2452_s19  ;;  %p47_p0 = scmp.ge.s32.totalorder %s45_s15, 2 }
  0x1d   : > { %3248 = sst [smem:[#allocation33_spill]] %s2476_s24  ;;  %s54_s16 = sadd.s32 1, %s2500_s30 }
  0x1e   : > { %3249 = sst [smem:[#allocation34_spill]] %s2488_s27  ;;  %p61_p1 = scmp.ne.s32.totalorder %s2500_s30, %s2496_s29 }
  0x1f   : > { %3250 = sst [smem:[#allocation35_spill]] %s2496_s29  ;;  %p3221_p2 = scmp.eq.s32.totalorder %s2512_s13, 0 }
  0x20   : > { %3251 = sst [smem:[#allocation36_spill]] %s2500_s30  ;;  %s3345_s15 = smov (%p47_p0, %s45_s15), 0 }
  0x21   : > { %3252 = sst [smem:[#allocation37_spill]] %s2504_s11  ;;  %p2674_p3 = por %p3221_p2, %p61_p1 }
  0x22   : > { %3253 = sst [smem:[#allocation38_spill]] %s2508_s12  ;;  %p67_p4 = scmp.ne.s32.totalorder %s2496_s29, %s2492_s28 }
  0x23   : > { %3254 = sst [smem:[#allocation39_spill]] %s3345_s15  ;;  %s49_s9 = ssub.s32 %s2508_s12, %s3345_s15 }
  0x24   : > { %p2683_p5 = scmp.eq.s32.totalorder %s3214_s14, 0  ;;  %p52_p6 = scmp.eq.s32.totalorder %s49_s9, 0 }
  0x25   : > { %p3222_p8 = scmp.lt.s32.totalorder %s2512_s13, 2  ;;  %s352_s17 = sand.u32 1, %s2512_s13  }
  0x26   : > { %p2689_p7 = por %p2683_p5, %p67_p4  ;;  %s354_s28 = sand.u32 1, %s2500_s30  }
  0x27   : > { %s2694_s8 = scalar_select %p52_p6, %s2500_s30, %s54_s16  }
  0x28   : > { %s1564_s29 = sshll.u32 %s354_s28, 6  ;;  %s1716_s19 = sshll.u32 %s2508_s12, 6 }
  0x29   : > { %3258 = sst [smem:[#allocation40_spill]] %s2694_s8  ;;  %s356_s6 = scalar_lea.vmem [#allocation5], %s1564_s29 }
  0x2a   : > { %s3259_s1 = sld [smem:[#allocation45_spill]]  ;;  %s365_s9 = sshll.u32 %s356_s6, 4  ;;  %s366_s9 = int_to_ptr.vmem [resolvable:$true] %s365_s9 }
  0x2b   : > { %p1938_p9 = pnand %p3222_p8, %p2674_p3  ;;  %s3260_s3 = sld [smem:[#allocation47_spill]] }
  0x2c   : > { %s379_s18 = scalar_lea.vmem [#allocation9], %s1564_s29  ;;  %s3216_s10 = smov 64  }
  0x2d   : > { %s3219_s8 = smov 4   ;;  %s162_s29 = sadd.s32 1, %s2488_s27 }
  0x2e   : > { %p169_p10 = scmp.ne.s32.totalorder %s2488_s27, %s2484_s26  ;;  %p175_p11 = scmp.ne.s32.totalorder %s2484_s26, %s2480_s25 }
  0x2f   : > { %s407_s16 = sand.u32 1, %s2488_s27   ;;  %p197_p3 = scmp.ne.s32.totalorder %s2476_s24, %s2472_s23 }
  0x30   : > { %s362_s14 = scalar_lea.hbm %s3259_s1, %s1716_s19  ;;  %s2710_s1 = scalar_lea.sflag [#allocation6], %s352_s17 }
  0x31   : > { %s363_s2 = sshll.u32 %s362_s14, 4  ;;  %s384_s7 = scalar_lea.hbm %s3260_s3, %s1716_s19  ;;  %s364_s2 = int_to_ptr.hbm [resolvable:$true] %s363_s2 }
  0x32   : > { %s387_s14 = sshll.u32 %s379_s18, 4  ;;  %s385_s6 = sshll.u32 %s384_s7, 4  ;;  %s386_s6 = int_to_ptr.hbm [resolvable:$true] %s385_s6  ;;  %s388_s14 = int_to_ptr.vmem [resolvable:$true] %s387_s14 }
  0x33   : > { %1940 = dma.hbm_to_vmem [thread:$0]  (!%p1938_p9), %s364_s2, 1024, %s366_s9, %s2710_s1, %s3216_s10, %s3216_s10, %s3219_s8  }
  0x34   : > { %1943 = dma.hbm_to_vmem [thread:$0]  (!%p1938_p9), %s386_s6, 1024, %s388_s14, %s2710_s1, %s3216_s10, %s3216_s10, %s3219_s8  }
  0x35   : > { %s157_s19 = sld [smem:[#allocation4 + %s2508_s12]]  ;;  %p2730_p12 = por %p169_p10, %p3221_p2 }
  0x36   : > { %s158_s17 = sld [smem:[#allocation4 + %s3345_s15]]  ;;  %s1570_s9 = sshll.u32 %s407_s16, 6 }
  0x37   : > { %p2736_p13 = por %p175_p11, %p2683_p5  ;;  %s409_s14 = scalar_lea.vmem [#allocation10], %s1570_s9 }
  0x38   : > { %s1913_s25 = scalar_select %p2730_p12, [#allocation4], [#allocation14] }
  0x39   : > { %s1914_s7 = scalar_select %p2730_p12, %s2508_s12, 0 }
  0x3a   : > { %s2745_s6 = sshll.u32 %s409_s14, 4  ;;  %s3347_s25 = smov (!%p3222_p8, %s1913_s25), [#allocation18] }
  0x3b   : > { %3263 = sst [smem:[#allocation41_spill]] %s2745_s6  ;;  %s3349_s7 = smov (!%p3222_p8, %s1914_s7), 0 }
  0x3c   : > { %s159_s18 = ssub.s32 %s157_s19, %s158_s17  ;;  %p2759_p1 = pnand %p3222_p8, %p2730_p12 }
  0x3d   : > { %p160_p0 = scmp.eq.s32.totalorder %s159_s18, 0  ;;  %s410_s19 = sld [smem:[%s3347_s25 + %s3349_s7]] }
  0x3e   : > { %s2764_s17 = sld [smem:[#allocation4 + %s2508_s12]]  ;;  %p203_p4 = scmp.ne.s32.totalorder %s2472_s23, %s2468_s22 }
  0x3f   : > { %s2751_s16 = scalar_select %p160_p0, %s2488_s27, %s162_s29  }
  0x40   : > { %s2767_s9 = sld [smem:[#allocation4 + %s3345_s15]]  ;;  %s430_s29 = sand.u32 1, %s2476_s24  }
  0x41   : > { %3264 = sst [smem:[#allocation42_spill]] %s2751_s16  ;;  %p2780_p6 = por %p197_p3, %p3221_p2 }
  0x42   : > { %s3266_s5 = sld [smem:[#allocation49_spill]]  ;;  %p2786_p9 = por %p203_p4, %p2683_p5 }
  0x43   : > { %s1718_s14 = sshll.u32 %s410_s19, 6  ;;  %p2194_p11 = pneg %p2759_p1 }
  0x44   : > { %s3268_s7 = scalar_select %p2786_p9, 1, 0 }
  0x46   : > { %3269 = sst [smem:[#allocation43_spill]] %s3268_s7 }
  0x48   : > { %s415_s2 = scalar_lea.hbm %s3266_s5, %s1718_s14  ;;  %s2197_s19 = scalar_lea.hbm %s3266_s5, 128 }
  0x49   : > { %s416_s25 = sshll.u32 %s415_s2, 4  ;;  %s417_s25 = int_to_ptr.hbm [resolvable:$true] %s416_s25 }
  0x4a   : > { %s2190_s18 = sshra.s32 %s417_s25, 4  ;;  %s2191_s18 = int_to_ptr.hbm [resolvable:$true] %s2190_s18 }
  0x4b   : > { %s2192_s22 = scalar_lea.hbm %s2191_s18, 64  ;;  %p2198_p3 = scmp.lt.s32.totalorder %s2191_s18, %s3266_s5 }
  0x4c   : > { %p2193_p10 = scmp.ne.s32.totalorder %s2191_s18, %s2192_s22  ;;  %p2199_p4 = scmp.lt.s32.totalorder %s2197_s19, %s2192_s22 }
  0x4e   : > { %p2195_p12 = pnand %p2194_p11, %p2193_p10  ;;  %p2200_p2 = por %p2199_p4, %p2198_p3 }
  0x50   : > { %p2196_p0 = pneg %p2195_p12 }
  0x52   : > { %p2201_p8 = pnand %p2200_p2, %p2196_p0 }
  0x54   : > { %2204 = shalt.err (!%p2201_p8)
}
  0x55   : > { %s3270_s30 = smov 4   ;;  %s3271_s16 = smov 64  }
  0x56   : > { %s3272_s27 = sld [smem:[#allocation41_spill]]  ;;  %s187_s10 = ssub.s32 %s2764_s17, %s2767_s9 }
  0x57   : > { %p188_p2 = scmp.eq.s32.totalorder %s187_s10, 0  ;;  %s3274_s8 = sadd.s32 1, %s2476_s24 }
  0x58   : > { %s1916_s22 = scalar_select %p2780_p6, [#allocation4], [#allocation15] }
  0x59   : > { %s2815_s6 = scalar_select %p188_p2, %s2476_s24, %s3274_s8  }
  0x5a   : > { %p3276_p8 = scmp.lt.s32.totalorder %s2512_s13, 2  ;;  %s218_s19 = sadd.s32 1, %s2464_s0 }
  0x5b   : > { %3275 = sst [smem:[#allocation44_spill]] %s2815_s6  ;;  %p225_p12 = scmp.ne.s32.totalorder %s2464_s0, %s2460_s21 }
  0x5c   : > { %s3273_s7 = int_to_ptr.vmem [resolvable:$true] %s3272_s27  ;;  %s431_s27 = scalar_lea.vmem [#allocation11], %s430_s29 }
  0x5d   : > { %1948 = dma.hbm_to_vmem [thread:$0]  (!%p2759_p1), %s417_s25, 1024, %s3273_s7, %s2710_s1, %s3271_s16, %s3271_s16, %s3270_s30  }
  0x5e   : > { %s439_s18 = sshll.u32 %s431_s27, 4  ;;  %s3351_s22 = smov (!%p3276_p8, %s1916_s22), [#allocation19]  ;;  %s2808_s18 = int_to_ptr.vmem [resolvable:$true] %s439_s18 }
  0x5f   : > { %s1917_s25 = scalar_select %p2780_p6, %s2508_s12, 0 }
  0x60   : > { %p3277_p1 = pmov %p3276_p8  ;;  %s213_s29 = sld [smem:[#allocation4 + %s2508_s12]] }
  0x61   : > { %s214_s7 = sld [smem:[#allocation4 + %s3345_s15]]  ;;  %p231_p0 = scmp.ne.s32.totalorder %s2460_s21, %s2456_s20 }
  0x62   : > { %s3353_s25 = smov (!%p3277_p1, %s1917_s25), 0  ;;  %p3278_p10 = pmov %p3277_p1 }
  0x63   : > { %s432_s9 = sld [smem:[%s3351_s22 + %s3353_s25]]  ;;  %s448_s8 = sand.u32 1, %s2464_s0  }
  0x64   : > { %p2828_p11 = pnand %p3278_p10, %p2780_p6  ;;  %s3280_s10 = sld [smem:[#allocation50_spill]] }
  0x65   : > { %p3281_p3 = scmp.eq.s32.totalorder %s2512_s13, 0  ;;  %p2851_p6 = por %p231_p0, %p2683_p5 }
  0x66   : > { %p2224_p8 = pneg %p2828_p11 }
  0x67   : > { %p2845_p4 = por %p225_p12, %p3281_p3 }
  0x68   : > { %s3283_s22 = scalar_select %p2851_p6, 1, 0 }
  0x6a   : > { %s435_s27 = scalar_lea.hbm %s3280_s10, %s432_s9  ;;  %s2227_s2 = scalar_lea.hbm %s3280_s10, 2 }
  0x6b   : > { %s437_s5 = sshll.u32 %s435_s27, 4  ;;  %s438_s5 = int_to_ptr.hbm [resolvable:$true] %s437_s5 }
  0x6c   : > { %s2220_s25 = sshra.s32 %s438_s5, 4  ;;  %s2221_s25 = int_to_ptr.hbm [resolvable:$true] %s2220_s25 }
  0x6d   : > { %s2222_s20 = scalar_lea.hbm %s2221_s25, 1  ;;  %p2228_p12 = scmp.lt.s32.totalorder %s2221_s25, %s3280_s10 }
  0x6e   : > { %p2223_p2 = scmp.ne.s32.totalorder %s2221_s25, %s2222_s20  ;;  %p2229_p0 = scmp.lt.s32.totalorder %s2227_s2, %s2222_s20 }
  0x70   : > { %p2225_p1 = pnand %p2224_p8, %p2223_p2  ;;  %p2230_p3 = por %p2229_p0, %p2228_p12 }
  0x72   : > { %p2226_p10 = pneg %p2225_p1 }
  0x74   : > { %p2231_p9 = pnand %p2230_p3, %p2226_p10 }
  0x76   : > { %2234 = shalt.err (!%p2231_p9)
}
  0x77   : > { %1953 = dma.hbm_to_vmem [thread:$0]  (!%p2828_p11), %s438_s5, 16, %s2808_s18, %s2710_s1  }
  0x78   : > { %s215_s6 = ssub.s32 %s213_s29, %s214_s7  ;;  %s1573_s25 = sshll.u32 %s448_s8, 6 }
  0x79   : > { %p216_p2 = scmp.eq.s32.totalorder %s215_s6, 0  ;;  %p3284_p9 = scmp.lt.s32.totalorder %s2512_s13, 2 }
  0x7a   : > { %s1919_s20 = scalar_select %p2845_p4, [#allocation4], [#allocation16] }
  0x7b   : > { %s2870_s9 = scalar_select %p216_p2, %s2464_s0, %s218_s19  }
  0x7c   : > { %s1920_s17 = scalar_select %p2845_p4, %s2508_s12, 0 }
  0x7d   : > { %s3355_s20 = smov (!%p3284_p9, %s1919_s20), [#allocation20]  ;;  %p3285_p8 = pmov %p3284_p9 }
  0x7e   : > { %s450_s14 = scalar_lea.vmem [#allocation12], %s1573_s25  ;;  %p1561_p10 = scmp.ge.s32.totalorder %s2512_s13, 1 }
  0x7f   : > { %s3357_s17 = smov (!%p3285_p8, %s1920_s17), 0  ;;  %s2879_s2 = sshll.u32 %s450_s14, 4 }
  0x80   : > { %3286 = sst [smem:[#allocation41_spill]] %s2879_s2  ;;  %p3287_p1 = pmov %p3285_p8 }
  0x81   : > { %s451_s18 = sld [smem:[%s3355_s20 + %s3357_s17]]  ;;  %p322_p12 = scmp.lt.s32.totalorder %s2512_s13, 3 }
  0x82   : > { %p2885_p11 = pnand %p3287_p1, %p2845_p4  ;;  %s3289_s19 = sld [smem:[#allocation46_spill]] }
  0x83   : > { %p2897_p0 = pnand %p1561_p10, %p322_p12  ;;  %s2517_s27 = smov [#allocation7]  }
  0x84   : > { %s338_s6 = sshll.u32 %s2517_s27, 4  ;;  %s3291_s14 = sld [smem:[#allocation51_spill]]  ;;  %s339_s6 = int_to_ptr.vmem [resolvable:$true] %s338_s6 }
  0x85   : > { %p1933_p4 = pneg %p2897_p0  ;;  %p2254_p9 = pneg %p2885_p11 }
  0x87   : > { %s1719_s25 = sshll.u32 %s451_s18, 6  ;;  %p2908_p3 = pnand %p1933_p4, %p2683_p5 }
  0x88   : > { %s336_s8 = sshll.u32 %s3289_s19, 4  ;;  %s2895_s8 = int_to_ptr.hbm [resolvable:$true] %s336_s8 }
  0x8a   : > { %s456_s2 = scalar_lea.hbm %s3291_s14, %s1719_s25  ;;  %s2257_s25 = scalar_lea.hbm %s3291_s14, 128 }
  0x8b   : > { %s457_s29 = sshll.u32 %s456_s2, 4  ;;  %s458_s29 = int_to_ptr.hbm [resolvable:$true] %s457_s29 }
  0x8c   : > { %s2250_s19 = sshra.s32 %s458_s29, 4  ;;  %s2251_s19 = int_to_ptr.hbm [resolvable:$true] %s2250_s19 }
  0x8d   : > { %s2252_s10 = scalar_lea.hbm %s2251_s19, 64  ;;  %p2258_p10 = scmp.lt.s32.totalorder %s2251_s19, %s3291_s14 }
  0x8e   : > { %p2253_p2 = scmp.ne.s32.totalorder %s2251_s19, %s2252_s10  ;;  %p2259_p12 = scmp.lt.s32.totalorder %s2257_s25, %s2252_s10 }
  0x90   : > { %p2255_p8 = pnand %p2254_p9, %p2253_p2  ;;  %p2260_p4 = por %p2259_p12, %p2258_p10 }
  0x92   : > { %p2256_p1 = pneg %p2255_p8 }
  0x94   : > { %p2261_p6 = pnand %p2260_p4, %p2256_p1 }
  0x96   : > { %2264 = shalt.err (!%p2261_p6)
}
  0x97   : > { %s3293_s17 = sld [smem:[#allocation41_spill]]  ;;  %p3298_p9 = scmp.eq.s32.totalorder %s2512_s13, 0 }
  0x98   : > { %s3295_s18 = sld [smem:[#allocation31_spill]]  ;;  %p3300_p10 = scmp.lt.s32.totalorder %s2512_s13, 2 }
  0x99   : > { %s3296_s27 = sld [smem:[#allocation32_spill]] }
  0x9a   : > { %s3297_s20 = sld [smem:[#allocation30_spill]]  ;;  %p3302_p12 = pmov %p3300_p10 }
  0x9b   : > { %1936 = dma.hbm_to_vmem [thread:$0]  (!%p2908_p3), %s2895_s8, 1024, %s339_s6, [#allocation8], %s3271_s16, %s3271_s16, %s3270_s30  }
  0x9c   : > { %s241_s10 = sld [smem:[#allocation4 + %s2508_s12]]  ;;  %p3303_p4 = pmov %p3300_p10 }
  0x9d   : > { %s3294_s24 = int_to_ptr.vmem [resolvable:$true] %s3293_s17  ;;  %s242_s5 = sld [smem:[#allocation4 + %s3345_s15]] }
  0x9e   : > { %1958 = dma.hbm_to_vmem [thread:$0]  (!%p2885_p11), %s458_s29, 1024, %s3294_s24, %s2710_s1, %s3271_s16, %s3271_s16, %s3270_s30  }
  0x9f   : > { %p253_p6 = scmp.ne.s32.totalorder %s3296_s27, %s3295_s18  ;;  %s246_s19 = sadd.s32 1, %s3296_s27 }
  0xa0   : > { %p259_p2 = scmp.ne.s32.totalorder %s3295_s18, %s3297_s20  ;;  %s471_s2 = sand.u32 1, %s3296_s27  }
  0xa1   : > { %p255_p8 = por %p253_p6, %p3298_p9  ;;  %s472_s8 = scalar_lea.vmem [#allocation13], %s471_s2 }
  0xa2   : > { %p2945_p1 = por %p259_p2, %p2683_p5  ;;  %s480_s6 = sshll.u32 %s472_s8, 4  ;;  %s481_s6 = int_to_ptr.vmem [resolvable:$true] %s480_s6 }
  0xa3   : > { %s1922_s24 = scalar_select %p255_p8, [#allocation4], [#allocation17] }
  0xa4   : > { %s1923_s29 = scalar_select %p255_p8, %s2508_s12, 0 }
  0xa5   : > { %s243_s7 = ssub.s32 %s241_s10, %s242_s5  ;;  %p2953_p3 = pnand %p3300_p10, %p255_p8 }
  0xa6   : > { %p244_p11 = scmp.eq.s32.totalorder %s243_s7, 0  ;;  %s3359_s24 = smov (!%p3302_p12, %s1922_s24), [#allocation21] }
  0xa7   : > { %s3363_s29 = smov (!%p3303_p4, %s1923_s29), 0  ;;  %s3304_s20 = sld [smem:[#allocation52_spill]] }
  0xa8   : > { %s3361_s27 = smov (!%p244_p11, %s3296_s27), %s246_s19  ;;  %s473_s16 = sld [smem:[%s3359_s24 + %s3363_s29]] }
  0xa9   : > { %p2314_p2 = pneg %p2953_p3 }
  0xad   : > { %s3305_s10 = smov %s3304_s20 }
  0xae   : > { %s476_s5 = scalar_lea.hbm %s3304_s20, %s473_s16  ;;  %s2317_s24 = scalar_lea.hbm %s3305_s10, 2 }
  0xaf   : > { %s478_s7 = sshll.u32 %s476_s5, 4  ;;  %s479_s7 = int_to_ptr.hbm [resolvable:$true] %s478_s7 }
  0xb0   : > { %s2310_s14 = sshra.s32 %s479_s7, 4  ;;  %s2311_s14 = int_to_ptr.hbm [resolvable:$true] %s2310_s14 }
  0xb1   : > { %s2312_s15 = scalar_lea.hbm %s2311_s14, 1  ;;  %p2318_p11 = scmp.lt.s32.totalorder %s2311_s14, %s3305_s10 }
  0xb2   : > { %p2313_p6 = scmp.ne.s32.totalorder %s2311_s14, %s2312_s15  ;;  %p2319_p10 = scmp.lt.s32.totalorder %s2317_s24, %s2312_s15 }
  0xb4   : > { %p2315_p9 = pnand %p2314_p2, %p2313_p6  ;;  %p2320_p12 = por %p2319_p10, %p2318_p11 }
  0xb6   : > { %p2316_p8 = pneg %p2315_p9 }
  0xb8   : > { %p2321_p4 = pnand %p2320_p12, %p2316_p8 }
  0xba   : > { %2324 = shalt.err (!%p2321_p4)
}
  0xbb   : > { %1963 = dma.hbm_to_vmem [thread:$0]  (!%p2953_p3), %s479_s7, 16, %s481_s6, %s2710_s1  }
  0xbc   : > { %489 = sbr.rel (%p2897_p0) target bundleno = 767 (0x2ff), region = 52  ;;  %s3306_s16 = sadd.s32 (!%p2897_p0), 4294967295, %s2512_s13  }
  0xbd   : > { %s3307_s8 = sld [smem:[#allocation35_spill]] (!%p2897_p0)  ;;  %s491_s12 = sand.u32 (!%p2897_p0), 1, %s3306_s16  }
  0xbe   : > { %s492_s20 = scalar_lea.sflag (!%p2897_p0), [#allocation6], %s491_s12 }
  0xc3   : > { %s493_s17 = sand.u32 1, %s3307_s8  }
  0xc4   : > { %s1577_s18 = sshll.u32 %s493_s17, 6 }
  0xc5   : > { %s2983_s14 = scalar_lea.vmem [#allocation5], %s1577_s18 }
  0xc6   : > { %2415 = dma.done.wait (%p2689_p7), %s492_s20, 1024  }
  0xc7   : > { %2417 = vsyncadd (%p2689_p7), %s492_s20, 4294966272 }
  0xc8   : > { %2419 = dma.done.wait (%p2683_p5), [#allocation8], 1024  }
  0xc9   : > { %2421 = vsyncadd (%p2683_p5), [#allocation8], 4294966272  ;;  %s2993_s1 = scalar_lea.vmem [#allocation9], %s1577_s18 }
  0xca   : > { %2423 = dma.done.wait (%p2689_p7), %s492_s20, 1024  }
  0xcb   : > { %2425 = vsyncadd (%p2689_p7), %s492_s20, 4294966272  ;;  %s518_s15 = sand.u32 1, %s2484_s26  }
  0xcc   : > { %s1580_s3 = sshll.u32 %s518_s15, 6 }
  0xcd   : > { %s3000_s30 = scalar_lea.vmem [#allocation10], %s1580_s3 }
  0xce   : > { %2427 = dma.done.wait (%p2736_p13), %s492_s20, 1024  }
  0xcf   : > { %2429 = vsyncadd (%p2736_p13), %s492_s20, 4294966272  ;;  %s3308_s4 = sld [smem:[#allocation43_spill]]  ;;  %s528_s6 = sand.u32 1, %s2472_s23  }
  0xd0   : > { %s3007_s5 = scalar_lea.vmem [#allocation11], %s528_s6 }
  0xd5   : > { %p3309_p5 = scmp.ne.s32.totalorder %s3308_s4, 0 }
  0xd7   : > { %2431 = dma.done.wait (%p3309_p5), %s492_s20, 16  }
  0xd8   : > { %2433 = vsyncadd (%p3309_p5), %s492_s20, 4294967280  ;;  %s537_s11 = sand.u32 1, %s2460_s21   ;;  %p3310_p7 = scmp.ne.s32.totalorder %s3283_s22, 0 }
  0xd9   : > { %s1581_s7 = sshll.u32 %s537_s11, 6 }
  0xda   : > { %s3014_s19 = scalar_lea.vmem [#allocation12], %s1581_s7 }
  0xdb   : > { %2435 = dma.done.wait (%p3310_p7), %s492_s20, 1024  }
  0xdc   : > { %2437 = vsyncadd (%p3310_p7), %s492_s20, 4294966272  ;;  %s3311_s28 = sld [smem:[#allocation31_spill]] }
  0xe2   : > { %s547_s24 = sand.u32 1, %s3311_s28  }
  0xe3   : > { %s3021_s29 = scalar_lea.vmem [#allocation13], %s547_s24 }
  0xe4   : > { %2439 = dma.done.wait (%p2945_p1), %s492_s20, 16  }
  0xe5   : > { %2441 = vsyncadd (%p2945_p1), %s492_s20, 4294967280  ;;  %s3312_s2 = sld [smem:[#allocation37_spill]]  ;;  %v1735_v0 = vld [vmem:[#allocation7 + $0x38] sm:$0xff]  ;;  %v1734_v1 = vld [vmem:[#allocation7 + $0x30] sm:$0xff] }
  0xe6   : > { %856 = vmatpush.bf16.msra.mxu0 %v1735_v0  ;;  %1885 = vmatpush.bf16.msra.mxu3 %v1735_v0  ;;  %s3313_s12 = sld [smem:[#allocation48_spill]]  ;;  %v1733_v2 = vld [vmem:[#allocation7 + $0x28] sm:$0xff]  ;;  %v1732_v3 = vld [vmem:[#allocation7 + $0x20] sm:$0xff]  ;;  %v1731_v4 = vld [vmem:[#allocation7 + $0x18] sm:$0xff] }
  0xe7   : > { %v1730_v5 = vld [vmem:[#allocation7 + $0x10] sm:$0xff]  ;;  %v1729_v6 = vld [vmem:[#allocation7 + $0x8] sm:$0xff]  ;;  %v1728_v7 = vld [vmem:[#allocation7] sm:$0xff]  ;;  %s3316_s11 = sld [smem:[#allocation54_spill]] }
  0xe8   : > { %v1720_v8 = vld [vmem:[%s2983_s14] sm:$0xff]  ;;  %v1726_v9 = vld [vmem:[%s2983_s14 + $0x30] sm:$0xff]  ;;  %v1721_v10 = vld [vmem:[%s2983_s14 + $0x8] sm:$0xff] }
  0xe9   : > { %v1727_v11 = vld [vmem:[%s2983_s14 + $0x38] sm:$0xff]  ;;  %v1722_v12 = vld [vmem:[%s2983_s14 + $0x10] sm:$0xff]  ;;  %v1741_v16 = vld [vmem:[%s3000_s30 + $0x28] sm:$0xff] }
  0xea   : > { %857 = vmatpush.bf16.msra.mxu0 %v1734_v1  ;;  %1886 = vmatpush.bf16.msra.mxu3 %v1734_v1  ;;  %v1723_v13 = vld [vmem:[%s2983_s14 + $0x18] sm:$0xff]  ;;  %v1742_v15 = vld [vmem:[%s3000_s30 + $0x30] sm:$0xff]  ;;  %v1740_v17 = vld [vmem:[%s3000_s30 + $0x20] sm:$0xff] }
  0xeb   : > { %s619_s16 = sld [smem:[#allocation4 + %s3312_s2]]  ;;  %v1743_v14 = vld [vmem:[%s3000_s30 + $0x38] sm:$0xff]  ;;  %v1724_v18 = vld [vmem:[%s2983_s14 + $0x20] sm:$0xff]  ;;  %v1725_v20 = vld [vmem:[%s2983_s14 + $0x28] sm:$0xff]  ;;  %s1582_s20 = sshll.u32 %s3312_s2, 4 }
  0xec   : > { %1032 = vmatpush.bf16.msra.mxu1 %v1743_v14  ;;  %v1739_v19 = vld [vmem:[%s3000_s30 + $0x18] sm:$0xff]  ;;  %v1738_v21 = vld [vmem:[%s3000_s30 + $0x10] sm:$0xff]  ;;  %v1737_v22 = vld [vmem:[%s3000_s30 + $0x8] sm:$0xff]  ;;  %p629_p0 = scmp.lt.s32.totalorder %s1582_s20, 31 }
  0xed   : > { %v1736_v23 = vld [vmem:[%s3000_s30] sm:$0xff]  ;;  %v1869_v29 = vld [vmem:[%s2993_s1 + $0x30] sm:$0xff]   ;;  %v1864_v42 = vld [vmem:[%s2993_s1 + $0x8] sm:$0xff]   ;;  %s3315_s30 = sld [smem:[#allocation53_spill]] }
  0xee   : > { %858 = vmatpush.bf16.msra.mxu0 %v1733_v2  ;;  %1887 = vmatpush.bf16.msra.mxu3 %v1733_v2  ;;  %v1753_v24 = vld [vmem:[%s2993_s1] sm:$0xff]   ;;  %v1778_v32 = vunpack.c.l.bf16 %v1869_v29  ;;  %v1779_v34 = vunpack.c.h.bf16 %v1869_v29  ;;  %v1758_v46 = vunpack.c.l.bf16 %v1864_v42  ;;  %v1759_v47 = vunpack.c.h.bf16 %v1864_v42  ;;  %v1870_v49 = vld [vmem:[%s2993_s1 + $0x38] sm:$0xff]   ;;  %v1865_v62 = vld [vmem:[%s2993_s1 + $0x10] sm:$0xff]   ;;  %s3367_s20 = smov (!%p629_p0, %s1582_s20), 31 }
  0xef   : > { %v1754_v26 = vunpack.c.l.bf16 %v1753_v24  ;;  %v1755_v28 = vunpack.c.h.bf16 %v1753_v24  ;;  %v1782_v52 = vunpack.c.l.bf16 %v1870_v49  ;;  %v1783_v54 = vunpack.c.h.bf16 %v1870_v49  ;;  %v1744_v49 = vld [vmem:[%s3014_s19] sm:$0xff]  ;;  %s1583_s14 = sshll.u32 %s3367_s20, 2 }
  0xf0   : > { %1033 = vmatpush.bf16.msra.mxu1 %v1742_v15  ;;  %v1762_v2 = vunpack.c.l.bf16 %v1865_v62  ;;  %s3104_s7 = scalar_lea.vmem %s3316_s11, %s1583_s14 }
  0xf1   : > { %p620_p13 = scmp.lt.s32.totalorder %s619_s16, 1 }
  0xf2   : > { %859 = vmatpush.bf16.msra.mxu0 %v1732_v3  ;;  %1888 = vmatpush.bf16.msra.mxu3 %v1732_v3  ;;  %v1763_v3 = vunpack.c.h.bf16 %v1865_v62 }
  0xf3   : > { %s3365_s16 = smov (!%p620_p13, %s619_s16), 1  ;;  %s3099_s4 = scalar_lea.vmem %s3315_s30, %s1583_s14 }
  0xf4   : > { %s622_s17 = scalar_lea.vmem %s3313_s12, %s3365_s16  ;;  %1034 = vmatpush.bf16.msra.mxu1 %v1741_v16 }
  0xf5   : > { %v3056_v27 = vld [vmem:[%s622_s17] ss:$0 sm:$0xff] }
  0xf6   : > { %860 = vmatpush.bf16.msra.mxu0 %v1731_v4  ;;  %1889 = vmatpush.bf16.msra.mxu3 %v1731_v4  ;;  %v680_v30 = vmul.f32 %v3056_v27, %v1754_v26  ;;  %v681_v31 = vmul.f32 %v3056_v27, %v1755_v28  ;;  %v692_v38 = vmul.f32 %v3056_v27, %v1778_v32  ;;  %v1749_v28 = vld [vmem:[%s3014_s19 + $0x28] sm:$0xff] }
  0xf7   : > { %v693_v40 = vmul.f32 %v3056_v27, %v1779_v34  ;;  %v682_v50 = vmul.f32 %v3056_v27, %v1758_v46  ;;  %v683_v51 = vmul.f32 %v3056_v27, %v1759_v47  ;;  %v694_v58 = vmul.f32 %v3056_v27, %v1782_v52  ;;  %v1747_v46 = vld [vmem:[%s3014_s19 + $0x18] sm:$0xff]  ;;  %v1746_v47 = vld [vmem:[%s3014_s19 + $0x10] sm:$0xff] }
  0xf8   : > { %1035 = vmatpush.bf16.msra.mxu1 %v1740_v17  ;;  %v695_v60 = vmul.f32 %v3056_v27, %v1783_v54 }
  0xfa   : > { %861 = vmatpush.bf16.msra.mxu0 %v1730_v5  ;;  %1890 = vmatpush.bf16.msra.mxu3 %v1730_v5  ;;  %v684_v5 = vmul.f32 %v3056_v27, %v1762_v2 }
  0xfc   : > { %1036 = vmatpush.bf16.msra.mxu1 %v1739_v19 }
  0xfe   : > { %862 = vmatpush.bf16.msra.mxu0 %v1729_v6  ;;  %1891 = vmatpush.bf16.msra.mxu3 %v1729_v6  ;;  %v685_v6 = vmul.f32 %v3056_v27, %v1763_v3 }
 0x100   : > { %1037 = vmatpush.bf16.msra.mxu1 %v1738_v21 }
 0x102   : > { %863 = vmatpush.bf16.msra.mxu0 %v1728_v7  ;;  %1892 = vmatpush.bf16.msra.mxu3 %v1728_v7 }
 0x104   : > { %1038 = vmatpush.bf16.msra.mxu1 %v1737_v22 }
 0x105   : > { %864 = vmatmul.bf16.vlgmr.msra.gmra.mxu0 %v1720_v8  ;;  %894 = vmatmul.bf16.vlgmr.msra.gmra.mxu3 %v1726_v9 }
 0x106   : > { %1893 = vmatpush.bf16.msrb.mxu3 %v1743_v14 }
 0x108   : > { %1039 = vmatpush.bf16.msra.mxu1 %v1736_v23 }
 0x10a   : > { %1894 = vmatpush.bf16.msrb.mxu3 %v1742_v15 }
 0x10e   : > { %1895 = vmatpush.bf16.msrb.mxu3 %v1741_v16 }
 0x112   : > { %1896 = vmatpush.bf16.msrb.mxu3 %v1740_v17 }
 0x115   : > { %869 = vmatmul.bf16.gmra.mxu0 %v1721_v10  ;;  %899 = vmatmul.bf16.gmra.mxu3 %v1727_v11  ;;  %v1866_v11 = vld [vmem:[%s2993_s1 + $0x18] sm:$0xff]  }
 0x116   : > { %1897 = vmatpush.bf16.msrb.mxu3 %v1739_v19  ;;  %v1767_v14 = vunpack.c.h.bf16 %v1866_v11 }
 0x118   : > { %v687_v16 = vmul.f32 %v3056_v27, %v1767_v14 }
 0x11a   : > { %1898 = vmatpush.bf16.msrb.mxu3 %v1738_v21  ;;  %v1751_v21 = vld [vmem:[%s3014_s19 + $0x38] sm:$0xff] }
 0x11b   : > { %1173 = vmatpush.bf16.msra.mxu2 %v1751_v21 }
 0x11e   : > { %1899 = vmatpush.bf16.msrb.mxu3 %v1737_v22  ;;  %v1867_v22 = vld [vmem:[%s2993_s1 + $0x20] sm:$0xff]  }
 0x11f   : > { %v1771_v26 = vunpack.c.h.bf16 %v1867_v22 }
 0x122   : > { %1900 = vmatpush.bf16.msrb.mxu3 %v1736_v23  ;;  %v1750_v23 = vld [vmem:[%s3014_s19 + $0x30] sm:$0xff] }
 0x123   : > { %1174 = vmatpush.bf16.msra.mxu2 %v1750_v23 }
 0x125   : > { %874 = vmatmul.bf16.gmra.mxu0 %v1722_v12 }
 0x126   : > { %1901 = vmatpush.bf16.msra.mxu3 %v1751_v21 }
 0x127   : > { %1175 = vmatpush.bf16.msra.mxu2 %v1749_v28 }
 0x12a   : > { %1902 = vmatpush.bf16.msra.mxu3 %v1750_v23 }
 0x12e   : > { %1903 = vmatpush.bf16.msra.mxu3 %v1749_v28 }
 0x135   : > { %879 = vmatmul.bf16.gmra.mxu0 %v1723_v13  ;;  %v1766_v13 = vunpack.c.l.bf16 %v1866_v11 }
 0x137   : > { %v686_v15 = vmul.f32 %v3056_v27, %v1766_v13 }
 0x145   : > { %884 = vmatmul.bf16.gmra.mxu0 %v1724_v18 }
 0x155   : > { %889 = vmatmul.bf16.gmra.mxu0 %v1725_v20 }
 0x182   : > { %v865_v25 = vpop.f32.mrf.mxu0 }
 0x183   : > { %v905_v36 = vadd.f32 %v865_v25, %v680_v30  ;;  %v1770_v25 = vunpack.c.l.bf16 %v1867_v22  ;;  %v689_v30 = vmul.f32 %v3056_v27, %v1771_v26 }
 0x185   : > { %v688_v29 = vmul.f32 %v3056_v27, %v1770_v25 }
 0x188   : > { %v895_v33 = vpop.f32.mrf.mxu3 }
 0x189   : > { %v917_v41 = vadd.f32 %v895_v33, %v692_v38 }
 0x18a   : > { %v867_v35 = vpop.f32.mrf.mxu0 }
 0x18b   : > { %v906_v37 = vadd.f32 %v867_v35, %v681_v31  ;;  %v1748_v31 = vld [vmem:[%s3014_s19 + $0x20] sm:$0xff] }
 0x18c   : > { %1176 = vmatpush.bf16.msra.mxu2 %v1748_v31  ;;  %1904 = vmatpush.bf16.msra.mxu3 %v1748_v31 }
 0x18d   : > { %v956_v39 = vpack.c.bf16 %v906_v37, %v905_v36  ;;  %v1868_v36 = vld [vmem:[%s2993_s1 + $0x28] sm:$0xff]  }
 0x18e   : > { %v1774_v38 = vunpack.c.l.bf16 %v1868_v36 }
 0x18f   : > { %1040 = vmatmul.bf16.vlgmr.msra.gmra.mxu1 %v956_v39  ;;  %v1775_v39 = vunpack.c.h.bf16 %v1868_v36 }
 0x190   : > { %v897_v43 = vpop.f32.mrf.mxu3  ;;  %1177 = vmatpush.bf16.msra.mxu2 %v1747_v46  ;;  %1905 = vmatpush.bf16.msra.mxu3 %v1747_v46 }
 0x191   : > { %v918_v44 = vadd.f32 %v897_v43, %v693_v40  ;;  %v690_v40 = vmul.f32 %v3056_v27, %v1774_v38 }
 0x192   : > { %v870_v45 = vpop.f32.mrf.mxu0 }
 0x193   : > { %v962_v48 = vpack.c.bf16 %v918_v44, %v917_v41  ;;  %v907_v56 = vadd.f32 %v870_v45, %v682_v50  ;;  %v691_v41 = vmul.f32 %v3056_v27, %v1775_v39  ;;  %v2116_v27 = vld [vmem:[%s3007_s5] ss:$0 sm:$0xff] }
 0x194   : > { %1178 = vmatpush.bf16.msra.mxu2 %v1746_v47  ;;  %1906 = vmatpush.bf16.msra.mxu3 %v1746_v47 }
 0x195   : > { %1070 = vmatmul.bf16.vlgmr.msrb.gmra.mxu3 %v962_v48  ;;  %v1745_v48 = vld [vmem:[%s3014_s19 + $0x8] sm:$0xff] }
 0x198   : > { %v900_v53 = vpop.f32.mrf.mxu3  ;;  %1179 = vmatpush.bf16.msra.mxu2 %v1745_v48  ;;  %1907 = vmatpush.bf16.msra.mxu3 %v1745_v48 }
 0x199   : > { %v919_v61 = vadd.f32 %v900_v53, %v694_v58 }
 0x19a   : > { %v872_v55 = vpop.f32.mrf.mxu0 }
 0x19b   : > { %v908_v57 = vadd.f32 %v872_v55, %v683_v51 }
 0x19c   : > { %1180 = vmatpush.bf16.msra.mxu2 %v1744_v49  ;;  %1908 = vmatpush.bf16.msra.mxu3 %v1744_v49 }
 0x19d   : > { %v957_v59 = vpack.c.bf16 %v908_v57, %v907_v56 }
 0x19f   : > { %1045 = vmatmul.bf16.gmra.mxu1 %v957_v59 }
 0x1a0   : > { %v902_v63 = vpop.f32.mrf.mxu3 }
 0x1a1   : > { %v920_v0 = vadd.f32 %v902_v63, %v695_v60 }
 0x1a2   : > { %v875_v1 = vpop.f32.mrf.mxu0 }
 0x1a3   : > { %v963_v4 = vpack.c.bf16 %v920_v0, %v919_v61  ;;  %v909_v8 = vadd.f32 %v875_v1, %v684_v5 }
 0x1a5   : > { %1075 = vmatmul.bf16.gmra.mxu3 %v963_v4 }
 0x1aa   : > { %v877_v7 = vpop.f32.mrf.mxu0 }
 0x1ab   : > { %v910_v9 = vadd.f32 %v877_v7, %v685_v6 }
 0x1ad   : > { %v958_v10 = vpack.c.bf16 %v910_v9, %v909_v8 }
 0x1af   : > { %1050 = vmatmul.bf16.gmra.mxu1 %v958_v10 }
 0x1b2   : > { %v880_v12 = vpop.f32.mrf.mxu0 }
 0x1b3   : > { %v911_v18 = vadd.f32 %v880_v12, %v686_v15 }
 0x1ba   : > { %v882_v17 = vpop.f32.mrf.mxu0 }
 0x1bb   : > { %v912_v19 = vadd.f32 %v882_v17, %v687_v16 }
 0x1bd   : > { %v959_v20 = vpack.c.bf16 %v912_v19, %v911_v18 }
 0x1bf   : > { %1055 = vmatmul.bf16.gmra.mxu1 %v959_v20 }
 0x1c2   : > { %v885_v24 = vpop.f32.mrf.mxu0 }
 0x1c3   : > { %v913_v33 = vadd.f32 %v885_v24, %v688_v29 }
 0x1ca   : > { %v887_v32 = vpop.f32.mrf.mxu0 }
 0x1cb   : > { %v914_v34 = vadd.f32 %v887_v32, %v689_v30 }
 0x1cd   : > { %v960_v35 = vpack.c.bf16 %v914_v34, %v913_v33 }
 0x1cf   : > { %1060 = vmatmul.bf16.gmra.mxu1 %v960_v35 }
 0x1d2   : > { %v890_v37 = vpop.f32.mrf.mxu0 }
 0x1d3   : > { %v915_v43 = vadd.f32 %v890_v37, %v690_v40 }
 0x1da   : > { %v892_v42 = vpop.f32.mrf.mxu0 }
 0x1db   : > { %v916_v44 = vadd.f32 %v892_v42, %v691_v41 }
 0x1dd   : > { %v961_v45 = vpack.c.bf16 %v916_v44, %v915_v43  ;;  %v3092_v44 = vld [vmem:[%s3021_s29] ss:$0 sm:$0xff] }
 0x1df   : > { %1065 = vmatmul.bf16.gmra.mxu1 %v961_v45 }
 0x20c   : > { %v1041_v50 = vpop.f32.mrf.mxu1 }
 0x20d   : > { %v1042_v51 = vadd.f32 %v2116_v27, %v1041_v50 }
 0x20f   : > { %v1081_v54 = vmax.f32 %v1042_v51, 0.0 }
 0x214   : > { %v1043_v52 = vpop.f32.mrf.mxu1 }
 0x215   : > { %v1044_v53 = vadd.f32 %v2116_v27, %v1043_v52 }
 0x217   : > { %v1082_v55 = vmax.f32 %v1044_v53, 0.0 }
 0x218   : > { %v1071_v56 = vpop.f32.mrf.mxu3 }
 0x219   : > { %v1097_v57 = vpack.c.bf16 %v1082_v55, %v1081_v54  ;;  %v1072_v59 = vadd.f32 %v2116_v27, %v1071_v56 }
 0x21b   : > { %1181 = vmatmul.bf16.vlgmr.msra.gmra.mxu2 %v1097_v57  ;;  %v1093_v61 = vmax.f32 %v1072_v59, 0.0 }
 0x21c   : > { %v1046_v58 = vpop.f32.mrf.mxu1 }
 0x21d   : > { %v1047_v63 = vadd.f32 %v2116_v27, %v1046_v58 }
 0x21f   : > { %v1083_v4 = vmax.f32 %v1047_v63, 0.0 }
 0x220   : > { %v1073_v60 = vpop.f32.mrf.mxu3 }
 0x221   : > { %v1074_v62 = vadd.f32 %v2116_v27, %v1073_v60 }
 0x223   : > { %v1094_v0 = vmax.f32 %v1074_v62, 0.0 }
 0x224   : > { %v1048_v1 = vpop.f32.mrf.mxu1 }
 0x225   : > { %v1049_v2 = vadd.f32 %v2116_v27, %v1048_v1  ;;  %v1103_v3 = vpack.c.bf16 %v1094_v0, %v1093_v61 }
 0x227   : > { %v1084_v5 = vmax.f32 %v1049_v2, 0.0  ;;  %1211 = vmatmul.bf16.vlgmr.msra.gmra.mxu3 %v1103_v3 }
 0x228   : > { %v1076_v6 = vpop.f32.mrf.mxu3 }
 0x229   : > { %v1098_v7 = vpack.c.bf16 %v1084_v5, %v1083_v4  ;;  %v1077_v9 = vadd.f32 %v2116_v27, %v1076_v6 }
 0x22b   : > { %1186 = vmatmul.bf16.gmra.mxu2 %v1098_v7  ;;  %v1095_v11 = vmax.f32 %v1077_v9, 0.0 }
 0x22c   : > { %v1051_v8 = vpop.f32.mrf.mxu1 }
 0x22d   : > { %v1052_v13 = vadd.f32 %v2116_v27, %v1051_v8 }
 0x22f   : > { %v1085_v18 = vmax.f32 %v1052_v13, 0.0 }
 0x230   : > { %v1078_v10 = vpop.f32.mrf.mxu3 }
 0x231   : > { %v1079_v12 = vadd.f32 %v2116_v27, %v1078_v10 }
 0x233   : > { %v1096_v14 = vmax.f32 %v1079_v12, 0.0 }
 0x234   : > { %v1053_v15 = vpop.f32.mrf.mxu1 }
 0x235   : > { %v1054_v16 = vadd.f32 %v2116_v27, %v1053_v15  ;;  %v1104_v17 = vpack.c.bf16 %v1096_v14, %v1095_v11 }
 0x237   : > { %v1086_v19 = vmax.f32 %v1054_v16, 0.0  ;;  %1216 = vmatmul.bf16.gmra.mxu3 %v1104_v17 }
 0x239   : > { %v1099_v20 = vpack.c.bf16 %v1086_v19, %v1085_v18 }
 0x23b   : > { %1191 = vmatmul.bf16.gmra.mxu2 %v1099_v20 }
 0x23c   : > { %v1056_v21 = vpop.f32.mrf.mxu1 }
 0x23d   : > { %v1057_v22 = vadd.f32 %v2116_v27, %v1056_v21 }
 0x23f   : > { %v1087_v25 = vmax.f32 %v1057_v22, 0.0 }
 0x244   : > { %v1058_v23 = vpop.f32.mrf.mxu1 }
 0x245   : > { %v1059_v24 = vadd.f32 %v2116_v27, %v1058_v23 }
 0x247   : > { %v1088_v26 = vmax.f32 %v1059_v24, 0.0 }
 0x249   : > { %v1100_v28 = vpack.c.bf16 %v1088_v26, %v1087_v25 }
 0x24b   : > { %1196 = vmatmul.bf16.gmra.mxu2 %v1100_v28 }
 0x24c   : > { %v1061_v29 = vpop.f32.mrf.mxu1 }
 0x24d   : > { %v1062_v30 = vadd.f32 %v2116_v27, %v1061_v29 }
 0x24f   : > { %v1089_v33 = vmax.f32 %v1062_v30, 0.0 }
 0x254   : > { %v1063_v31 = vpop.f32.mrf.mxu1 }
 0x255   : > { %v1064_v32 = vadd.f32 %v2116_v27, %v1063_v31 }
 0x257   : > { %v1090_v34 = vmax.f32 %v1064_v32, 0.0 }
 0x259   : > { %v1101_v35 = vpack.c.bf16 %v1090_v34, %v1089_v33 }
 0x25b   : > { %1201 = vmatmul.bf16.gmra.mxu2 %v1101_v35 }
 0x25c   : > { %v1066_v36 = vpop.f32.mrf.mxu1 }
 0x25d   : > { %v1067_v37 = vadd.f32 %v2116_v27, %v1066_v36 }
 0x25f   : > { %v1091_v40 = vmax.f32 %v1067_v37, 0.0 }
 0x264   : > { %v1068_v38 = vpop.f32.mrf.mxu1 }
 0x265   : > { %v1069_v39 = vadd.f32 %v2116_v27, %v1068_v38 }
 0x267   : > { %v1092_v41 = vmax.f32 %v1069_v39, 0.0 }
 0x269   : > { %v1102_v42 = vpack.c.bf16 %v1092_v41, %v1091_v40 }
 0x26b   : > { %1206 = vmatmul.bf16.gmra.mxu2 %v1102_v42 }
 0x29e   : > { %v1182_v43 = vpop.f32.mrf.mxu2 }
 0x29f   : > { %v1183_v45 = vadd.f32 %v3092_v44, %v1182_v43 }
 0x2a1   : > { %v1270_v47 = vmul.f32 0.01, %v1183_v45  ;;  %vm1254_vm0 = vcmp.ge.f32.partialorder %v1183_v45, 0.0 }
 0x2a3   : > { %v1286_v51 = vsel %vm1254_vm0, %v1183_v45, %v1270_v47 }
 0x2a6   : > { %v1184_v46 = vpop.f32.mrf.mxu2 }
 0x2a7   : > { %v1185_v48 = vadd.f32 %v3092_v44, %v1184_v46 }
 0x2a9   : > { %v1787_v49 = vpack.c.bf16 %v1185_v48, %v1183_v45  ;;  %vm1255_vm1 = vcmp.ge.f32.partialorder %v1185_v48, 0.0  ;;  %v1271_v50 = vmul.f32 0.01, %v1185_v48 }
 0x2aa   : > { %v1212_v27 = vpop.f32.mrf.mxu3 }
 0x2ab   : > { %1788 = vst [vmem:[%s3099_s4] sm:$0xff] %v1787_v49   ;;  %v1287_v52 = vsel %vm1255_vm1, %v1185_v48, %v1271_v50  ;;  %v1213_v54 = vadd.f32 %v3092_v44, %v1212_v27 }
 0x2ac   : > { %v1827_v53 = vpack.c.bf16 %v1287_v52, %v1286_v51 }
 0x2ad   : > { %v1282_v56 = vmul.f32 0.01, %v1213_v54  ;;  %vm1266_vm2 = vcmp.ge.f32.partialorder %v1213_v54, 0.0 }
 0x2ae   : > { %1828 = vst [vmem:[%s3104_s7] sm:$0xff] %v1827_v53   ;;  %v1187_v55 = vpop.f32.mrf.mxu2 }
 0x2af   : > { %v1188_v58 = vadd.f32 %v3092_v44, %v1187_v55  ;;  %v1298_v60 = vsel %vm1266_vm2, %v1213_v54, %v1282_v56 }
 0x2b1   : > { %v1272_v0 = vmul.f32 0.01, %v1188_v58  ;;  %vm1256_vm4 = vcmp.ge.f32.partialorder %v1188_v58, 0.0 }
 0x2b2   : > { %v1214_v57 = vpop.f32.mrf.mxu3 }
 0x2b3   : > { %v1215_v59 = vadd.f32 %v3092_v44, %v1214_v57  ;;  %v1288_v7 = vsel %vm1256_vm4, %v1188_v58, %v1272_v0 }
 0x2b5   : > { %v1817_v61 = vpack.c.bf16 %v1215_v59, %v1213_v54  ;;  %vm1267_vm3 = vcmp.ge.f32.partialorder %v1215_v59, 0.0  ;;  %v1283_v62 = vmul.f32 0.01, %v1215_v59 }
 0x2b6   : > { %v1189_v63 = vpop.f32.mrf.mxu2 }
 0x2b7   : > { %v1190_v1 = vadd.f32 %v3092_v44, %v1189_v63  ;;  %1876 = vst [vmem:[%s3099_s4 + $0x30] sm:$0xff] %v1817_v61   ;;  %v1299_v2 = vsel %vm1267_vm3, %v1215_v59, %v1283_v62 }
 0x2b8   : > { %v1857_v3 = vpack.c.bf16 %v1299_v2, %v1298_v60 }
 0x2b9   : > { %v1792_v4 = vpack.c.bf16 %v1190_v1, %v1188_v58  ;;  %vm1257_vm5 = vcmp.ge.f32.partialorder %v1190_v1, 0.0  ;;  %v1273_v5 = vmul.f32 0.01, %v1190_v1 }
 0x2ba   : > { %1883 = vst [vmem:[%s3104_s7 + $0x30] sm:$0xff] %v1857_v3   ;;  %v1217_v6 = vpop.f32.mrf.mxu3 }
 0x2bb   : > { %1871 = vst [vmem:[%s3099_s4 + $0x8] sm:$0xff] %v1792_v4   ;;  %v1289_v8 = vsel %vm1257_vm5, %v1190_v1, %v1273_v5  ;;  %v1218_v10 = vadd.f32 %v3092_v44, %v1217_v6 }
 0x2bc   : > { %v1832_v9 = vpack.c.bf16 %v1289_v8, %v1288_v7 }
 0x2bd   : > { %v1284_v12 = vmul.f32 0.01, %v1218_v10  ;;  %vm1268_vm6 = vcmp.ge.f32.partialorder %v1218_v10, 0.0 }
 0x2be   : > { %1878 = vst [vmem:[%s3104_s7 + $0x8] sm:$0xff] %v1832_v9   ;;  %v1192_v11 = vpop.f32.mrf.mxu2 }
 0x2bf   : > { %v1193_v14 = vadd.f32 %v3092_v44, %v1192_v11  ;;  %v1300_v16 = vsel %vm1268_vm6, %v1218_v10, %v1284_v12 }
 0x2c1   : > { %v1274_v20 = vmul.f32 0.01, %v1193_v14  ;;  %vm1258_vm8 = vcmp.ge.f32.partialorder %v1193_v14, 0.0 }
 0x2c2   : > { %v1219_v13 = vpop.f32.mrf.mxu3 }
 0x2c3   : > { %v1220_v15 = vadd.f32 %v3092_v44, %v1219_v13  ;;  %v1290_v26 = vsel %vm1258_vm8, %v1193_v14, %v1274_v20 }
 0x2c5   : > { %v1822_v17 = vpack.c.bf16 %v1220_v15, %v1218_v10  ;;  %vm1269_vm7 = vcmp.ge.f32.partialorder %v1220_v15, 0.0  ;;  %v1285_v18 = vmul.f32 0.01, %v1220_v15 }
 0x2c6   : > { %v1194_v19 = vpop.f32.mrf.mxu2 }
 0x2c7   : > { %v1195_v21 = vadd.f32 %v3092_v44, %v1194_v19  ;;  %1877 = vst [vmem:[%s3099_s4 + $0x38] sm:$0xff] %v1822_v17   ;;  %v1301_v22 = vsel %vm1269_vm7, %v1220_v15, %v1285_v18 }
 0x2c8   : > { %v1862_v23 = vpack.c.bf16 %v1301_v22, %v1300_v16 }
 0x2c9   : > { %v1797_v24 = vpack.c.bf16 %v1195_v21, %v1193_v14  ;;  %vm1259_vm9 = vcmp.ge.f32.partialorder %v1195_v21, 0.0  ;;  %v1275_v25 = vmul.f32 0.01, %v1195_v21 }
 0x2ca   : > { %1884 = vst [vmem:[%s3104_s7 + $0x38] sm:$0xff] %v1862_v23  }
 0x2cb   : > { %1872 = vst [vmem:[%s3099_s4 + $0x10] sm:$0xff] %v1797_v24   ;;  %v1291_v28 = vsel %vm1259_vm9, %v1195_v21, %v1275_v25 }
 0x2cc   : > { %v1837_v29 = vpack.c.bf16 %v1291_v28, %v1290_v26 }
 0x2ce   : > { %1879 = vst [vmem:[%s3104_s7 + $0x10] sm:$0xff] %v1837_v29   ;;  %v1197_v30 = vpop.f32.mrf.mxu2 }
 0x2cf   : > { %v1198_v31 = vadd.f32 %v3092_v44, %v1197_v30 }
 0x2d1   : > { %v1276_v33 = vmul.f32 0.01, %v1198_v31  ;;  %vm1260_vm10 = vcmp.ge.f32.partialorder %v1198_v31, 0.0 }
 0x2d3   : > { %v1292_v37 = vsel %vm1260_vm10, %v1198_v31, %v1276_v33 }
 0x2d6   : > { %v1199_v32 = vpop.f32.mrf.mxu2 }
 0x2d7   : > { %v1200_v34 = vadd.f32 %v3092_v44, %v1199_v32 }
 0x2d9   : > { %v1802_v35 = vpack.c.bf16 %v1200_v34, %v1198_v31  ;;  %vm1261_vm11 = vcmp.ge.f32.partialorder %v1200_v34, 0.0  ;;  %v1277_v36 = vmul.f32 0.01, %v1200_v34 }
 0x2db   : > { %1873 = vst [vmem:[%s3099_s4 + $0x18] sm:$0xff] %v1802_v35   ;;  %v1293_v38 = vsel %vm1261_vm11, %v1200_v34, %v1277_v36 }
 0x2dc   : > { %v1842_v39 = vpack.c.bf16 %v1293_v38, %v1292_v37 }
 0x2de   : > { %1880 = vst [vmem:[%s3104_s7 + $0x18] sm:$0xff] %v1842_v39   ;;  %v1202_v40 = vpop.f32.mrf.mxu2 }
 0x2df   : > { %v1203_v41 = vadd.f32 %v3092_v44, %v1202_v40 }
 0x2e1   : > { %v1278_v43 = vmul.f32 0.01, %v1203_v41  ;;  %vm1262_vm12 = vcmp.ge.f32.partialorder %v1203_v41, 0.0 }
 0x2e3   : > { %v1294_v48 = vsel %vm1262_vm12, %v1203_v41, %v1278_v43 }
 0x2e6   : > { %v1204_v42 = vpop.f32.mrf.mxu2 }
 0x2e7   : > { %v1205_v45 = vadd.f32 %v3092_v44, %v1204_v42 }
 0x2e9   : > { %v1807_v46 = vpack.c.bf16 %v1205_v45, %v1203_v41  ;;  %vm1263_vm13 = vcmp.ge.f32.partialorder %v1205_v45, 0.0  ;;  %v1279_v47 = vmul.f32 0.01, %v1205_v45 }
 0x2eb   : > { %1874 = vst [vmem:[%s3099_s4 + $0x20] sm:$0xff] %v1807_v46   ;;  %v1295_v49 = vsel %vm1263_vm13, %v1205_v45, %v1279_v47 }
 0x2ec   : > { %v1847_v50 = vpack.c.bf16 %v1295_v49, %v1294_v48 }
 0x2ee   : > { %1881 = vst [vmem:[%s3104_s7 + $0x20] sm:$0xff] %v1847_v50   ;;  %v1207_v27 = vpop.f32.mrf.mxu2 }
 0x2ef   : > { %v1208_v51 = vadd.f32 %v3092_v44, %v1207_v27 }
 0x2f1   : > { %v1280_v53 = vmul.f32 0.01, %v1208_v51  ;;  %vm1264_vm14 = vcmp.ge.f32.partialorder %v1208_v51, 0.0 }
 0x2f3   : > { %v1296_v57 = vsel %vm1264_vm14, %v1208_v51, %v1280_v53 }
 0x2f6   : > { %v1209_v52 = vpop.f32.mrf.mxu2 }
 0x2f7   : > { %v1210_v54 = vadd.f32 %v3092_v44, %v1209_v52 }
 0x2f9   : > { %v1812_v55 = vpack.c.bf16 %v1210_v54, %v1208_v51  ;;  %vm1265_vm15 = vcmp.ge.f32.partialorder %v1210_v54, 0.0  ;;  %v1281_v56 = vmul.f32 0.01, %v1210_v54 }
 0x2fb   : > { %1875 = vst [vmem:[%s3099_s4 + $0x28] sm:$0xff] %v1812_v55   ;;  %v1297_v58 = vsel %vm1265_vm15, %v1210_v54, %v1281_v56 }
 0x2fc   : > { %v1852_v59 = vpack.c.bf16 %v1297_v58, %v1296_v57 }
 0x2fe   : > { %1882 = vst [vmem:[%s3104_s7 + $0x28] sm:$0xff] %v1852_v59  }
 0x2ff PF: > { %s33_s13 = sadd.s32 1, %s2512_s13   ;;  %s3319_s17 = sld [smem:[#allocation31_spill]] }
 0x300   : > { %p3137_p1 = scmp.ge.s32.totalorder %s33_s13, 4   ;;  %s3320_s18 = sld [smem:[#allocation32_spill]] }
 0x301   : > { %s3321_s24 = sld [smem:[#allocation33_spill]]  ;;  %s3330_s19 = smov %s3361_s27 }
 0x302   : > { %s3322_s29 = sld [smem:[#allocation44_spill]]  ;;  %s3332_s20 = smov %s2460_s21 }
 0x303   : > { %s3323_s2 = sld [smem:[#allocation34_spill]]  ;;  %s3333_s21 = smov %s2464_s0 }
 0x304   : > { %s3324_s16 = sld [smem:[#allocation42_spill]]  ;;  %s3334_s0 = smov %s2870_s9 }
 0x305   : > { %s3325_s8 = sld [smem:[#allocation35_spill]]  ;;  %s3335_s22 = smov %s2472_s23 }
 0x306   : > { %s3326_s12 = sld [smem:[#allocation36_spill]]  ;;  %s3338_s25 = smov %s2484_s26 }
 0x307   : > { %s3327_s30 = sld [smem:[#allocation40_spill]]  ;;  %s3336_s23 = smov %s3321_s24 }
 0x308   : > { %s3328_s11 = sld [smem:[#allocation38_spill]]  ;;  %s3337_s24 = smov %s3322_s29 }
 0x309   : > { %s3329_s14 = sld [smem:[#allocation39_spill]]  ;;  %s3339_s26 = smov %s3323_s2 }
 0x30a   : > { %s3340_s27 = smov %s3324_s16 }
 0x30b   : > { %s3341_s28 = smov %s3325_s8  ;;  %32 = sbr.rel (!%p3137_p1) target bundleno = 26 (0x1a), region = 175 }
 0x30c   : > { %s3342_s29 = smov %s3326_s12 }
 0x30f   : > { %s3343_s12 = smov %s3329_s14 }
 0x310   :  { %1373 = vsyncpa [#allocation6], 1 }
 0x311   :  { %1375 = vsyncpa [#allocation6 + $0x1], 1 }
 0x312   :  { %1376 = vsyncpa [#allocation8], 1 }

// kernel: hgin_forward.6
= control target key start
LH: loop header
LB: loop body
LE: loop exit
PB: predicated region body
PF: predicated region fallthrough
CT: control target
= control target key end

     0   :  { %s1933_s16 = smov [#allocation4]   ;;  %s2270_s0 = inlined_call_operand.vmem [shape: s32[2], index: 0, kind: input, shape index: {}]   ;;  %s2271_s1 = inlined_call_operand.vmem [shape: bf16[256,128], index: 1, kind: input, shape index: {}]   ;;  %s2272_s2 = inlined_call_operand.vmem [shape: bf16[128,128], index: 2, kind: input, shape index: {}]   ;;  %s2273_s3 = inlined_call_operand.vmem [shape: bf16[256,128], index: 3, kind: input, shape index: {}]   ;;  %s2274_s4 = inlined_call_operand.vmem [shape: f32[2,1,128], index: 4, kind: input, shape index: {}]   ;;  %s2275_s5 = inlined_call_operand.vmem [shape: bf16[2,128,128], index: 5, kind: input, shape index: {}]   ;;  %s2276_s6 = inlined_call_operand.vmem [shape: f32[2,1,128], index: 6, kind: input, shape index: {}]   ;;  %s2277_s7 = inlined_call_operand.vmem [shape: bf16[2,128,128], index: 7, kind: input, shape index: {}]   ;;  %s2278_s8 = inlined_call_operand.vmem [shape: f32[2,1,128], index: 8, kind: input, shape index: {}]   ;;  %s2279_s9 = inlined_call_operand.vmem [shape: bf16[256,128], index: 9, kind: output, shape index: {0}]   ;;  %s2280_s10 = inlined_call_operand.hbm [shape: bf16[256,128], index: 10, kind: output, shape index: {1}]  }
   0x1   :  { %2281 = sst [smem:[#allocation9_spill]] %s2271_s1  ;;  %s17_s15 = sshll.u32 %s2270_s0, 4  ;;  %s18_s15 = int_to_ptr.vmem [resolvable:$true] %s17_s15 }
   0x2   :  { %20 = dma.vmem_to_smem %s18_s15, 16, %s1933_s16, [#allocation3] }
   0x3   :  { %1903 = dma.done.wait [#allocation3], 16 }
   0x4   :  { %1904 = vsyncadd [#allocation3], 4294967280 }
   0x5   :  { %23 = sfence }
   0x6   :  { %24 = vsyncpa [#allocation6], 0 }
   0x7   :  { %26 = vsyncpa [#allocation6 + $0x1], 0  ;;  %s1994_s17 = smov 0   ;;  %s1996_s18 = smov 0  }
   0x8   :  { %s1998_s19 = smov 0   ;;  %s2000_s20 = smov 0  }
   0x9   :  { %s2002_s21 = smov 0   ;;  %s2004_s22 = smov 0  }
   0xa LB: > { %s1436_s0 = sadd.s32 4294967295, %s1931_s22   ;;  %s1437_s23 = sadd.s32 4294967294, %s1931_s22   ;;  %s1931_s22 = sphi %s2004_s22, %s32_s22   ;;  %s1927_s21 = sphi %s2002_s21, %s2290_s21   ;;  %s1923_s20 = sphi %s2000_s20, %s2289_s20   ;;  %s1919_s19 = sphi %s1998_s19, %s2288_s19   ;;  %s1915_s18 = sphi %s1996_s18, %s2287_s18   ;;  %s1911_s17 = sphi %s1994_s17, %s2286_s17  }
   0xb   : > { %s44_s24 = sadd.s32 1, %s1927_s21  ;;  %s297_s25 = sadd.s32 1, %s1919_s19 }
   0xc   : > { %p46_p0 = scmp.ge.s32.totalorder %s44_s24, 2  ;;  %p307_p1 = scmp.ne.s32.totalorder %s1919_s19, %s1915_s18 }
   0xd   : > { %p308_p2 = scmp.eq.s32.totalorder %s1436_s0, 1  ;;  %p313_p3 = scmp.ne.s32.totalorder %s1915_s18, %s1911_s17 }
   0xe   : > { %s2292_s24 = smov (%p46_p0, %s44_s24), 0  ;;  %p314_p5 = scmp.eq.s32.totalorder %s1437_s23, 1 }
   0xf   : > { %p2034_p4 = por %p308_p2, %p307_p1  ;;  %s294_s27 = ssub.s32 %s1927_s21, %s2292_s24 }
  0x10   : > { %p1441_p6 = scmp.ge.s32.totalorder %s1931_s22, 1  ;;  %p295_p7 = scmp.eq.s32.totalorder %s294_s27, 0 }
  0x11   : > { %p2041_p8 = por %p314_p5, %p313_p3  ;;  %p406_p9 = scmp.lt.s32.totalorder %s1931_s22, 3 }
  0x12   : > { %s2047_s29 = scalar_select %p295_p7, %s1919_s19, %s297_s25  }
  0x13   : > { %p407_p10 = pnand %p1441_p6, %p406_p9 }
  0x14   : > { %s505_s12 = sld [smem:[#allocation4 + %s1923_s20]] (!%p407_p10)  ;;  %s1443_s11 = sshll.u32 (!%p407_p10), %s1923_s20, 4 }
  0x15   : > { %410 = sbr.rel (%p407_p10) target bundleno = 567 (0x237), region = 52  ;;  %p485_p12 = scmp.lt.s32.totalorder (!%p407_p10), %s1443_s11, 31 }
  0x16   : > { %s2284_s1 = sld [smem:[#allocation9_spill]] (!%p407_p10)  ;;  %s481_s30 = sand.u32 (!%p407_p10), 1, %s1915_s18  }
  0x17   : > { %s517_s14 = sld [smem:[#allocation4 + %s1923_s20]] (!%p407_p10)  ;;  %s1442_s15 = sshll.u32 (!%p407_p10), %s481_s30, 6 }
  0x1a   : > { %v1603_v0 = vld [vmem:[%s2272_s2 + $0x38] sm:$0xff]  ;;  %v1602_v1 = vld [vmem:[%s2272_s2 + $0x30] sm:$0xff]  ;;  %v1601_v2 = vld [vmem:[%s2272_s2 + $0x28] sm:$0xff]  ;;  %p506_p11 = scmp.lt.s32.totalorder %s505_s12, 1  ;;  %s2296_s11 = smov (!%p485_p12, %s1443_s11), 31 }
  0x1b   : > { %757 = vmatpush.bf16.msra.mxu0 %v1603_v0  ;;  %1754 = vmatpush.bf16.msra.mxu3 %v1603_v0  ;;  %v1600_v3 = vld [vmem:[%s2272_s2 + $0x20] sm:$0xff]  ;;  %v1599_v4 = vld [vmem:[%s2272_s2 + $0x18] sm:$0xff]  ;;  %v1598_v5 = vld [vmem:[%s2272_s2 + $0x10] sm:$0xff]  ;;  %s2078_s25 = sshll.u32 %s2296_s11, 2  ;;  %s510_s11 = sld [smem:[#allocation4 + %s1923_s20]] }
  0x1c   : > { %s2294_s12 = smov (!%p506_p11, %s505_s12), 1  ;;  %v1597_v6 = vld [vmem:[%s2272_s2 + $0x8] sm:$0xff]  ;;  %v1596_v7 = vld [vmem:[%s2272_s2] sm:$0xff]  ;;  %s2087_s16 = scalar_lea.vmem %s2284_s1, %s2078_s25 }
  0x1d   : > { %v1588_v8 = vld [vmem:[%s2087_s16] sm:$0xff]  ;;  %v1594_v9 = vld [vmem:[%s2087_s16 + $0x30] sm:$0xff]  ;;  %v1589_v10 = vld [vmem:[%s2087_s16 + $0x8] sm:$0xff]  ;;  %p518_p0 = scmp.lt.s32.totalorder %s517_s14, 1  ;;  %s2122_s27 = scalar_lea.vmem %s2273_s3, %s2078_s25 }
  0x1e   : > { %v1595_v11 = vld [vmem:[%s2087_s16 + $0x38] sm:$0xff]  ;;  %v1590_v12 = vld [vmem:[%s2087_s16 + $0x10] sm:$0xff]  ;;  %v1592_v18 = vld [vmem:[%s2087_s16 + $0x20] sm:$0xff]  ;;  %s522_s1 = sld [smem:[#allocation4 + %s1923_s20]] }
  0x1f   : > { %758 = vmatpush.bf16.msra.mxu0 %v1602_v1  ;;  %1755 = vmatpush.bf16.msra.mxu3 %v1602_v1  ;;  %v1591_v13 = vld [vmem:[%s2087_s16 + $0x18] sm:$0xff]  ;;  %v1593_v20 = vld [vmem:[%s2087_s16 + $0x28] sm:$0xff]  ;;  %s2300_s14 = smov (!%p518_p0, %s517_s14), 1  ;;  %v1622_v24 = vld [vmem:[%s2122_s27] sm:$0xff]   ;;  %s529_s16 = sld [smem:[#allocation4 + %s1923_s20]] }
  0x20   : > { %v1623_v26 = vunpack.c.l.bf16 %v1622_v24  ;;  %v1624_v28 = vunpack.c.h.bf16 %v1622_v24  ;;  %v1738_v29 = vld [vmem:[%s2122_s27 + $0x30] sm:$0xff]   ;;  %v1733_v42 = vld [vmem:[%s2122_s27 + $0x8] sm:$0xff]   ;;  %v1739_v49 = vld [vmem:[%s2122_s27 + $0x38] sm:$0xff]  }
  0x21   : > { %p511_p13 = scmp.lt.s32.totalorder %s510_s11, 1  ;;  %v1647_v32 = vunpack.c.l.bf16 %v1738_v29  ;;  %v1648_v34 = vunpack.c.h.bf16 %v1738_v29  ;;  %v1627_v46 = vunpack.c.l.bf16 %v1733_v42  ;;  %v1628_v47 = vunpack.c.h.bf16 %v1733_v42  ;;  %v1734_v62 = vld [vmem:[%s2122_s27 + $0x10] sm:$0xff]  }
  0x22   : > { %v1651_v52 = vunpack.c.l.bf16 %v1739_v49  ;;  %v1652_v54 = vunpack.c.h.bf16 %v1739_v49 }
  0x23   : > { %759 = vmatpush.bf16.msra.mxu0 %v1601_v2  ;;  %1756 = vmatpush.bf16.msra.mxu3 %v1601_v2  ;;  %s2298_s11 = smov (!%p511_p13, %s510_s11), 1  ;;  %v1631_v2 = vunpack.c.l.bf16 %v1734_v62 }
  0x24   : > { %s1586_s0 = sshll.u32 %s2298_s11, 6  ;;  %p523_p1 = scmp.lt.s32.totalorder %s522_s1, 1 }
  0x25   : > { %s2099_s13 = scalar_lea.vmem %s2275_s5, %s1586_s0  ;;  %s520_s0 = scalar_lea.vmem %s2276_s6, %s2300_s14 }
  0x26   : > { %v1611_v14 = vld [vmem:[%s2099_s13 + $0x38] sm:$0xff]  ;;  %v1610_v15 = vld [vmem:[%s2099_s13 + $0x30] sm:$0xff]  ;;  %v1609_v16 = vld [vmem:[%s2099_s13 + $0x28] sm:$0xff]  ;;  %s2302_s1 = smov (!%p523_p1, %s522_s1), 1  ;;  %p530_p2 = scmp.lt.s32.totalorder %s529_s16, 1 }
  0x27   : > { %760 = vmatpush.bf16.msra.mxu0 %v1600_v3  ;;  %1757 = vmatpush.bf16.msra.mxu3 %v1600_v3  ;;  %v1608_v17 = vld [vmem:[%s2099_s13 + $0x20] sm:$0xff]  ;;  %v1607_v19 = vld [vmem:[%s2099_s13 + $0x18] sm:$0xff]  ;;  %v1606_v21 = vld [vmem:[%s2099_s13 + $0x10] sm:$0xff]  ;;  %v1632_v3 = vunpack.c.h.bf16 %v1734_v62 }
  0x28   : > { %933 = vmatpush.bf16.msra.mxu1 %v1611_v14  ;;  %v1605_v22 = vld [vmem:[%s2099_s13 + $0x8] sm:$0xff]  ;;  %v1604_v23 = vld [vmem:[%s2099_s13] sm:$0xff]  ;;  %s2285_s13 = scalar_lea.vmem %s2274_s4, %s2294_s12  ;;  %s1587_s12 = sshll.u32 %s2302_s1, 6 }
  0x29   : > { %v2130_v27 = vld [vmem:[%s2285_s13] ss:$0 sm:$0xff]  ;;  %s2153_s11 = scalar_lea.vmem %s2277_s7, %s1587_s12  ;;  %s2304_s16 = smov (!%p530_p2, %s529_s16), 1 }
  0x2a   : > { %v581_v30 = vmul.f32 %v2130_v27, %v1623_v26  ;;  %v582_v31 = vmul.f32 %v2130_v27, %v1624_v28  ;;  %v593_v38 = vmul.f32 %v2130_v27, %v1647_v32  ;;  %v594_v40 = vmul.f32 %v2130_v27, %v1648_v34  ;;  %v1617_v28 = vld [vmem:[%s2153_s11 + $0x28] sm:$0xff]  ;;  %s532_s13 = scalar_lea.vmem %s2278_s8, %s2304_s16  ;;  %s2201_s16 = scalar_lea.vmem [#allocation5], %s1442_s15 }
  0x2b   : > { %761 = vmatpush.bf16.msra.mxu0 %v1599_v4  ;;  %1758 = vmatpush.bf16.msra.mxu3 %v1599_v4  ;;  %v583_v50 = vmul.f32 %v2130_v27, %v1627_v46  ;;  %v584_v51 = vmul.f32 %v2130_v27, %v1628_v47  ;;  %v595_v58 = vmul.f32 %v2130_v27, %v1651_v52  ;;  %v1615_v46 = vld [vmem:[%s2153_s11 + $0x18] sm:$0xff]  ;;  %v1614_v47 = vld [vmem:[%s2153_s11 + $0x10] sm:$0xff]  ;;  %s1257_s14 = sshll.u32 %s2201_s16, 4  ;;  %s1258_s14 = int_to_ptr.vmem [resolvable:$true] %s1257_s14 }
  0x2c   : > { %934 = vmatpush.bf16.msra.mxu1 %v1610_v15  ;;  %v596_v60 = vmul.f32 %v2130_v27, %v1652_v54 }
  0x2f   : > { %762 = vmatpush.bf16.msra.mxu0 %v1598_v5  ;;  %1759 = vmatpush.bf16.msra.mxu3 %v1598_v5  ;;  %v585_v5 = vmul.f32 %v2130_v27, %v1631_v2 }
  0x30   : > { %935 = vmatpush.bf16.msra.mxu1 %v1609_v16 }
  0x33   : > { %763 = vmatpush.bf16.msra.mxu0 %v1597_v6  ;;  %1760 = vmatpush.bf16.msra.mxu3 %v1597_v6  ;;  %v586_v6 = vmul.f32 %v2130_v27, %v1632_v3 }
  0x34   : > { %936 = vmatpush.bf16.msra.mxu1 %v1608_v17 }
  0x37   : > { %764 = vmatpush.bf16.msra.mxu0 %v1596_v7  ;;  %1761 = vmatpush.bf16.msra.mxu3 %v1596_v7 }
  0x38   : > { %937 = vmatpush.bf16.msra.mxu1 %v1607_v19 }
  0x3a   : > { %765 = vmatmul.bf16.vlgmr.msra.gmra.mxu0 %v1588_v8  ;;  %795 = vmatmul.bf16.vlgmr.msra.gmra.mxu3 %v1594_v9 }
  0x3b   : > { %1762 = vmatpush.bf16.msrb.mxu3 %v1611_v14 }
  0x3c   : > { %938 = vmatpush.bf16.msra.mxu1 %v1606_v21 }
  0x3f   : > { %1763 = vmatpush.bf16.msrb.mxu3 %v1610_v15 }
  0x40   : > { %939 = vmatpush.bf16.msra.mxu1 %v1605_v22 }
  0x43   : > { %1764 = vmatpush.bf16.msrb.mxu3 %v1609_v16 }
  0x44   : > { %940 = vmatpush.bf16.msra.mxu1 %v1604_v23 }
  0x47   : > { %1765 = vmatpush.bf16.msrb.mxu3 %v1608_v17 }
  0x4a   : > { %770 = vmatmul.bf16.gmra.mxu0 %v1589_v10  ;;  %800 = vmatmul.bf16.gmra.mxu3 %v1595_v11  ;;  %v1735_v11 = vld [vmem:[%s2122_s27 + $0x18] sm:$0xff]  }
  0x4b   : > { %1766 = vmatpush.bf16.msrb.mxu3 %v1607_v19  ;;  %v1636_v14 = vunpack.c.h.bf16 %v1735_v11 }
  0x4d   : > { %v588_v16 = vmul.f32 %v2130_v27, %v1636_v14 }
  0x4f   : > { %1767 = vmatpush.bf16.msrb.mxu3 %v1606_v21  ;;  %v1619_v21 = vld [vmem:[%s2153_s11 + $0x38] sm:$0xff] }
  0x50   : > { %1074 = vmatpush.bf16.msra.mxu2 %v1619_v21 }
  0x53   : > { %1768 = vmatpush.bf16.msrb.mxu3 %v1605_v22  ;;  %v1736_v22 = vld [vmem:[%s2122_s27 + $0x20] sm:$0xff]  }
  0x54   : > { %v1640_v26 = vunpack.c.h.bf16 %v1736_v22 }
  0x57   : > { %1769 = vmatpush.bf16.msrb.mxu3 %v1604_v23  ;;  %v1618_v23 = vld [vmem:[%s2153_s11 + $0x30] sm:$0xff] }
  0x58   : > { %1075 = vmatpush.bf16.msra.mxu2 %v1618_v23 }
  0x5a   : > { %775 = vmatmul.bf16.gmra.mxu0 %v1590_v12 }
  0x5b   : > { %1770 = vmatpush.bf16.msra.mxu3 %v1619_v21 }
  0x5c   : > { %1076 = vmatpush.bf16.msra.mxu2 %v1617_v28 }
  0x5f   : > { %1771 = vmatpush.bf16.msra.mxu3 %v1618_v23 }
  0x63   : > { %1772 = vmatpush.bf16.msra.mxu3 %v1617_v28 }
  0x6a   : > { %780 = vmatmul.bf16.gmra.mxu0 %v1591_v13  ;;  %v1635_v13 = vunpack.c.l.bf16 %v1735_v11 }
  0x6c   : > { %v587_v15 = vmul.f32 %v2130_v27, %v1635_v13 }
  0x7a   : > { %785 = vmatmul.bf16.gmra.mxu0 %v1592_v18 }
  0x8a   : > { %790 = vmatmul.bf16.gmra.mxu0 %v1593_v20 }
  0xb7   : > { %v766_v25 = vpop.f32.mrf.mxu0 }
  0xb8   : > { %v806_v36 = vadd.f32 %v766_v25, %v581_v30  ;;  %v1639_v25 = vunpack.c.l.bf16 %v1736_v22  ;;  %v590_v30 = vmul.f32 %v2130_v27, %v1640_v26 }
  0xba   : > { %v589_v29 = vmul.f32 %v2130_v27, %v1639_v25 }
  0xbd   : > { %v796_v33 = vpop.f32.mrf.mxu3 }
  0xbe   : > { %v818_v41 = vadd.f32 %v796_v33, %v593_v38 }
  0xbf   : > { %v768_v35 = vpop.f32.mrf.mxu0 }
  0xc0   : > { %v807_v37 = vadd.f32 %v768_v35, %v582_v31  ;;  %v1616_v31 = vld [vmem:[%s2153_s11 + $0x20] sm:$0xff] }
  0xc1   : > { %1077 = vmatpush.bf16.msra.mxu2 %v1616_v31  ;;  %1773 = vmatpush.bf16.msra.mxu3 %v1616_v31 }
  0xc2   : > { %v857_v39 = vpack.c.bf16 %v807_v37, %v806_v36  ;;  %v1737_v36 = vld [vmem:[%s2122_s27 + $0x28] sm:$0xff]   ;;  %s2197_s27 = scalar_lea.vmem %s2279_s9, %s2078_s25  ;;  %s1620_s25 = sshll.u32 %s1923_s20, 6 }
  0xc3   : > { %v1643_v38 = vunpack.c.l.bf16 %v1737_v36  ;;  %s1256_s12 = scalar_lea.hbm %s2280_s10, %s1620_s25  ;;  %s1241_s20 = scalar_lea.sflag [#allocation6], %s481_s30 }
  0xc4   : > { %941 = vmatmul.bf16.vlgmr.msra.gmra.mxu1 %v857_v39  ;;  %v1644_v39 = vunpack.c.h.bf16 %v1737_v36 }
  0xc5   : > { %v798_v43 = vpop.f32.mrf.mxu3  ;;  %1078 = vmatpush.bf16.msra.mxu2 %v1615_v46  ;;  %1774 = vmatpush.bf16.msra.mxu3 %v1615_v46 }
  0xc6   : > { %v819_v44 = vadd.f32 %v798_v43, %v594_v40  ;;  %v591_v40 = vmul.f32 %v2130_v27, %v1643_v38 }
  0xc7   : > { %v771_v45 = vpop.f32.mrf.mxu0 }
  0xc8   : > { %v863_v48 = vpack.c.bf16 %v819_v44, %v818_v41  ;;  %v808_v56 = vadd.f32 %v771_v45, %v583_v50  ;;  %v592_v41 = vmul.f32 %v2130_v27, %v1644_v39  ;;  %v1612_v27 = vld [vmem:[%s2153_s11] sm:$0xff] }
  0xc9   : > { %1079 = vmatpush.bf16.msra.mxu2 %v1614_v47  ;;  %1775 = vmatpush.bf16.msra.mxu3 %v1614_v47  ;;  %v1837_v50 = vld [vmem:[%s520_s0] ss:$0 sm:$0xff]  ;;  %s1259_s0 = sshll.u32 %s1256_s12, 4  ;;  %s1260_s0 = int_to_ptr.hbm [resolvable:$true] %s1259_s0 }
  0xca   : > { %971 = vmatmul.bf16.vlgmr.msrb.gmra.mxu3 %v863_v48  ;;  %v1613_v48 = vld [vmem:[%s2153_s11 + $0x8] sm:$0xff]  ;;  %s1865_s15 = sshra.s32 %s1260_s0, 4  ;;  %s1866_s15 = int_to_ptr.hbm [resolvable:$true] %s1865_s15 }
  0xcb   : > { %s1867_s11 = scalar_lea.hbm %s1866_s15, 64  ;;  %p1872_p7 = scmp.lt.s32.totalorder %s1866_s15, %s2280_s10 }
  0xcc   : > { %p1868_p3 = scmp.ne.s32.totalorder %s1866_s15, %s1867_s11 }
  0xcd   : > { %v801_v53 = vpop.f32.mrf.mxu3  ;;  %1080 = vmatpush.bf16.msra.mxu2 %v1613_v48  ;;  %1776 = vmatpush.bf16.msra.mxu3 %v1613_v48 }
  0xce   : > { %v820_v61 = vadd.f32 %v801_v53, %v595_v58  ;;  %p1869_p5 = pnand %p1868_p3, %p2034_p4 }
  0xcf   : > { %v773_v55 = vpop.f32.mrf.mxu0 }
  0xd0   : > { %v809_v57 = vadd.f32 %v773_v55, %v584_v51  ;;  %p1870_p6 = pneg %p1869_p5 }
  0xd1   : > { %1081 = vmatpush.bf16.msra.mxu2 %v1612_v27  ;;  %1777 = vmatpush.bf16.msra.mxu3 %v1612_v27 }
  0xd2   : > { %v858_v59 = vpack.c.bf16 %v809_v57, %v808_v56 }
  0xd4   : > { %946 = vmatmul.bf16.gmra.mxu1 %v858_v59 }
  0xd5   : > { %v803_v63 = vpop.f32.mrf.mxu3 }
  0xd6   : > { %v821_v0 = vadd.f32 %v803_v63, %v596_v60 }
  0xd7   : > { %v776_v1 = vpop.f32.mrf.mxu0 }
  0xd8   : > { %v864_v4 = vpack.c.bf16 %v821_v0, %v820_v61  ;;  %v810_v8 = vadd.f32 %v776_v1, %v585_v5 }
  0xda   : > { %976 = vmatmul.bf16.gmra.mxu3 %v864_v4 }
  0xdf   : > { %v778_v7 = vpop.f32.mrf.mxu0 }
  0xe0   : > { %v811_v9 = vadd.f32 %v778_v7, %v586_v6 }
  0xe2   : > { %v859_v10 = vpack.c.bf16 %v811_v9, %v810_v8 }
  0xe4   : > { %951 = vmatmul.bf16.gmra.mxu1 %v859_v10 }
  0xe7   : > { %v781_v12 = vpop.f32.mrf.mxu0 }
  0xe8   : > { %v812_v18 = vadd.f32 %v781_v12, %v587_v15 }
  0xef   : > { %v783_v17 = vpop.f32.mrf.mxu0 }
  0xf0   : > { %v813_v19 = vadd.f32 %v783_v17, %v588_v16 }
  0xf2   : > { %v860_v20 = vpack.c.bf16 %v813_v19, %v812_v18 }
  0xf4   : > { %956 = vmatmul.bf16.gmra.mxu1 %v860_v20 }
  0xf7   : > { %v786_v24 = vpop.f32.mrf.mxu0 }
  0xf8   : > { %v814_v33 = vadd.f32 %v786_v24, %v589_v29 }
  0xff   : > { %v788_v32 = vpop.f32.mrf.mxu0 }
 0x100   : > { %v815_v34 = vadd.f32 %v788_v32, %v590_v30 }
 0x102   : > { %v861_v35 = vpack.c.bf16 %v815_v34, %v814_v33 }
 0x104   : > { %961 = vmatmul.bf16.gmra.mxu1 %v861_v35 }
 0x107   : > { %v791_v37 = vpop.f32.mrf.mxu0 }
 0x108   : > { %v816_v43 = vadd.f32 %v791_v37, %v591_v40 }
 0x10f   : > { %v793_v42 = vpop.f32.mrf.mxu0 }
 0x110   : > { %v817_v44 = vadd.f32 %v793_v42, %v592_v41 }
 0x112   : > { %v862_v45 = vpack.c.bf16 %v817_v44, %v816_v43  ;;  %v2186_v44 = vld [vmem:[%s532_s13] ss:$0 sm:$0xff]  ;;  %s1871_s13 = scalar_lea.hbm %s2280_s10, 128 }
 0x113   : > { %p1873_p9 = scmp.lt.s32.totalorder %s1871_s13, %s1867_s11 }
 0x114   : > { %966 = vmatmul.bf16.gmra.mxu1 %v862_v45 }
 0x115   : > { %p1874_p10 = por %p1873_p9, %p1872_p7 }
 0x117   : > { %p1875_p11 = pnand %p1874_p10, %p1870_p6 }
 0x141   : > { %v942_v49 = vpop.f32.mrf.mxu1 }
 0x142   : > { %v943_v51 = vadd.f32 %v1837_v50, %v942_v49 }
 0x144   : > { %v982_v54 = vmax.f32 %v943_v51, 0.0 }
 0x149   : > { %v944_v52 = vpop.f32.mrf.mxu1 }
 0x14a   : > { %v945_v53 = vadd.f32 %v1837_v50, %v944_v52 }
 0x14c   : > { %v983_v55 = vmax.f32 %v945_v53, 0.0 }
 0x14d   : > { %v972_v56 = vpop.f32.mrf.mxu3 }
 0x14e   : > { %v998_v57 = vpack.c.bf16 %v983_v55, %v982_v54  ;;  %v973_v59 = vadd.f32 %v1837_v50, %v972_v56 }
 0x150   : > { %1082 = vmatmul.bf16.vlgmr.msra.gmra.mxu2 %v998_v57  ;;  %v994_v61 = vmax.f32 %v973_v59, 0.0 }
 0x151   : > { %v947_v58 = vpop.f32.mrf.mxu1 }
 0x152   : > { %v948_v63 = vadd.f32 %v1837_v50, %v947_v58 }
 0x154   : > { %v984_v4 = vmax.f32 %v948_v63, 0.0 }
 0x155   : > { %v974_v60 = vpop.f32.mrf.mxu3 }
 0x156   : > { %v975_v62 = vadd.f32 %v1837_v50, %v974_v60 }
 0x158   : > { %v995_v0 = vmax.f32 %v975_v62, 0.0 }
 0x159   : > { %v949_v1 = vpop.f32.mrf.mxu1 }
 0x15a   : > { %v950_v2 = vadd.f32 %v1837_v50, %v949_v1  ;;  %v1004_v3 = vpack.c.bf16 %v995_v0, %v994_v61 }
 0x15c   : > { %v985_v5 = vmax.f32 %v950_v2, 0.0  ;;  %1112 = vmatmul.bf16.vlgmr.msra.gmra.mxu3 %v1004_v3 }
 0x15d   : > { %v977_v6 = vpop.f32.mrf.mxu3 }
 0x15e   : > { %v999_v7 = vpack.c.bf16 %v985_v5, %v984_v4  ;;  %v978_v9 = vadd.f32 %v1837_v50, %v977_v6 }
 0x160   : > { %1087 = vmatmul.bf16.gmra.mxu2 %v999_v7  ;;  %v996_v11 = vmax.f32 %v978_v9, 0.0 }
 0x161   : > { %v952_v8 = vpop.f32.mrf.mxu1 }
 0x162   : > { %v953_v13 = vadd.f32 %v1837_v50, %v952_v8 }
 0x164   : > { %v986_v18 = vmax.f32 %v953_v13, 0.0 }
 0x165   : > { %v979_v10 = vpop.f32.mrf.mxu3 }
 0x166   : > { %v980_v12 = vadd.f32 %v1837_v50, %v979_v10 }
 0x168   : > { %v997_v14 = vmax.f32 %v980_v12, 0.0 }
 0x169   : > { %v954_v15 = vpop.f32.mrf.mxu1 }
 0x16a   : > { %v955_v16 = vadd.f32 %v1837_v50, %v954_v15  ;;  %v1005_v17 = vpack.c.bf16 %v997_v14, %v996_v11 }
 0x16c   : > { %v987_v19 = vmax.f32 %v955_v16, 0.0  ;;  %1117 = vmatmul.bf16.gmra.mxu3 %v1005_v17 }
 0x16e   : > { %v1000_v20 = vpack.c.bf16 %v987_v19, %v986_v18 }
 0x170   : > { %1092 = vmatmul.bf16.gmra.mxu2 %v1000_v20 }
 0x171   : > { %v957_v21 = vpop.f32.mrf.mxu1 }
 0x172   : > { %v958_v22 = vadd.f32 %v1837_v50, %v957_v21 }
 0x174   : > { %v988_v25 = vmax.f32 %v958_v22, 0.0 }
 0x179   : > { %v959_v23 = vpop.f32.mrf.mxu1 }
 0x17a   : > { %v960_v24 = vadd.f32 %v1837_v50, %v959_v23 }
 0x17c   : > { %v989_v26 = vmax.f32 %v960_v24, 0.0 }
 0x17e   : > { %v1001_v28 = vpack.c.bf16 %v989_v26, %v988_v25 }
 0x180   : > { %1097 = vmatmul.bf16.gmra.mxu2 %v1001_v28 }
 0x181   : > { %v962_v29 = vpop.f32.mrf.mxu1 }
 0x182   : > { %v963_v30 = vadd.f32 %v1837_v50, %v962_v29 }
 0x184   : > { %v990_v33 = vmax.f32 %v963_v30, 0.0 }
 0x189   : > { %v964_v31 = vpop.f32.mrf.mxu1 }
 0x18a   : > { %v965_v32 = vadd.f32 %v1837_v50, %v964_v31 }
 0x18c   : > { %v991_v34 = vmax.f32 %v965_v32, 0.0 }
 0x18e   : > { %v1002_v35 = vpack.c.bf16 %v991_v34, %v990_v33 }
 0x190   : > { %1102 = vmatmul.bf16.gmra.mxu2 %v1002_v35 }
 0x191   : > { %v967_v36 = vpop.f32.mrf.mxu1 }
 0x192   : > { %v968_v37 = vadd.f32 %v1837_v50, %v967_v36 }
 0x194   : > { %v992_v40 = vmax.f32 %v968_v37, 0.0 }
 0x199   : > { %v969_v38 = vpop.f32.mrf.mxu1 }
 0x19a   : > { %v970_v39 = vadd.f32 %v1837_v50, %v969_v38 }
 0x19c   : > { %v993_v41 = vmax.f32 %v970_v39, 0.0 }
 0x19e   : > { %v1003_v42 = vpack.c.bf16 %v993_v41, %v992_v40 }
 0x1a0   : > { %1107 = vmatmul.bf16.gmra.mxu2 %v1003_v42 }
 0x1d3   : > { %v1083_v43 = vpop.f32.mrf.mxu2 }
 0x1d4   : > { %v1084_v45 = vadd.f32 %v2186_v44, %v1083_v43 }
 0x1d6   : > { %v1171_v47 = vmul.f32 0.01, %v1084_v45  ;;  %vm1155_vm0 = vcmp.ge.f32.partialorder %v1084_v45, 0.0 }
 0x1d8   : > { %v1187_v51 = vsel %vm1155_vm0, %v1084_v45, %v1171_v47 }
 0x1db   : > { %v1085_v46 = vpop.f32.mrf.mxu2 }
 0x1dc   : > { %v1086_v48 = vadd.f32 %v2186_v44, %v1085_v46 }
 0x1de   : > { %v1656_v27 = vpack.c.bf16 %v1086_v48, %v1084_v45  ;;  %vm1156_vm1 = vcmp.ge.f32.partialorder %v1086_v48, 0.0  ;;  %v1172_v49 = vmul.f32 0.01, %v1086_v48 }
 0x1df   : > { %v1113_v50 = vpop.f32.mrf.mxu3 }
 0x1e0   : > { %1657 = vst [vmem:[%s2197_s27] sm:$0xff] %v1656_v27   ;;  %v1188_v52 = vsel %vm1156_vm1, %v1086_v48, %v1172_v49  ;;  %v1114_v54 = vadd.f32 %v2186_v44, %v1113_v50 }
 0x1e1   : > { %v1696_v53 = vpack.c.bf16 %v1188_v52, %v1187_v51 }
 0x1e2   : > { %v1183_v56 = vmul.f32 0.01, %v1114_v54  ;;  %vm1167_vm2 = vcmp.ge.f32.partialorder %v1114_v54, 0.0 }
 0x1e3   : > { %1697 = vst [vmem:[%s2201_s16] sm:$0xff] %v1696_v53   ;;  %v1088_v55 = vpop.f32.mrf.mxu2 }
 0x1e4   : > { %v1089_v58 = vadd.f32 %v2186_v44, %v1088_v55  ;;  %v1199_v60 = vsel %vm1167_vm2, %v1114_v54, %v1183_v56 }
 0x1e6   : > { %v1173_v0 = vmul.f32 0.01, %v1089_v58  ;;  %vm1157_vm4 = vcmp.ge.f32.partialorder %v1089_v58, 0.0 }
 0x1e7   : > { %v1115_v57 = vpop.f32.mrf.mxu3 }
 0x1e8   : > { %v1116_v59 = vadd.f32 %v2186_v44, %v1115_v57  ;;  %v1189_v7 = vsel %vm1157_vm4, %v1089_v58, %v1173_v0 }
 0x1ea   : > { %v1686_v61 = vpack.c.bf16 %v1116_v59, %v1114_v54  ;;  %vm1168_vm3 = vcmp.ge.f32.partialorder %v1116_v59, 0.0  ;;  %v1184_v62 = vmul.f32 0.01, %v1116_v59 }
 0x1eb   : > { %v1090_v63 = vpop.f32.mrf.mxu2 }
 0x1ec   : > { %v1091_v1 = vadd.f32 %v2186_v44, %v1090_v63  ;;  %1745 = vst [vmem:[%s2197_s27 + $0x30] sm:$0xff] %v1686_v61   ;;  %v1200_v2 = vsel %vm1168_vm3, %v1116_v59, %v1184_v62 }
 0x1ed   : > { %v1726_v3 = vpack.c.bf16 %v1200_v2, %v1199_v60 }
 0x1ee   : > { %v1661_v4 = vpack.c.bf16 %v1091_v1, %v1089_v58  ;;  %vm1158_vm5 = vcmp.ge.f32.partialorder %v1091_v1, 0.0  ;;  %v1174_v5 = vmul.f32 0.01, %v1091_v1 }
 0x1ef   : > { %1752 = vst [vmem:[%s2201_s16 + $0x30] sm:$0xff] %v1726_v3   ;;  %v1118_v6 = vpop.f32.mrf.mxu3 }
 0x1f0   : > { %1740 = vst [vmem:[%s2197_s27 + $0x8] sm:$0xff] %v1661_v4   ;;  %v1190_v8 = vsel %vm1158_vm5, %v1091_v1, %v1174_v5  ;;  %v1119_v10 = vadd.f32 %v2186_v44, %v1118_v6 }
 0x1f1   : > { %v1701_v9 = vpack.c.bf16 %v1190_v8, %v1189_v7 }
 0x1f2   : > { %v1185_v12 = vmul.f32 0.01, %v1119_v10  ;;  %vm1169_vm6 = vcmp.ge.f32.partialorder %v1119_v10, 0.0 }
 0x1f3   : > { %1747 = vst [vmem:[%s2201_s16 + $0x8] sm:$0xff] %v1701_v9   ;;  %v1093_v11 = vpop.f32.mrf.mxu2 }
 0x1f4   : > { %v1094_v14 = vadd.f32 %v2186_v44, %v1093_v11  ;;  %v1201_v16 = vsel %vm1169_vm6, %v1119_v10, %v1185_v12 }
 0x1f6   : > { %v1175_v20 = vmul.f32 0.01, %v1094_v14  ;;  %vm1159_vm8 = vcmp.ge.f32.partialorder %v1094_v14, 0.0 }
 0x1f7   : > { %v1120_v13 = vpop.f32.mrf.mxu3 }
 0x1f8   : > { %v1121_v15 = vadd.f32 %v2186_v44, %v1120_v13  ;;  %v1191_v26 = vsel %vm1159_vm8, %v1094_v14, %v1175_v20 }
 0x1fa   : > { %v1691_v17 = vpack.c.bf16 %v1121_v15, %v1119_v10  ;;  %vm1170_vm7 = vcmp.ge.f32.partialorder %v1121_v15, 0.0  ;;  %v1186_v18 = vmul.f32 0.01, %v1121_v15 }
 0x1fb   : > { %v1095_v19 = vpop.f32.mrf.mxu2 }
 0x1fc   : > { %v1096_v21 = vadd.f32 %v2186_v44, %v1095_v19  ;;  %1746 = vst [vmem:[%s2197_s27 + $0x38] sm:$0xff] %v1691_v17   ;;  %v1202_v22 = vsel %vm1170_vm7, %v1121_v15, %v1186_v18 }
 0x1fd   : > { %v1731_v23 = vpack.c.bf16 %v1202_v22, %v1201_v16 }
 0x1fe   : > { %v1666_v24 = vpack.c.bf16 %v1096_v21, %v1094_v14  ;;  %vm1160_vm9 = vcmp.ge.f32.partialorder %v1096_v21, 0.0  ;;  %v1176_v25 = vmul.f32 0.01, %v1096_v21 }
 0x1ff   : > { %1753 = vst [vmem:[%s2201_s16 + $0x38] sm:$0xff] %v1731_v23  }
 0x200   : > { %1741 = vst [vmem:[%s2197_s27 + $0x10] sm:$0xff] %v1666_v24   ;;  %v1192_v28 = vsel %vm1160_vm9, %v1096_v21, %v1176_v25 }
 0x201   : > { %v1706_v29 = vpack.c.bf16 %v1192_v28, %v1191_v26 }
 0x203   : > { %1748 = vst [vmem:[%s2201_s16 + $0x10] sm:$0xff] %v1706_v29   ;;  %v1098_v30 = vpop.f32.mrf.mxu2 }
 0x204   : > { %v1099_v31 = vadd.f32 %v2186_v44, %v1098_v30 }
 0x206   : > { %v1177_v33 = vmul.f32 0.01, %v1099_v31  ;;  %vm1161_vm10 = vcmp.ge.f32.partialorder %v1099_v31, 0.0 }
 0x208   : > { %v1193_v37 = vsel %vm1161_vm10, %v1099_v31, %v1177_v33 }
 0x20b   : > { %v1100_v32 = vpop.f32.mrf.mxu2 }
 0x20c   : > { %v1101_v34 = vadd.f32 %v2186_v44, %v1100_v32 }
 0x20e   : > { %v1671_v35 = vpack.c.bf16 %v1101_v34, %v1099_v31  ;;  %vm1162_vm11 = vcmp.ge.f32.partialorder %v1101_v34, 0.0  ;;  %v1178_v36 = vmul.f32 0.01, %v1101_v34 }
 0x210   : > { %1742 = vst [vmem:[%s2197_s27 + $0x18] sm:$0xff] %v1671_v35   ;;  %v1194_v38 = vsel %vm1162_vm11, %v1101_v34, %v1178_v36 }
 0x211   : > { %v1711_v39 = vpack.c.bf16 %v1194_v38, %v1193_v37 }
 0x213   : > { %1749 = vst [vmem:[%s2201_s16 + $0x18] sm:$0xff] %v1711_v39   ;;  %v1103_v40 = vpop.f32.mrf.mxu2 }
 0x214   : > { %v1104_v41 = vadd.f32 %v2186_v44, %v1103_v40 }
 0x216   : > { %v1179_v43 = vmul.f32 0.01, %v1104_v41  ;;  %vm1163_vm12 = vcmp.ge.f32.partialorder %v1104_v41, 0.0 }
 0x218   : > { %v1195_v48 = vsel %vm1163_vm12, %v1104_v41, %v1179_v43 }
 0x21b   : > { %v1105_v42 = vpop.f32.mrf.mxu2 }
 0x21c   : > { %v1106_v45 = vadd.f32 %v2186_v44, %v1105_v42 }
 0x21e   : > { %v1676_v46 = vpack.c.bf16 %v1106_v45, %v1104_v41  ;;  %vm1164_vm13 = vcmp.ge.f32.partialorder %v1106_v45, 0.0  ;;  %v1180_v47 = vmul.f32 0.01, %v1106_v45 }
 0x220   : > { %1743 = vst [vmem:[%s2197_s27 + $0x20] sm:$0xff] %v1676_v46   ;;  %v1196_v27 = vsel %vm1164_vm13, %v1106_v45, %v1180_v47 }
 0x221   : > { %v1716_v49 = vpack.c.bf16 %v1196_v27, %v1195_v48 }
 0x223   : > { %1750 = vst [vmem:[%s2201_s16 + $0x20] sm:$0xff] %v1716_v49   ;;  %v1108_v50 = vpop.f32.mrf.mxu2 }
 0x224   : > { %v1109_v51 = vadd.f32 %v2186_v44, %v1108_v50 }
 0x226   : > { %v1181_v53 = vmul.f32 0.01, %v1109_v51  ;;  %vm1165_vm14 = vcmp.ge.f32.partialorder %v1109_v51, 0.0 }
 0x228   : > { %v1197_v57 = vsel %vm1165_vm14, %v1109_v51, %v1181_v53 }
 0x22b   : > { %v1110_v52 = vpop.f32.mrf.mxu2 }
 0x22c   : > { %v1111_v54 = vadd.f32 %v2186_v44, %v1110_v52 }
 0x22e   : > { %v1681_v55 = vpack.c.bf16 %v1111_v54, %v1109_v51  ;;  %vm1166_vm15 = vcmp.ge.f32.partialorder %v1111_v54, 0.0  ;;  %v1182_v56 = vmul.f32 0.01, %v1111_v54 }
 0x230   : > { %1744 = vst [vmem:[%s2197_s27 + $0x28] sm:$0xff] %v1681_v55   ;;  %v1198_v58 = vsel %vm1166_vm15, %v1111_v54, %v1182_v56 }
 0x231   : > { %v1721_v59 = vpack.c.bf16 %v1198_v58, %v1197_v57 }
 0x233   : > { %1751 = vst [vmem:[%s2201_s16 + $0x28] sm:$0xff] %v1721_v59  }
 0x234   : > { %1878 = shalt.err (!%p1875_p11)
}
 0x235   : > { %s1934_s30 = smov 64   ;;  %s1935_s16 = smov 4  }
 0x236   : > { %1778 = dma.vmem_to_hbm [thread:$0]  (%p2034_p4), %s1258_s14, 1024, %s1260_s0, %s1241_s20, %s1934_s30, %s1934_s30, %s1935_s16  }
 0x237 PF: > { %p1784_p12 = scmp.ge.s32.totalorder %s1931_s22, 2  ;;  %s1282_s12 = sand.u32 1, %s1911_s17  }
 0x238   : > { %s1283_s23 = scalar_lea.sflag [#allocation6], %s1282_s12 }
 0x239   : > { %p1781_p13 = pnand %p1784_p12, %p2041_p8 }
 0x23b   : > { %p1782_p0 = pneg %p1781_p13 }
 0x23d   : > { %1906 = dma.done.wait (%p1782_p0), %s1283_s23, 1024  }
 0x23e   : > { %1908 = vsyncadd (%p1782_p0), %s1283_s23, 4294966272  ;;  %s32_s22 = sadd.s32 1, %s1931_s22   ;;  %s2286_s17 = smov %s1915_s18 }
 0x23f   : > { %p29_p1 = scmp.ge.s32.totalorder %s32_s22, 4   ;;  %s2287_s18 = smov %s1919_s19 }
 0x240   : > { %s2288_s19 = smov %s2047_s29  ;;  %s2289_s20 = smov %s1927_s21 }
 0x241   : > { %s2290_s21 = smov %s2292_s24  ;;  %31 = sbr.rel (!%p29_p1) target bundleno = 10 (0xa), region = 128 }
 0x246   :  { %1289 = vsyncpa [#allocation6], 1 }
 0x247   :  { %1291 = vsyncpa [#allocation6 + $0x1], 1 }

// kernel: hgin_forward.7
= control target key start
LH: loop header
LB: loop body
LE: loop exit
PB: predicated region body
PF: predicated region fallthrough
CT: control target
= control target key end

     0   :  { %s2693_s0 = inlined_call_operand.vmem [shape: bf16[128,256], index: 0, kind: input, shape index: {}]   ;;  %s2694_s1 = inlined_call_operand.vmem [shape: bf16[256,128], index: 1, kind: input, shape index: {}]   ;;  %s2695_s2 = inlined_call_operand.vmem [shape: bf16[128,128], index: 2, kind: input, shape index: {}]   ;;  %s2696_s3 = inlined_call_operand.vmem [shape: f32[1,128], index: 3, kind: input, shape index: {}]   ;;  %s2697_s4 = inlined_call_operand.vmem [shape: bf16[128,128], index: 4, kind: input, shape index: {}]   ;;  %s2698_s5 = inlined_call_operand.vmem [shape: f32[1,128], index: 5, kind: input, shape index: {}]   ;;  %s2699_s6 = inlined_call_operand.vmem [shape: bf16[128,128], index: 6, kind: input, shape index: {}]   ;;  %s2700_s7 = inlined_call_operand.vmem [shape: f32[1,128], index: 7, kind: input, shape index: {}]   ;;  %s2701_s8 = inlined_call_operand.vmem [shape: bf16[128,128], index: 8, kind: input, shape index: {}]   ;;  %s2702_s9 = inlined_call_operand.vmem [shape: f32[1,128], index: 9, kind: input, shape index: {}]   ;;  %s2703_s10 = inlined_call_operand.vmem [shape: bf16[128,128], index: 10, kind: input, shape index: {}]   ;;  %s2704_s11 = inlined_call_operand.vmem [shape: f32[1,128], index: 11, kind: input, shape index: {}]   ;;  %s2705_s12 = inlined_call_operand.hbm [shape: bf16[128,128], index: 12, kind: output, shape index: {0}]   ;;  %s2706_s13 = inlined_call_operand.hbm [shape: f32[128,128], index: 13, kind: output, shape index: {1}]  }
   0x1   :  { %2707 = sst [smem:[#allocation10_spill]] %s2693_s0 }
   0x2   :  { %19 = vsyncpa [#allocation5], 0 }
   0x3   :  { %20 = vsyncpa [#allocation7], 0  ;;  %s2356_s25 = smov 0   ;;  %s2358_s26 = smov 0  }
   0x4   :  { %s2360_s27 = smov 0   ;;  %s2362_s28 = smov 0  }
   0x5   :  { %s2364_s29 = smov 0  }
   0x6 LB: > { %s1742_s30 = sadd.s32 4294967295, %s2277_s29   ;;  %s35_s14 = sadd.s32 1, %s2273_s28  ;;  %s2277_s29 = sphi %s2364_s29, %s26_s29   ;;  %s2273_s28 = sphi %s2362_s28, %s2713_s28   ;;  %s2269_s27 = sphi %s2360_s27, %s2712_s27   ;;  %s2265_s26 = sphi %s2358_s26, %s2711_s26   ;;  %s2261_s25 = sphi %s2356_s25, %s2710_s25  }
   0x7   : > { %p36_p0 = scmp.ge.s32.totalorder %s35_s14, 2  ;;  %p54_p1 = scmp.ne.s32.totalorder %s2265_s26, %s2261_s25 }
   0x8   : > { %p55_p2 = scmp.eq.s32.totalorder %s2277_s29, 0  ;;  %s47_s16 = sadd.s32 1, %s2265_s26 }
   0x9   : > { %s2715_s14 = smov (%p36_p0, %s35_s14), 0  ;;  %p1745_p5 = scmp.ge.s32.totalorder %s2277_s29, 2 }
   0xa   : > { %p56_p3 = por %p55_p2, %p54_p1  ;;  %s43_s15 = ssub.s32 %s2273_s28, %s2715_s14 }
   0xb   : > { %p45_p4 = scmp.eq.s32.totalorder %s43_s15, 0  ;;  %409 = sbr.rel (%p1745_p5) target bundleno = 42 (0x2a), region = 56 }
   0xd   : > { %s2392_s17 = scalar_select %p45_p4, %s2265_s26, %s47_s16  }
  0x10   : > { %412 = sbr.rel (!%p56_p3) target bundleno = 42 (0x2a), region = 60  ;;  %s414_s18 = sand.u32 (%p56_p3), 1, %s2265_s26  }
  0x11   : > { %s1747_s19 = sshll.u32 (%p56_p3), %s2273_s28, 2  ;;  %s1746_s20 = sshll.u32 (%p56_p3), %s414_s18, 6 }
  0x12   : > { %s2708_s0 = sld [smem:[#allocation10_spill]] (%p56_p3)  ;;  %s416_s24 = scalar_lea.vmem (%p56_p3), [#allocation3], %s1746_s20 }
  0x18   : > { %s2400_s23 = scalar_lea.vmem %s2708_s0, %s1747_s19 }
  0x19   : > { %v438_v0 = vld [vmem:[%s2400_s23] sm:$0xf]  ;;  %v440_v1 = vld [vmem:[%s2400_s23 + $0x8] sm:$0xf]  ;;  %v442_v2 = vld [vmem:[%s2400_s23 + $0x10] sm:$0xf] }
  0x1a   : > { %439 = vst [vmem:[%s416_s24] sm:$0xf] %v438_v0  ;;  %v444_v3 = vld [vmem:[%s2400_s23 + $0x18] sm:$0xf]  ;;  %v446_v4 = vld [vmem:[%s2400_s23 + $0x20] sm:$0xf] }
  0x1b   : > { %441 = vst [vmem:[%s416_s24 + $0x4] sm:$0xf] %v440_v1  ;;  %v448_v5 = vld [vmem:[%s2400_s23 + $0x28] sm:$0xf]  ;;  %v450_v6 = vld [vmem:[%s2400_s23 + $0x30] sm:$0xf] }
  0x1c   : > { %443 = vst [vmem:[%s416_s24 + $0x8] sm:$0xf] %v442_v2  ;;  %v452_v7 = vld [vmem:[%s2400_s23 + $0x38] sm:$0xf]  ;;  %v454_v8 = vld [vmem:[%s2400_s23 + $0x40] sm:$0xf] }
  0x1d   : > { %445 = vst [vmem:[%s416_s24 + $0xc] sm:$0xf] %v444_v3  ;;  %v456_v9 = vld [vmem:[%s2400_s23 + $0x48] sm:$0xf]  ;;  %v458_v10 = vld [vmem:[%s2400_s23 + $0x50] sm:$0xf] }
  0x1e   : > { %447 = vst [vmem:[%s416_s24 + $0x10] sm:$0xf] %v446_v4  ;;  %v460_v11 = vld [vmem:[%s2400_s23 + $0x58] sm:$0xf]  ;;  %v462_v12 = vld [vmem:[%s2400_s23 + $0x60] sm:$0xf] }
  0x1f   : > { %449 = vst [vmem:[%s416_s24 + $0x14] sm:$0xf] %v448_v5  ;;  %v464_v13 = vld [vmem:[%s2400_s23 + $0x68] sm:$0xf]  ;;  %v466_v14 = vld [vmem:[%s2400_s23 + $0x70] sm:$0xf] }
  0x20   : > { %451 = vst [vmem:[%s416_s24 + $0x18] sm:$0xf] %v450_v6  ;;  %v468_v15 = vld [vmem:[%s2400_s23 + $0x78] sm:$0xf] }
  0x21   : > { %453 = vst [vmem:[%s416_s24 + $0x1c] sm:$0xf] %v452_v7 }
  0x22   : > { %455 = vst [vmem:[%s416_s24 + $0x20] sm:$0xf] %v454_v8 }
  0x23   : > { %457 = vst [vmem:[%s416_s24 + $0x24] sm:$0xf] %v456_v9 }
  0x24   : > { %459 = vst [vmem:[%s416_s24 + $0x28] sm:$0xf] %v458_v10 }
  0x25   : > { %461 = vst [vmem:[%s416_s24 + $0x2c] sm:$0xf] %v460_v11 }
  0x26   : > { %463 = vst [vmem:[%s416_s24 + $0x30] sm:$0xf] %v462_v12 }
  0x27   : > { %465 = vst [vmem:[%s416_s24 + $0x34] sm:$0xf] %v464_v13 }
  0x28   : > { %467 = vst [vmem:[%s416_s24 + $0x38] sm:$0xf] %v466_v14 }
  0x29   : > { %469 = vst [vmem:[%s416_s24 + $0x3c] sm:$0xf] %v468_v15 }
  0x2a PF: > { %p1748_p6 = scmp.ge.s32.totalorder %s2277_s29, 1  ;;  %p533_p7 = scmp.lt.s32.totalorder %s2277_s29, 3 }
  0x2c   : > { %p534_p8 = pnand %p1748_p6, %p533_p7 }
  0x2d   : > { %s540_s15 = sand.u32 (!%p534_p8), 1, %s2261_s25   ;;  %s1750_s16 = sshll.u32 (!%p534_p8), %s2269_s27, 4 }
  0x2e   : > { %537 = sbr.rel (%p534_p8) target bundleno = 998 (0x3e6), region = 105  ;;  %s1749_s18 = sshll.u32 (!%p534_p8), %s540_s15, 6 }
  0x2f   : > { %p590_p9 = scmp.lt.s32.totalorder (!%p534_p8), %s1750_s16, 31  ;;  %s2427_s23 = scalar_lea.vmem (!%p534_p8), [#allocation3], %s1749_s18 }
  0x30   : > { %p1752_p10 = scmp.ne.s32.totalorder (!%p534_p8), %s2269_s27, 0 }
  0x33   : > { %s2717_s16 = smov (!%p590_p9, %s1750_s16), 31  ;;  %606 = sbr.rel (%p1752_p10) target bundleno = 73 (0x49), region = 113 }
  0x34   : > { %s1751_s19 = sshll.u32 %s2717_s16, 2 }
  0x35   : > { %s2425_s22 = scalar_lea.vmem %s2694_s1, %s1751_s19 }
  0x38   : > { %v2279_v16 = vmov 0.0  }
  0x39   : > { %607 = vst [vmem:[#allocation2 + $0x30] sm:$0xff] %v2279_v16 }
  0x3a   : > { %608 = vst [vmem:[#allocation2] sm:$0xff] %v2279_v16 }
  0x3b   : > { %609 = vst [vmem:[#allocation2 + $0x58] sm:$0xff] %v2279_v16 }
  0x3c   : > { %610 = vst [vmem:[#allocation2 + $0x18] sm:$0xff] %v2279_v16 }
  0x3d   : > { %611 = vst [vmem:[#allocation2 + $0x50] sm:$0xff] %v2279_v16 }
  0x3e   : > { %612 = vst [vmem:[#allocation2 + $0x68] sm:$0xff] %v2279_v16 }
  0x3f   : > { %613 = vst [vmem:[#allocation2 + $0x8] sm:$0xff] %v2279_v16 }
  0x40   : > { %614 = vst [vmem:[#allocation2 + $0x48] sm:$0xff] %v2279_v16 }
  0x41   : > { %615 = vst [vmem:[#allocation2 + $0x40] sm:$0xff] %v2279_v16 }
  0x42   : > { %616 = vst [vmem:[#allocation2 + $0x20] sm:$0xff] %v2279_v16 }
  0x43   : > { %617 = vst [vmem:[#allocation2 + $0x10] sm:$0xff] %v2279_v16 }
  0x44   : > { %618 = vst [vmem:[#allocation2 + $0x38] sm:$0xff] %v2279_v16 }
  0x45   : > { %619 = vst [vmem:[#allocation2 + $0x60] sm:$0xff] %v2279_v16 }
  0x46   : > { %620 = vst [vmem:[#allocation2 + $0x70] sm:$0xff] %v2279_v16 }
  0x47   : > { %621 = vst [vmem:[#allocation2 + $0x78] sm:$0xff] %v2279_v16 }
  0x48   : > { %622 = vst [vmem:[#allocation2 + $0x28] sm:$0xff] %v2279_v16 }
  0x49 PF: > { %v1999_v17 = vld [vmem:[%s2425_s22 + $0x38] sm:$0xff]  ;;  %v1998_v18 = vld [vmem:[%s2425_s22 + $0x30] sm:$0xff]  ;;  %v1997_v19 = vld [vmem:[%s2425_s22 + $0x28] sm:$0xff]  ;;  %p1817_p11 = scmp.ne.s32.totalorder %s2269_s27, 1 }
  0x4a   : > { %767 = vmatpush.bf16.msra.mxu0 %v1999_v17  ;;  %2087 = vmatpush.bf16.msra.mxu1 %v1999_v17  ;;  %v1996_v20 = vld [vmem:[%s2425_s22 + $0x20] sm:$0xff]  ;;  %v1995_v21 = vld [vmem:[%s2425_s22 + $0x18] sm:$0xff]  ;;  %v1994_v22 = vld [vmem:[%s2425_s22 + $0x10] sm:$0xff] }
  0x4b   : > { %2088 = vmatpush.bf16.msra.mxu2 %v1999_v17  ;;  %2089 = vmatpush.bf16.msra.mxu3 %v1999_v17  ;;  %v1993_v23 = vld [vmem:[%s2425_s22 + $0x8] sm:$0xff]  ;;  %v1992_v24 = vld [vmem:[%s2425_s22] sm:$0xff]  ;;  %v1986_v26 = vld [vmem:[%s2427_s23 + $0x10] sm:$0xff] }
  0x4c   : > { %v1984_v25 = vld [vmem:[%s2427_s23] sm:$0xff]  ;;  %v1990_v28 = vld [vmem:[%s2427_s23 + $0x30] sm:$0xff]  ;;  %v1985_v29 = vld [vmem:[%s2427_s23 + $0x8] sm:$0xff] }
  0x4d   : > { %v1988_v27 = vld [vmem:[%s2427_s23 + $0x20] sm:$0xff]  ;;  %v1987_v30 = vld [vmem:[%s2427_s23 + $0x18] sm:$0xff]  ;;  %v1989_v31 = vld [vmem:[%s2427_s23 + $0x28] sm:$0xff] }
  0x4e   : > { %768 = vmatpush.bf16.msra.mxu0 %v1998_v18  ;;  %2090 = vmatpush.bf16.msra.mxu1 %v1998_v18  ;;  %v1991_v32 = vld [vmem:[%s2427_s23 + $0x38] sm:$0xff]  ;;  %v623_v33 = vld [vmem:[#allocation2 + $0x30] sm:$0xff]  ;;  %v631_v39 = vld [vmem:[#allocation2 + $0x40] sm:$0xff] }
  0x4f   : > { %2091 = vmatpush.bf16.msra.mxu2 %v1998_v18  ;;  %2092 = vmatpush.bf16.msra.mxu3 %v1998_v18  ;;  %v627_v34 = vld [vmem:[#allocation2 + $0x50] sm:$0xff]  ;;  %v635_v40 = vld [vmem:[#allocation2 + $0x60] sm:$0xff]  ;;  %v628_v42 = vld [vmem:[#allocation2 + $0x68] sm:$0xff] }
  0x50   : > { %v624_v41 = vld [vmem:[#allocation2] sm:$0xff]  ;;  %v636_v52 = vld [vmem:[#allocation2 + $0x70] sm:$0xff]  ;;  %v625_v53 = vld [vmem:[#allocation2 + $0x58] sm:$0xff] }
  0x51   : > { %v632_v51 = vld [vmem:[#allocation2 + $0x20] sm:$0xff]  ;;  %v629_v54 = vld [vmem:[#allocation2 + $0x8] sm:$0xff]  ;;  %v633_v63 = vld [vmem:[#allocation2 + $0x10] sm:$0xff] }
  0x52   : > { %769 = vmatpush.bf16.msra.mxu0 %v1997_v19  ;;  %2093 = vmatpush.bf16.msra.mxu1 %v1997_v19  ;;  %v637_v0 = vld [vmem:[#allocation2 + $0x78] sm:$0xff]  ;;  %v630_v2 = vld [vmem:[#allocation2 + $0x48] sm:$0xff] }
  0x53   : > { %2094 = vmatpush.bf16.msra.mxu2 %v1997_v19  ;;  %2095 = vmatpush.bf16.msra.mxu3 %v1997_v19  ;;  %v626_v1 = vld [vmem:[#allocation2 + $0x18] sm:$0xff]  ;;  %v638_v12 = vld [vmem:[#allocation2 + $0x28] sm:$0xff] }
  0x54   : > { %v634_v11 = vld [vmem:[#allocation2 + $0x38] sm:$0xff] }
  0x56   : > { %770 = vmatpush.bf16.msra.mxu0 %v1996_v20  ;;  %2096 = vmatpush.bf16.msra.mxu1 %v1996_v20 }
  0x57   : > { %2097 = vmatpush.bf16.msra.mxu2 %v1996_v20  ;;  %2098 = vmatpush.bf16.msra.mxu3 %v1996_v20 }
  0x5a   : > { %771 = vmatpush.bf16.msra.mxu0 %v1995_v21  ;;  %2099 = vmatpush.bf16.msra.mxu1 %v1995_v21 }
  0x5b   : > { %2100 = vmatpush.bf16.msra.mxu2 %v1995_v21  ;;  %2101 = vmatpush.bf16.msra.mxu3 %v1995_v21 }
  0x5e   : > { %772 = vmatpush.bf16.msra.mxu0 %v1994_v22  ;;  %2102 = vmatpush.bf16.msra.mxu1 %v1994_v22 }
  0x5f   : > { %2103 = vmatpush.bf16.msra.mxu2 %v1994_v22  ;;  %2104 = vmatpush.bf16.msra.mxu3 %v1994_v22 }
  0x62   : > { %773 = vmatpush.bf16.msra.mxu0 %v1993_v23  ;;  %2105 = vmatpush.bf16.msra.mxu1 %v1993_v23 }
  0x63   : > { %2106 = vmatpush.bf16.msra.mxu2 %v1993_v23  ;;  %2107 = vmatpush.bf16.msra.mxu3 %v1993_v23 }
  0x66   : > { %774 = vmatpush.bf16.msra.mxu0 %v1992_v24  ;;  %2108 = vmatpush.bf16.msra.mxu1 %v1992_v24 }
  0x67   : > { %2109 = vmatpush.bf16.msra.mxu2 %v1992_v24  ;;  %2110 = vmatpush.bf16.msra.mxu3 %v1992_v24 }
  0x69   : > { %775 = vmatmul.bf16.vlgmr.msra.gmra.mxu0 %v1984_v25  ;;  %785 = vmatmul.bf16.vlgmr.msra.gmra.mxu1 %v1986_v26 }
  0x6a   : > { %795 = vmatmul.bf16.vlgmr.msra.gmra.mxu2 %v1988_v27  ;;  %805 = vmatmul.bf16.vlgmr.msra.gmra.mxu3 %v1990_v28 }
  0x79   : > { %780 = vmatmul.bf16.gmra.mxu0 %v1985_v29  ;;  %790 = vmatmul.bf16.gmra.mxu1 %v1987_v30 }
  0x7a   : > { %800 = vmatmul.bf16.gmra.mxu2 %v1989_v31  ;;  %810 = vmatmul.bf16.gmra.mxu3 %v1991_v32 }
  0xe6   : > { %v776_v35 = vpop.f32.mrf.mxu0  ;;  %v786_v36 = vpop.f32.mrf.mxu1 }
  0xe7   : > { %v816_v37 = vadd.f32 %v776_v35, %v623_v33  ;;  %v820_v38 = vadd.f32 %v786_v36, %v627_v34 }
  0xe9   : > { %832 = vst [vmem:[#allocation2 + $0x30] sm:$0xff] %v816_v37 }
  0xea   : > { %836 = vst [vmem:[#allocation2 + $0x50] sm:$0xff] %v820_v38 }
  0xed   : > { %v796_v43 = vpop.f32.mrf.mxu2  ;;  %v806_v44 = vpop.f32.mrf.mxu3 }
  0xee   : > { %v824_v45 = vadd.f32 %v796_v43, %v631_v39  ;;  %v828_v46 = vadd.f32 %v806_v44, %v635_v40  ;;  %v778_v47 = vpop.f32.mrf.mxu0  ;;  %v788_v48 = vpop.f32.mrf.mxu1 }
  0xef   : > { %v817_v49 = vadd.f32 %v778_v47, %v624_v41  ;;  %v821_v50 = vadd.f32 %v788_v48, %v628_v42 }
  0xf0   : > { %840 = vst [vmem:[#allocation2 + $0x40] sm:$0xff] %v824_v45 }
  0xf1   : > { %844 = vst [vmem:[#allocation2 + $0x60] sm:$0xff] %v828_v46 }
  0xf2   : > { %833 = vst [vmem:[#allocation2] sm:$0xff] %v817_v49 }
  0xf3   : > { %837 = vst [vmem:[#allocation2 + $0x68] sm:$0xff] %v821_v50 }
  0xf5   : > { %v798_v55 = vpop.f32.mrf.mxu2  ;;  %v808_v56 = vpop.f32.mrf.mxu3 }
  0xf6   : > { %v825_v57 = vadd.f32 %v798_v55, %v632_v51  ;;  %v829_v58 = vadd.f32 %v808_v56, %v636_v52  ;;  %v781_v59 = vpop.f32.mrf.mxu0  ;;  %v791_v60 = vpop.f32.mrf.mxu1 }
  0xf7   : > { %v818_v61 = vadd.f32 %v781_v59, %v625_v53  ;;  %v822_v62 = vadd.f32 %v791_v60, %v629_v54 }
  0xf8   : > { %841 = vst [vmem:[#allocation2 + $0x20] sm:$0xff] %v825_v57 }
  0xf9   : > { %845 = vst [vmem:[#allocation2 + $0x70] sm:$0xff] %v829_v58 }
  0xfa   : > { %834 = vst [vmem:[#allocation2 + $0x58] sm:$0xff] %v818_v61 }
  0xfb   : > { %838 = vst [vmem:[#allocation2 + $0x8] sm:$0xff] %v822_v62 }
  0xfd   : > { %v801_v3 = vpop.f32.mrf.mxu2  ;;  %v811_v4 = vpop.f32.mrf.mxu3 }
  0xfe   : > { %v826_v5 = vadd.f32 %v801_v3, %v633_v63  ;;  %v830_v6 = vadd.f32 %v811_v4, %v637_v0  ;;  %v783_v7 = vpop.f32.mrf.mxu0  ;;  %v793_v8 = vpop.f32.mrf.mxu1 }
  0xff   : > { %v819_v9 = vadd.f32 %v783_v7, %v626_v1  ;;  %v823_v10 = vadd.f32 %v793_v8, %v630_v2 }
 0x100   : > { %842 = vst [vmem:[#allocation2 + $0x10] sm:$0xff] %v826_v5 }
 0x101   : > { %846 = vst [vmem:[#allocation2 + $0x78] sm:$0xff] %v830_v6 }
 0x102   : > { %835 = vst [vmem:[#allocation2 + $0x18] sm:$0xff] %v819_v9 }
 0x103   : > { %839 = vst [vmem:[#allocation2 + $0x48] sm:$0xff] %v823_v10 }
 0x105   : > { %v803_v13 = vpop.f32.mrf.mxu2  ;;  %v813_v14 = vpop.f32.mrf.mxu3  ;;  %851 = sbr.rel (%p1817_p11) target bundleno = 986 (0x3da), region = 117 }
 0x106   : > { %v827_v15 = vadd.f32 %v803_v13, %v634_v11  ;;  %v831_v16 = vadd.f32 %v813_v14, %v638_v12 }
 0x108   : > { %843 = vst [vmem:[#allocation2 + $0x38] sm:$0xff] %v827_v15 }
 0x109   : > { %847 = vst [vmem:[#allocation2 + $0x28] sm:$0xff] %v831_v16 }
 0x10a   : > { %v2015_v17 = vld [vmem:[%s2697_s4 + $0x38] sm:$0xff]  ;;  %v2014_v18 = vld [vmem:[%s2697_s4 + $0x30] sm:$0xff]  ;;  %v2013_v19 = vld [vmem:[%s2697_s4 + $0x28] sm:$0xff] }
 0x10b   : > { %984 = vmatpush.bf16.msra.mxu0 %v2015_v17  ;;  %v2012_v20 = vld [vmem:[%s2697_s4 + $0x20] sm:$0xff]  ;;  %v2011_v21 = vld [vmem:[%s2697_s4 + $0x18] sm:$0xff]  ;;  %v2010_v22 = vld [vmem:[%s2697_s4 + $0x10] sm:$0xff] }
 0x10c   : > { %v2009_v23 = vld [vmem:[%s2697_s4 + $0x8] sm:$0xff]  ;;  %v2008_v24 = vld [vmem:[%s2697_s4] sm:$0xff]  ;;  %v2002_v27 = vld [vmem:[%s2695_s2 + $0x10] sm:$0xff] }
 0x10d   : > { %v2000_v25 = vld [vmem:[%s2695_s2] sm:$0xff]  ;;  %v2001_v26 = vld [vmem:[%s2695_s2 + $0x8] sm:$0xff]  ;;  %v2003_v28 = vld [vmem:[%s2695_s2 + $0x18] sm:$0xff] }
 0x10e   : > { %v2004_v29 = vld [vmem:[%s2695_s2 + $0x20] sm:$0xff]  ;;  %v2023_v30 = vld [vmem:[%s2699_s6 + $0x38] sm:$0xff]  ;;  %v2005_v31 = vld [vmem:[%s2695_s2 + $0x28] sm:$0xff] }
 0x10f   : > { %985 = vmatpush.bf16.msra.mxu0 %v2014_v18  ;;  %1161 = vmatpush.bf16.msra.mxu1 %v2023_v30  ;;  %v2022_v32 = vld [vmem:[%s2699_s6 + $0x30] sm:$0xff]  ;;  %v2021_v33 = vld [vmem:[%s2699_s6 + $0x28] sm:$0xff]  ;;  %v2020_v34 = vld [vmem:[%s2699_s6 + $0x20] sm:$0xff] }
 0x110   : > { %v2006_v35 = vld [vmem:[%s2695_s2 + $0x30] sm:$0xff]  ;;  %v2019_v36 = vld [vmem:[%s2699_s6 + $0x18] sm:$0xff]  ;;  %v2017_v38 = vld [vmem:[%s2699_s6 + $0x8] sm:$0xff] }
 0x111   : > { %v2018_v37 = vld [vmem:[%s2699_s6 + $0x10] sm:$0xff]  ;;  %v2016_v39 = vld [vmem:[%s2699_s6] sm:$0xff]  ;;  %v2007_v40 = vld [vmem:[%s2695_s2 + $0x38] sm:$0xff] }
 0x112   : > { %v2522_v42 = vld [vmem:[%s2698_s5] ss:$0 sm:$0xff]  ;;  %v1053_v48 = vld [vmem:[#allocation2 + $0x30] sm:$0xff]  ;;  %v1055_v59 = vld [vmem:[#allocation2 + $0x58] sm:$0xff] }
 0x113   : > { %986 = vmatpush.bf16.msra.mxu0 %v2013_v19  ;;  %1162 = vmatpush.bf16.msra.mxu1 %v2022_v32  ;;  %v2528_v44 = vld [vmem:[%s2696_s3] ss:$0 sm:$0xff]  ;;  %v1056_v60 = vld [vmem:[#allocation2 + $0x18] sm:$0xff]  ;;  %v1057_v6 = vld [vmem:[#allocation2 + $0x50] sm:$0xff] }
 0x114   : > { %v1054_v49 = vld [vmem:[#allocation2] sm:$0xff]  ;;  %v1058_v7 = vld [vmem:[#allocation2 + $0x68] sm:$0xff] }
 0x115   : > { %v1059_v17 = vld [vmem:[#allocation2 + $0x8] sm:$0xff] }
 0x116   : > { %v1060_v18 = vld [vmem:[#allocation2 + $0x48] sm:$0xff] }
 0x117   : > { %987 = vmatpush.bf16.msra.mxu0 %v2012_v20  ;;  %1163 = vmatpush.bf16.msra.mxu1 %v2021_v33 }
 0x11b   : > { %988 = vmatpush.bf16.msra.mxu0 %v2011_v21  ;;  %1164 = vmatpush.bf16.msra.mxu1 %v2020_v34 }
 0x11f   : > { %989 = vmatpush.bf16.msra.mxu0 %v2010_v22  ;;  %1165 = vmatpush.bf16.msra.mxu1 %v2019_v36 }
 0x123   : > { %990 = vmatpush.bf16.msra.mxu0 %v2009_v23  ;;  %1166 = vmatpush.bf16.msra.mxu1 %v2018_v37 }
 0x127   : > { %991 = vmatpush.bf16.msra.mxu0 %v2008_v24  ;;  %1167 = vmatpush.bf16.msra.mxu1 %v2017_v38 }
 0x12a   : > { %992 = vmatmul.bf16.vlgmr.msra.gmra.mxu0 %v2000_v25 }
 0x12b   : > { %1168 = vmatpush.bf16.msra.mxu1 %v2016_v39  ;;  %v1063_v39 = vld [vmem:[#allocation2 + $0x10] sm:$0xff] }
 0x13a   : > { %997 = vmatmul.bf16.gmra.mxu0 %v2001_v26 }
 0x14a   : > { %1002 = vmatmul.bf16.gmra.mxu0 %v2002_v27 }
 0x15a   : > { %1007 = vmatmul.bf16.gmra.mxu0 %v2003_v28  ;;  %v1061_v28 = vld [vmem:[#allocation2 + $0x40] sm:$0xff] }
 0x16a   : > { %1012 = vmatmul.bf16.gmra.mxu0 %v2004_v29  ;;  %v1062_v29 = vld [vmem:[#allocation2 + $0x20] sm:$0xff] }
 0x17a   : > { %1017 = vmatmul.bf16.gmra.mxu0 %v2005_v31 }
 0x18a   : > { %1022 = vmatmul.bf16.gmra.mxu0 %v2006_v35 }
 0x19a   : > { %1027 = vmatmul.bf16.gmra.mxu0 %v2007_v40  ;;  %v1064_v40 = vld [vmem:[#allocation2 + $0x38] sm:$0xff] }
 0x1a7   : > { %v993_v41 = vpop.f32.mrf.mxu0 }
 0x1a8   : > { %v994_v43 = vadd.f32 %v2522_v42, %v993_v41 }
 0x1aa   : > { %v1037_v46 = vmul.f32 %v2528_v44, %v994_v43  ;;  %v2031_v43 = vld [vmem:[%s2701_s8 + $0x38] sm:$0xff] }
 0x1ab   : > { %1302 = vmatpush.bf16.msra.mxu2 %v2031_v43 }
 0x1ac   : > { %v1069_v51 = vadd.f32 %v1053_v48, %v1037_v46 }
 0x1af   : > { %v995_v45 = vpop.f32.mrf.mxu0 }
 0x1b0   : > { %v996_v47 = vadd.f32 %v2522_v42, %v995_v45 }
 0x1b2   : > { %v1038_v50 = vmul.f32 %v2528_v44, %v996_v47 }
 0x1b4   : > { %v1070_v52 = vadd.f32 %v1054_v49, %v1038_v50  ;;  %v2030_v49 = vld [vmem:[%s2701_s8 + $0x30] sm:$0xff]  ;;  %v2029_v50 = vld [vmem:[%s2701_s8 + $0x28] sm:$0xff] }
 0x1b5   : > { %1303 = vmatpush.bf16.msra.mxu2 %v2030_v49 }
 0x1b6   : > { %v1085_v53 = vpack.c.bf16 %v1070_v52, %v1069_v51  ;;  %v2028_v52 = vld [vmem:[%s2701_s8 + $0x20] sm:$0xff] }
 0x1b7   : > { %v998_v54 = vpop.f32.mrf.mxu0 }
 0x1b8   : > { %1169 = vmatmul.bf16.vlgmr.msra.gmra.mxu1 %v1085_v53  ;;  %v999_v55 = vadd.f32 %v2522_v42, %v998_v54 }
 0x1b9   : > { %1304 = vmatpush.bf16.msra.mxu2 %v2029_v50 }
 0x1ba   : > { %v1039_v57 = vmul.f32 %v2528_v44, %v999_v55 }
 0x1bc   : > { %v1071_v62 = vadd.f32 %v1055_v59, %v1039_v57  ;;  %v1066_v57 = vld [vmem:[#allocation2 + $0x70] sm:$0xff]  ;;  %v2027_v59 = vld [vmem:[%s2701_s8 + $0x18] sm:$0xff] }
 0x1bd   : > { %1305 = vmatpush.bf16.msra.mxu2 %v2028_v52 }
 0x1bf   : > { %v1000_v56 = vpop.f32.mrf.mxu0 }
 0x1c0   : > { %v1001_v58 = vadd.f32 %v2522_v42, %v1000_v56  ;;  %v1065_v56 = vld [vmem:[#allocation2 + $0x60] sm:$0xff] }
 0x1c1   : > { %1306 = vmatpush.bf16.msra.mxu2 %v2027_v59  ;;  %v2037_v59 = vld [vmem:[%s2703_s10 + $0x28] sm:$0xff] }
 0x1c2   : > { %v1040_v61 = vmul.f32 %v2528_v44, %v1001_v58 }
 0x1c4   : > { %v1072_v63 = vadd.f32 %v1056_v60, %v1040_v61 }
 0x1c6   : > { %v1086_v0 = vpack.c.bf16 %v1072_v63, %v1071_v62 }
 0x1c7   : > { %v1003_v1 = vpop.f32.mrf.mxu0 }
 0x1c8   : > { %1174 = vmatmul.bf16.gmra.mxu1 %v1086_v0  ;;  %v1004_v2 = vadd.f32 %v2522_v42, %v1003_v1  ;;  %v2026_v0 = vld [vmem:[%s2701_s8 + $0x10] sm:$0xff]  ;;  %v2025_v1 = vld [vmem:[%s2701_s8 + $0x8] sm:$0xff] }
 0x1c9   : > { %1307 = vmatpush.bf16.msra.mxu2 %v2026_v0 }
 0x1ca   : > { %v1041_v4 = vmul.f32 %v2528_v44, %v1004_v2 }
 0x1cc   : > { %v1073_v9 = vadd.f32 %v1057_v6, %v1041_v4  ;;  %v2024_v4 = vld [vmem:[%s2701_s8] sm:$0xff] }
 0x1cd   : > { %1308 = vmatpush.bf16.msra.mxu2 %v2025_v1 }
 0x1cf   : > { %v1005_v3 = vpop.f32.mrf.mxu0 }
 0x1d0   : > { %v1006_v5 = vadd.f32 %v2522_v42, %v1005_v3 }
 0x1d1   : > { %1309 = vmatpush.bf16.msra.mxu2 %v2024_v4  ;;  %v2035_v4 = vld [vmem:[%s2703_s10 + $0x18] sm:$0xff] }
 0x1d2   : > { %v1042_v8 = vmul.f32 %v2528_v44, %v1006_v5 }
 0x1d4   : > { %v1074_v10 = vadd.f32 %v1058_v7, %v1042_v8  ;;  %v1067_v7 = vld [vmem:[#allocation2 + $0x78] sm:$0xff]  ;;  %v1068_v8 = vld [vmem:[#allocation2 + $0x28] sm:$0xff] }
 0x1d6   : > { %v1087_v11 = vpack.c.bf16 %v1074_v10, %v1073_v9 }
 0x1d7   : > { %v1008_v12 = vpop.f32.mrf.mxu0 }
 0x1d8   : > { %1179 = vmatmul.bf16.gmra.mxu1 %v1087_v11  ;;  %v1009_v13 = vadd.f32 %v2522_v42, %v1008_v12 }
 0x1da   : > { %v1043_v15 = vmul.f32 %v2528_v44, %v1009_v13 }
 0x1dc   : > { %v1075_v20 = vadd.f32 %v1059_v17, %v1043_v15 }
 0x1df   : > { %v1010_v14 = vpop.f32.mrf.mxu0 }
 0x1e0   : > { %v1011_v16 = vadd.f32 %v2522_v42, %v1010_v14  ;;  %v2588_v14 = vld [vmem:[%s2700_s7] ss:$0 sm:$0xff] }
 0x1e2   : > { %v1044_v19 = vmul.f32 %v2528_v44, %v1011_v16 }
 0x1e4   : > { %v1076_v21 = vadd.f32 %v1060_v18, %v1044_v19 }
 0x1e6   : > { %v1088_v22 = vpack.c.bf16 %v1076_v21, %v1075_v20 }
 0x1e7   : > { %v1013_v23 = vpop.f32.mrf.mxu0 }
 0x1e8   : > { %1184 = vmatmul.bf16.gmra.mxu1 %v1088_v22  ;;  %v1014_v24 = vadd.f32 %v2522_v42, %v1013_v23 }
 0x1ea   : > { %v1045_v26 = vmul.f32 %v2528_v44, %v1014_v24 }
 0x1ec   : > { %v1077_v31 = vadd.f32 %v1061_v28, %v1045_v26 }
 0x1ef   : > { %v1015_v25 = vpop.f32.mrf.mxu0 }
 0x1f0   : > { %v1016_v27 = vadd.f32 %v2522_v42, %v1015_v25 }
 0x1f2   : > { %v1046_v30 = vmul.f32 %v2528_v44, %v1016_v27 }
 0x1f4   : > { %v1078_v32 = vadd.f32 %v1062_v29, %v1046_v30 }
 0x1f6   : > { %v1089_v33 = vpack.c.bf16 %v1078_v32, %v1077_v31 }
 0x1f7   : > { %v1018_v34 = vpop.f32.mrf.mxu0 }
 0x1f8   : > { %1189 = vmatmul.bf16.gmra.mxu1 %v1089_v33  ;;  %v1019_v35 = vadd.f32 %v2522_v42, %v1018_v34 }
 0x1fa   : > { %v1047_v37 = vmul.f32 %v2528_v44, %v1019_v35 }
 0x1fc   : > { %v1079_v45 = vadd.f32 %v1063_v39, %v1047_v37 }
 0x1ff   : > { %v1020_v36 = vpop.f32.mrf.mxu0 }
 0x200   : > { %v1021_v38 = vadd.f32 %v2522_v42, %v1020_v36 }
 0x202   : > { %v1048_v41 = vmul.f32 %v2528_v44, %v1021_v38 }
 0x204   : > { %v1080_v46 = vadd.f32 %v1064_v40, %v1048_v41 }
 0x206   : > { %v1090_v47 = vpack.c.bf16 %v1080_v46, %v1079_v45 }
 0x207   : > { %v1023_v48 = vpop.f32.mrf.mxu0 }
 0x208   : > { %1194 = vmatmul.bf16.gmra.mxu1 %v1090_v47  ;;  %v1024_v51 = vadd.f32 %v2522_v42, %v1023_v48 }
 0x20a   : > { %v1049_v54 = vmul.f32 %v2528_v44, %v1024_v51 }
 0x20c   : > { %v1081_v60 = vadd.f32 %v1065_v56, %v1049_v54  ;;  %v2039_v56 = vld [vmem:[%s2703_s10 + $0x38] sm:$0xff] }
 0x20d   : > { %1547 = vmatpush.bf16.msra.mxu3 %v2039_v56 }
 0x20f   : > { %v1025_v53 = vpop.f32.mrf.mxu0 }
 0x210   : > { %v1026_v55 = vadd.f32 %v2522_v42, %v1025_v53 }
 0x212   : > { %v1050_v58 = vmul.f32 %v2528_v44, %v1026_v55 }
 0x214   : > { %v1082_v61 = vadd.f32 %v1066_v57, %v1050_v58  ;;  %v2038_v58 = vld [vmem:[%s2703_s10 + $0x30] sm:$0xff] }
 0x215   : > { %1548 = vmatpush.bf16.msra.mxu3 %v2038_v58 }
 0x216   : > { %v1091_v62 = vpack.c.bf16 %v1082_v61, %v1081_v60 }
 0x217   : > { %v1028_v63 = vpop.f32.mrf.mxu0 }
 0x218   : > { %1199 = vmatmul.bf16.gmra.mxu1 %v1091_v62  ;;  %v1029_v2 = vadd.f32 %v2522_v42, %v1028_v63 }
 0x219   : > { %1549 = vmatpush.bf16.msra.mxu3 %v2037_v59 }
 0x21a   : > { %v1051_v5 = vmul.f32 %v2528_v44, %v1029_v2 }
 0x21c   : > { %v1083_v10 = vadd.f32 %v1067_v7, %v1051_v5 }
 0x21f   : > { %v1030_v3 = vpop.f32.mrf.mxu0 }
 0x220   : > { %v1031_v6 = vadd.f32 %v2522_v42, %v1030_v3  ;;  %v2036_v3 = vld [vmem:[%s2703_s10 + $0x20] sm:$0xff] }
 0x221   : > { %1550 = vmatpush.bf16.msra.mxu3 %v2036_v3 }
 0x222   : > { %v1052_v9 = vmul.f32 %v2528_v44, %v1031_v6 }
 0x224   : > { %v1084_v11 = vadd.f32 %v1068_v8, %v1052_v9  ;;  %v2034_v8 = vld [vmem:[%s2703_s10 + $0x10] sm:$0xff] }
 0x225   : > { %1551 = vmatpush.bf16.msra.mxu3 %v2035_v4 }
 0x226   : > { %v1092_v12 = vpack.c.bf16 %v1084_v11, %v1083_v10 }
 0x228   : > { %1204 = vmatmul.bf16.gmra.mxu1 %v1092_v12  ;;  %v2033_v12 = vld [vmem:[%s2703_s10 + $0x8] sm:$0xff] }
 0x229   : > { %1552 = vmatpush.bf16.msra.mxu3 %v2034_v8 }
 0x22d   : > { %1553 = vmatpush.bf16.msra.mxu3 %v2033_v12 }
 0x235   : > { %v1170_v13 = vpop.f32.mrf.mxu1 }
 0x236   : > { %v1171_v15 = vadd.f32 %v2588_v14, %v1170_v13  ;;  %v2032_v13 = vld [vmem:[%s2703_s10] sm:$0xff] }
 0x237   : > { %1554 = vmatpush.bf16.msra.mxu3 %v2032_v13 }
 0x238   : > { %v1210_v17 = vmax.f32 %v1171_v15, 0.0 }
 0x23d   : > { %v1172_v16 = vpop.f32.mrf.mxu1 }
 0x23e   : > { %v1173_v42 = vadd.f32 %v2588_v14, %v1172_v16 }
 0x240   : > { %v1211_v18 = vmax.f32 %v1173_v42, 0.0 }
 0x242   : > { %v1226_v19 = vpack.c.bf16 %v1211_v18, %v1210_v17 }
 0x244   : > { %1310 = vmatmul.bf16.vlgmr.msra.gmra.mxu2 %v1226_v19 }
 0x245   : > { %v1175_v44 = vpop.f32.mrf.mxu1 }
 0x246   : > { %v1176_v20 = vadd.f32 %v2588_v14, %v1175_v44 }
 0x248   : > { %v1212_v23 = vmax.f32 %v1176_v20, 0.0 }
 0x24d   : > { %v1177_v21 = vpop.f32.mrf.mxu1 }
 0x24e   : > { %v1178_v22 = vadd.f32 %v2588_v14, %v1177_v21 }
 0x250   : > { %v1213_v24 = vmax.f32 %v1178_v22, 0.0 }
 0x252   : > { %v1227_v25 = vpack.c.bf16 %v1213_v24, %v1212_v23 }
 0x254   : > { %1315 = vmatmul.bf16.gmra.mxu2 %v1227_v25 }
 0x255   : > { %v1180_v26 = vpop.f32.mrf.mxu1 }
 0x256   : > { %v1181_v27 = vadd.f32 %v2588_v14, %v1180_v26 }
 0x258   : > { %v1214_v30 = vmax.f32 %v1181_v27, 0.0 }
 0x25d   : > { %v1182_v28 = vpop.f32.mrf.mxu1 }
 0x25e   : > { %v1183_v29 = vadd.f32 %v2588_v14, %v1182_v28 }
 0x260   : > { %v1215_v31 = vmax.f32 %v1183_v29, 0.0 }
 0x262   : > { %v1228_v32 = vpack.c.bf16 %v1215_v31, %v1214_v30 }
 0x264   : > { %1320 = vmatmul.bf16.gmra.mxu2 %v1228_v32 }
 0x265   : > { %v1185_v33 = vpop.f32.mrf.mxu1 }
 0x266   : > { %v1186_v34 = vadd.f32 %v2588_v14, %v1185_v33 }
 0x268   : > { %v1216_v37 = vmax.f32 %v1186_v34, 0.0 }
 0x26d   : > { %v1187_v35 = vpop.f32.mrf.mxu1 }
 0x26e   : > { %v1188_v36 = vadd.f32 %v2588_v14, %v1187_v35 }
 0x270   : > { %v1217_v38 = vmax.f32 %v1188_v36, 0.0 }
 0x272   : > { %v1229_v39 = vpack.c.bf16 %v1217_v38, %v1216_v37 }
 0x274   : > { %1325 = vmatmul.bf16.gmra.mxu2 %v1229_v39 }
 0x275   : > { %v1190_v40 = vpop.f32.mrf.mxu1 }
 0x276   : > { %v1191_v41 = vadd.f32 %v2588_v14, %v1190_v40 }
 0x278   : > { %v1218_v46 = vmax.f32 %v1191_v41, 0.0 }
 0x27d   : > { %v1192_v43 = vpop.f32.mrf.mxu1 }
 0x27e   : > { %v1193_v45 = vadd.f32 %v2588_v14, %v1192_v43 }
 0x280   : > { %v1219_v47 = vmax.f32 %v1193_v45, 0.0 }
 0x282   : > { %v1230_v48 = vpack.c.bf16 %v1219_v47, %v1218_v46 }
 0x284   : > { %1330 = vmatmul.bf16.gmra.mxu2 %v1230_v48 }
 0x285   : > { %v1195_v49 = vpop.f32.mrf.mxu1 }
 0x286   : > { %v1196_v50 = vadd.f32 %v2588_v14, %v1195_v49 }
 0x288   : > { %v1220_v53 = vmax.f32 %v1196_v50, 0.0 }
 0x28d   : > { %v1197_v51 = vpop.f32.mrf.mxu1 }
 0x28e   : > { %v1198_v52 = vadd.f32 %v2588_v14, %v1197_v51 }
 0x290   : > { %v1221_v54 = vmax.f32 %v1198_v52, 0.0 }
 0x292   : > { %v1231_v55 = vpack.c.bf16 %v1221_v54, %v1220_v53 }
 0x294   : > { %1335 = vmatmul.bf16.gmra.mxu2 %v1231_v55 }
 0x295   : > { %v1200_v57 = vpop.f32.mrf.mxu1 }
 0x296   : > { %v1201_v60 = vadd.f32 %v2588_v14, %v1200_v57 }
 0x298   : > { %v1222_v63 = vmax.f32 %v1201_v60, 0.0 }
 0x29d   : > { %v1202_v61 = vpop.f32.mrf.mxu1 }
 0x29e   : > { %v1203_v62 = vadd.f32 %v2588_v14, %v1202_v61 }
 0x2a0   : > { %v1223_v0 = vmax.f32 %v1203_v62, 0.0 }
 0x2a2   : > { %v1232_v1 = vpack.c.bf16 %v1223_v0, %v1222_v63 }
 0x2a4   : > { %1340 = vmatmul.bf16.gmra.mxu2 %v1232_v1 }
 0x2a5   : > { %v1205_v2 = vpop.f32.mrf.mxu1 }
 0x2a6   : > { %v1206_v5 = vadd.f32 %v2588_v14, %v1205_v2 }
 0x2a8   : > { %v1224_v9 = vmax.f32 %v1206_v5, 0.0 }
 0x2ad   : > { %v1207_v6 = vpop.f32.mrf.mxu1 }
 0x2ae   : > { %v1208_v7 = vadd.f32 %v2588_v14, %v1207_v6  ;;  %v2633_v14 = vld [vmem:[%s2702_s9] ss:$0 sm:$0xff] }
 0x2b0   : > { %v1225_v10 = vmax.f32 %v1208_v7, 0.0 }
 0x2b2   : > { %v1233_v11 = vpack.c.bf16 %v1225_v10, %v1224_v9 }
 0x2b4   : > { %1345 = vmatmul.bf16.gmra.mxu2 %v1233_v11 }
 0x2c7   : > { %v1311_v15 = vpop.f32.mrf.mxu2 }
 0x2c8   : > { %v1312_v16 = vadd.f32 %v2633_v14, %v1311_v15 }
 0x2ca   : > { %v1367_v42 = vmul.f32 0.01, %v1312_v16  ;;  %vm1351_vm0 = vcmp.ge.f32.partialorder %v1312_v16, 0.0 }
 0x2cc   : > { %v1383_v19 = vsel %vm1351_vm0, %v1312_v16, %v1367_v42 }
 0x2cd   : > { %v1399_v20 = vpack.c.bf16 %v1383_v19, %v1383_v19 }
 0x2cf   : > { %v1313_v17 = vpop.f32.mrf.mxu2  ;;  %v1467_v25 = vunpack.c.l.b16 %v1399_v20 }
 0x2d0   : > { %v1314_v18 = vadd.f32 %v2633_v14, %v1313_v17 }
 0x2d2   : > { %vm1352_vm1 = vcmp.ge.f32.partialorder %v1314_v18, 0.0  ;;  %v1368_v44 = vmul.f32 0.01, %v1314_v18 }
 0x2d4   : > { %v1384_v21 = vsel %vm1352_vm1, %v1314_v18, %v1368_v44 }
 0x2d5   : > { %v1400_v22 = vpack.c.bf16 %v1384_v21, %v1384_v21  ;;  %v2043_v23 = vpack.c.bf16 %v1384_v21, %v1383_v19 }
 0x2d7   : > { %v1316_v24 = vpop.f32.mrf.mxu2  ;;  %2044 = vst [vmem:[#allocation4] sm:$0xff] %v2043_v23   ;;  %v1468_v26 = vunpack.c.l.b16 %v1400_v22 }
 0x2d8   : > { %v1317_v27 = vadd.f32 %v2633_v14, %v1316_v24 }
 0x2d9   : > { %v1483_v28 = vpack.c.b16 %v1468_v26, %v1467_v25 }
 0x2da   : > { %v1369_v29 = vmul.f32 0.01, %v1317_v27  ;;  %vm1353_vm2 = vcmp.ge.f32.partialorder %v1317_v27, 0.0 }
 0x2db   : > { %1555 = vmatmul.bf16.vlgmr.msra.gmra.mxu3 %v1483_v28 }
 0x2dc   : > { %v1385_v32 = vsel %vm1353_vm2, %v1317_v27, %v1369_v29 }
 0x2dd   : > { %v1401_v34 = vpack.c.bf16 %v1385_v32, %v1385_v32 }
 0x2df   : > { %v1318_v30 = vpop.f32.mrf.mxu2  ;;  %v1469_v39 = vunpack.c.l.b16 %v1401_v34 }
 0x2e0   : > { %v1319_v31 = vadd.f32 %v2633_v14, %v1318_v30 }
 0x2e2   : > { %vm1354_vm3 = vcmp.ge.f32.partialorder %v1319_v31, 0.0  ;;  %v1370_v33 = vmul.f32 0.01, %v1319_v31 }
 0x2e4   : > { %v1386_v35 = vsel %vm1354_vm3, %v1319_v31, %v1370_v33 }
 0x2e5   : > { %v1402_v36 = vpack.c.bf16 %v1386_v35, %v1386_v35  ;;  %v2048_v37 = vpack.c.bf16 %v1386_v35, %v1385_v32 }
 0x2e7   : > { %v1321_v38 = vpop.f32.mrf.mxu2  ;;  %2080 = vst [vmem:[#allocation4 + $0x8] sm:$0xff] %v2048_v37   ;;  %v1470_v40 = vunpack.c.l.b16 %v1402_v36 }
 0x2e8   : > { %v1322_v41 = vadd.f32 %v2633_v14, %v1321_v38 }
 0x2e9   : > { %v1484_v43 = vpack.c.b16 %v1470_v40, %v1469_v39 }
 0x2ea   : > { %v1371_v45 = vmul.f32 0.01, %v1322_v41  ;;  %vm1355_vm4 = vcmp.ge.f32.partialorder %v1322_v41, 0.0 }
 0x2eb   : > { %1560 = vmatmul.bf16.gmra.mxu3 %v1484_v43 }
 0x2ec   : > { %v1387_v48 = vsel %vm1355_vm4, %v1322_v41, %v1371_v45 }
 0x2ed   : > { %v1403_v50 = vpack.c.bf16 %v1387_v48, %v1387_v48 }
 0x2ef   : > { %v1323_v46 = vpop.f32.mrf.mxu2  ;;  %v1471_v55 = vunpack.c.l.b16 %v1403_v50 }
 0x2f0   : > { %v1324_v47 = vadd.f32 %v2633_v14, %v1323_v46 }
 0x2f2   : > { %vm1356_vm5 = vcmp.ge.f32.partialorder %v1324_v47, 0.0  ;;  %v1372_v49 = vmul.f32 0.01, %v1324_v47 }
 0x2f4   : > { %v1388_v51 = vsel %vm1356_vm5, %v1324_v47, %v1372_v49 }
 0x2f5   : > { %v1404_v52 = vpack.c.bf16 %v1388_v51, %v1388_v51  ;;  %v2053_v53 = vpack.c.bf16 %v1388_v51, %v1387_v48 }
 0x2f7   : > { %v1326_v54 = vpop.f32.mrf.mxu2  ;;  %2081 = vst [vmem:[#allocation4 + $0x10] sm:$0xff] %v2053_v53   ;;  %v1472_v56 = vunpack.c.l.b16 %v1404_v52 }
 0x2f8   : > { %v1327_v57 = vadd.f32 %v2633_v14, %v1326_v54 }
 0x2f9   : > { %v1485_v58 = vpack.c.b16 %v1472_v56, %v1471_v55 }
 0x2fa   : > { %v1373_v59 = vmul.f32 0.01, %v1327_v57  ;;  %vm1357_vm6 = vcmp.ge.f32.partialorder %v1327_v57, 0.0 }
 0x2fb   : > { %1565 = vmatmul.bf16.gmra.mxu3 %v1485_v58 }
 0x2fc   : > { %v1389_v62 = vsel %vm1357_vm6, %v1327_v57, %v1373_v59 }
 0x2fd   : > { %v1405_v0 = vpack.c.bf16 %v1389_v62, %v1389_v62 }
 0x2ff   : > { %v1328_v60 = vpop.f32.mrf.mxu2  ;;  %v1473_v5 = vunpack.c.l.b16 %v1405_v0  ;;  %v2174_v0 = vld [vmem:[%s2704_s11] ss:$0 sm:$0xff] }
 0x300   : > { %v1329_v61 = vadd.f32 %v2633_v14, %v1328_v60 }
 0x302   : > { %vm1358_vm7 = vcmp.ge.f32.partialorder %v1329_v61, 0.0  ;;  %v1374_v63 = vmul.f32 0.01, %v1329_v61 }
 0x304   : > { %v1390_v1 = vsel %vm1358_vm7, %v1329_v61, %v1374_v63 }
 0x305   : > { %v1406_v2 = vpack.c.bf16 %v1390_v1, %v1390_v1  ;;  %v2058_v3 = vpack.c.bf16 %v1390_v1, %v1389_v62 }
 0x307   : > { %v1331_v4 = vpop.f32.mrf.mxu2  ;;  %2082 = vst [vmem:[#allocation4 + $0x18] sm:$0xff] %v2058_v3   ;;  %v1474_v6 = vunpack.c.l.b16 %v1406_v2 }
 0x308   : > { %v1332_v7 = vadd.f32 %v2633_v14, %v1331_v4 }
 0x309   : > { %v1486_v8 = vpack.c.b16 %v1474_v6, %v1473_v5 }
 0x30a   : > { %v1375_v9 = vmul.f32 0.01, %v1332_v7  ;;  %vm1359_vm8 = vcmp.ge.f32.partialorder %v1332_v7, 0.0 }
 0x30b   : > { %1570 = vmatmul.bf16.gmra.mxu3 %v1486_v8 }
 0x30c   : > { %v1391_v12 = vsel %vm1359_vm8, %v1332_v7, %v1375_v9 }
 0x30d   : > { %v1407_v15 = vpack.c.bf16 %v1391_v12, %v1391_v12 }
 0x30f   : > { %v1333_v10 = vpop.f32.mrf.mxu2  ;;  %v1475_v19 = vunpack.c.l.b16 %v1407_v15 }
 0x310   : > { %v1334_v11 = vadd.f32 %v2633_v14, %v1333_v10 }
 0x312   : > { %vm1360_vm9 = vcmp.ge.f32.partialorder %v1334_v11, 0.0  ;;  %v1376_v13 = vmul.f32 0.01, %v1334_v11 }
 0x314   : > { %v1392_v16 = vsel %vm1360_vm9, %v1334_v11, %v1376_v13 }
 0x315   : > { %v1408_v42 = vpack.c.bf16 %v1392_v16, %v1392_v16  ;;  %v2063_v17 = vpack.c.bf16 %v1392_v16, %v1391_v12 }
 0x317   : > { %v1336_v18 = vpop.f32.mrf.mxu2  ;;  %2083 = vst [vmem:[#allocation4 + $0x20] sm:$0xff] %v2063_v17   ;;  %v1476_v44 = vunpack.c.l.b16 %v1408_v42 }
 0x318   : > { %v1337_v20 = vadd.f32 %v2633_v14, %v1336_v18 }
 0x319   : > { %v1487_v21 = vpack.c.b16 %v1476_v44, %v1475_v19 }
 0x31a   : > { %v1377_v22 = vmul.f32 0.01, %v1337_v20  ;;  %vm1361_vm10 = vcmp.ge.f32.partialorder %v1337_v20, 0.0 }
 0x31b   : > { %1575 = vmatmul.bf16.gmra.mxu3 %v1487_v21 }
 0x31c   : > { %v1393_v25 = vsel %vm1361_vm10, %v1337_v20, %v1377_v22 }
 0x31d   : > { %v1409_v27 = vpack.c.bf16 %v1393_v25, %v1393_v25 }
 0x31f   : > { %v1338_v23 = vpop.f32.mrf.mxu2  ;;  %v1477_v32 = vunpack.c.l.b16 %v1409_v27 }
 0x320   : > { %v1339_v24 = vadd.f32 %v2633_v14, %v1338_v23 }
 0x322   : > { %vm1362_vm11 = vcmp.ge.f32.partialorder %v1339_v24, 0.0  ;;  %v1378_v26 = vmul.f32 0.01, %v1339_v24 }
 0x324   : > { %v1394_v28 = vsel %vm1362_vm11, %v1339_v24, %v1378_v26 }
 0x325   : > { %v1410_v29 = vpack.c.bf16 %v1394_v28, %v1394_v28  ;;  %v2068_v30 = vpack.c.bf16 %v1394_v28, %v1393_v25 }
 0x327   : > { %v1341_v31 = vpop.f32.mrf.mxu2  ;;  %2084 = vst [vmem:[#allocation4 + $0x28] sm:$0xff] %v2068_v30   ;;  %v1478_v33 = vunpack.c.l.b16 %v1410_v29 }
 0x328   : > { %v1342_v34 = vadd.f32 %v2633_v14, %v1341_v31 }
 0x329   : > { %v1488_v35 = vpack.c.b16 %v1478_v33, %v1477_v32 }
 0x32a   : > { %v1379_v36 = vmul.f32 0.01, %v1342_v34  ;;  %vm1363_vm12 = vcmp.ge.f32.partialorder %v1342_v34, 0.0 }
 0x32b   : > { %1580 = vmatmul.bf16.gmra.mxu3 %v1488_v35 }
 0x32c   : > { %v1395_v39 = vsel %vm1363_vm12, %v1342_v34, %v1379_v36 }
 0x32d   : > { %v1411_v41 = vpack.c.bf16 %v1395_v39, %v1395_v39 }
 0x32f   : > { %v1343_v37 = vpop.f32.mrf.mxu2  ;;  %v1479_v48 = vunpack.c.l.b16 %v1411_v41 }
 0x330   : > { %v1344_v38 = vadd.f32 %v2633_v14, %v1343_v37 }
 0x332   : > { %vm1364_vm13 = vcmp.ge.f32.partialorder %v1344_v38, 0.0  ;;  %v1380_v40 = vmul.f32 0.01, %v1344_v38 }
 0x334   : > { %v1396_v43 = vsel %vm1364_vm13, %v1344_v38, %v1380_v40 }
 0x335   : > { %v1412_v45 = vpack.c.bf16 %v1396_v43, %v1396_v43  ;;  %v2073_v46 = vpack.c.bf16 %v1396_v43, %v1395_v39 }
 0x337   : > { %v1346_v47 = vpop.f32.mrf.mxu2  ;;  %2085 = vst [vmem:[#allocation4 + $0x30] sm:$0xff] %v2073_v46   ;;  %v1480_v49 = vunpack.c.l.b16 %v1412_v45 }
 0x338   : > { %v1347_v50 = vadd.f32 %v2633_v14, %v1346_v47 }
 0x339   : > { %v1489_v51 = vpack.c.b16 %v1480_v49, %v1479_v48 }
 0x33a   : > { %v1381_v52 = vmul.f32 0.01, %v1347_v50  ;;  %vm1365_vm14 = vcmp.ge.f32.partialorder %v1347_v50, 0.0 }
 0x33b   : > { %1585 = vmatmul.bf16.gmra.mxu3 %v1489_v51 }
 0x33c   : > { %v1397_v55 = vsel %vm1365_vm14, %v1347_v50, %v1381_v52 }
 0x33d   : > { %v1413_v57 = vpack.c.bf16 %v1397_v55, %v1397_v55 }
 0x33f   : > { %v1348_v53 = vpop.f32.mrf.mxu2  ;;  %v1481_v61 = vunpack.c.l.b16 %v1413_v57 }
 0x340   : > { %v1349_v54 = vadd.f32 %v2633_v14, %v1348_v53 }
 0x342   : > { %vm1366_vm15 = vcmp.ge.f32.partialorder %v1349_v54, 0.0  ;;  %v1382_v56 = vmul.f32 0.01, %v1349_v54 }
 0x344   : > { %v1398_v58 = vsel %vm1366_vm15, %v1349_v54, %v1382_v56 }
 0x345   : > { %v1414_v59 = vpack.c.bf16 %v1398_v58, %v1398_v58  ;;  %v2078_v60 = vpack.c.bf16 %v1398_v58, %v1397_v55 }
 0x347   : > { %2086 = vst [vmem:[#allocation4 + $0x38] sm:$0xff] %v2078_v60   ;;  %v1482_v62 = vunpack.c.l.b16 %v1414_v59 }
 0x349   : > { %v1490_v63 = vpack.c.b16 %v1482_v62, %v1481_v61 }
 0x34b   : > { %1590 = vmatmul.bf16.gmra.mxu3 %v1490_v63 }
 0x35e   : > { %v1556_v1 = vpop.f32.mrf.mxu3 }
 0x35f   : > { %v1557_v2 = vadd.f32 %v2174_v0, %v1556_v1 }
 0x361   : > { %1596 = vst [vmem:[#allocation6] sm:$0xff] %v1557_v2 }
 0x366   : > { %v1558_v14 = vpop.f32.mrf.mxu3 }
 0x367   : > { %v1559_v3 = vadd.f32 %v2174_v0, %v1558_v14 }
 0x369   : > { %1597 = vst [vmem:[#allocation6 + $0x8] sm:$0xff] %v1559_v3 }
 0x36e   : > { %v1561_v4 = vpop.f32.mrf.mxu3 }
 0x36f   : > { %v1562_v5 = vadd.f32 %v2174_v0, %v1561_v4 }
 0x371   : > { %1598 = vst [vmem:[#allocation6 + $0x10] sm:$0xff] %v1562_v5 }
 0x376   : > { %v1563_v6 = vpop.f32.mrf.mxu3 }
 0x377   : > { %v1564_v7 = vadd.f32 %v2174_v0, %v1563_v6 }
 0x379   : > { %1599 = vst [vmem:[#allocation6 + $0x18] sm:$0xff] %v1564_v7 }
 0x37e   : > { %v1566_v8 = vpop.f32.mrf.mxu3 }
 0x37f   : > { %v1567_v9 = vadd.f32 %v2174_v0, %v1566_v8 }
 0x381   : > { %1600 = vst [vmem:[#allocation6 + $0x20] sm:$0xff] %v1567_v9 }
 0x386   : > { %v1568_v10 = vpop.f32.mrf.mxu3 }
 0x387   : > { %v1569_v11 = vadd.f32 %v2174_v0, %v1568_v10 }
 0x389   : > { %1601 = vst [vmem:[#allocation6 + $0x28] sm:$0xff] %v1569_v11 }
 0x38e   : > { %v1571_v12 = vpop.f32.mrf.mxu3 }
 0x38f   : > { %v1572_v13 = vadd.f32 %v2174_v0, %v1571_v12 }
 0x391   : > { %1602 = vst [vmem:[#allocation6 + $0x30] sm:$0xff] %v1572_v13 }
 0x396   : > { %v1573_v15 = vpop.f32.mrf.mxu3 }
 0x397   : > { %v1574_v16 = vadd.f32 %v2174_v0, %v1573_v15 }
 0x399   : > { %1603 = vst [vmem:[#allocation6 + $0x38] sm:$0xff] %v1574_v16 }
 0x39e   : > { %v1576_v42 = vpop.f32.mrf.mxu3 }
 0x39f   : > { %v1577_v17 = vadd.f32 %v2174_v0, %v1576_v42 }
 0x3a1   : > { %1604 = vst [vmem:[#allocation6 + $0x40] sm:$0xff] %v1577_v17 }
 0x3a6   : > { %v1578_v18 = vpop.f32.mrf.mxu3 }
 0x3a7   : > { %v1579_v19 = vadd.f32 %v2174_v0, %v1578_v18 }
 0x3a9   : > { %1605 = vst [vmem:[#allocation6 + $0x48] sm:$0xff] %v1579_v19 }
 0x3ae   : > { %v1581_v44 = vpop.f32.mrf.mxu3 }
 0x3af   : > { %v1582_v20 = vadd.f32 %v2174_v0, %v1581_v44 }
 0x3b1   : > { %1606 = vst [vmem:[#allocation6 + $0x50] sm:$0xff] %v1582_v20 }
 0x3b6   : > { %v1583_v21 = vpop.f32.mrf.mxu3 }
 0x3b7   : > { %v1584_v22 = vadd.f32 %v2174_v0, %v1583_v21 }
 0x3b9   : > { %1607 = vst [vmem:[#allocation6 + $0x58] sm:$0xff] %v1584_v22 }
 0x3be   : > { %v1586_v23 = vpop.f32.mrf.mxu3 }
 0x3bf   : > { %v1587_v24 = vadd.f32 %v2174_v0, %v1586_v23 }
 0x3c1   : > { %1608 = vst [vmem:[#allocation6 + $0x60] sm:$0xff] %v1587_v24 }
 0x3c6   : > { %v1588_v25 = vpop.f32.mrf.mxu3 }
 0x3c7   : > { %v1589_v26 = vadd.f32 %v2174_v0, %v1588_v25 }
 0x3c9   : > { %1609 = vst [vmem:[#allocation6 + $0x68] sm:$0xff] %v1589_v26 }
 0x3ce   : > { %v1591_v27 = vpop.f32.mrf.mxu3 }
 0x3cf   : > { %v1592_v28 = vadd.f32 %v2174_v0, %v1591_v27 }
 0x3d1   : > { %1610 = vst [vmem:[#allocation6 + $0x70] sm:$0xff] %v1592_v28 }
 0x3d6   : > { %v1593_v29 = vpop.f32.mrf.mxu3 }
 0x3d7   : > { %v1594_v30 = vadd.f32 %v2174_v0, %v1593_v29 }
 0x3d9   : > { %1611 = vst [vmem:[#allocation6 + $0x78] sm:$0xff] %v1594_v30 }
 0x3da PF: > { %p2656_p12 = scmp.eq.s32.totalorder %s1742_s30, 1  ;;  %s1622_s19 = sshll.u32 %s2705_s12, 4  ;;  %s1623_s19 = int_to_ptr.hbm [resolvable:$true] %s1622_s19 }
 0x3db   : > { %s2280_s20 = smov [#allocation4]   ;;  %s2281_s27 = smov 64  }
 0x3dc   : > { %s1620_s21 = sshll.u32 %s2280_s20, 4  ;;  %s2282_s22 = smov 4   ;;  %s1621_s21 = int_to_ptr.vmem [resolvable:$true] %s1620_s21 }
 0x3dd   : > { %2112 = dma.vmem_to_hbm [thread:$0]  (%p2656_p12), %s1621_s21, 1024, %s1623_s19, [#allocation5], %s2281_s27, %s2281_s27, %s2282_s22  }
 0x3de   : > { %s2283_s23 = smov [#allocation6]   ;;  %s1639_s0 = sshll.u32 %s2706_s13, 4  ;;  %s1640_s0 = int_to_ptr.hbm [resolvable:$true] %s1639_s0 }
 0x3df   : > { %s1637_s30 = sshll.u32 %s2283_s23, 4  ;;  %s2284_s16 = smov 128   ;;  %s1638_s30 = int_to_ptr.vmem [resolvable:$true] %s1637_s30 }
 0x3e0   : > { %s2285_s18 = smov 8  }
 0x3e1   : > { %2114 = dma.vmem_to_hbm [thread:$0]  (%p2656_p12), %s1638_s30, 2048, %s1640_s0, [#allocation7], %s2284_s16, %s2284_s16, %s2285_s18  }
 0x3e2   : > { %2252 = dma.done.wait (%p2656_p12), [#allocation5], 1024  }
 0x3e3   : > { %2254 = vsyncadd (%p2656_p12), [#allocation5], 4294966272 }
 0x3e4   : > { %2256 = dma.done.wait (%p2656_p12), [#allocation7], 2048  }
 0x3e5   : > { %2258 = vsyncadd (%p2656_p12), [#allocation7], 4294965248 }
 0x3e6 PF: > { %s26_s29 = sadd.s32 1, %s2277_s29   ;;  %s2710_s25 = smov %s2265_s26 }
 0x3e7   : > { %p23_p13 = scmp.ge.s32.totalorder %s26_s29, 4   ;;  %s2711_s26 = smov %s2392_s17 }
 0x3e8   : > { %s2712_s27 = smov %s2273_s28  ;;  %s2713_s28 = smov %s2715_s14 }
 0x3e9   :  { %25 = sbr.rel (!%p23_p13) target bundleno = 6 (0x6), region = 165 }
 0x3ee   :  { %1661 = vsyncpa [#allocation5], 1 }
 0x3ef   :  { %1663 = vsyncpa [#allocation5 + $0x1], 1 }
 0x3f0   :  { %1664 = vsyncpa [#allocation7], 1 }

// kernel: hgin_forward.5
= control target key start
LH: loop header
LB: loop body
LE: loop exit
PB: predicated region body
PF: predicated region fallthrough
CT: control target
= control target key end

     0   :  { %s1943_s13 = smov 0   ;;  %s1945_s14 = smov 0   ;;  %s2234_s0 = inlined_call_operand.vmem [shape: bf16[128,256], index: 0, kind: input, shape index: {}]   ;;  %s2235_s1 = inlined_call_operand.vmem [shape: bf16[256,128], index: 1, kind: input, shape index: {}]   ;;  %s2236_s2 = inlined_call_operand.vmem [shape: bf16[128,128], index: 2, kind: input, shape index: {}]   ;;  %s2237_s3 = inlined_call_operand.vmem [shape: f32[1,128], index: 3, kind: input, shape index: {}]   ;;  %s2238_s4 = inlined_call_operand.vmem [shape: bf16[128,128], index: 4, kind: input, shape index: {}]   ;;  %s2239_s5 = inlined_call_operand.vmem [shape: f32[1,128], index: 5, kind: input, shape index: {}]   ;;  %s2240_s6 = inlined_call_operand.vmem [shape: bf16[128,128], index: 6, kind: input, shape index: {}]   ;;  %s2241_s7 = inlined_call_operand.vmem [shape: f32[1,128], index: 7, kind: input, shape index: {}]   ;;  %s2242_s8 = inlined_call_operand.vmem [shape: bf16[128,128], index: 8, kind: input, shape index: {}]   ;;  %s2243_s9 = inlined_call_operand.vmem [shape: f32[1,128], index: 9, kind: input, shape index: {}]   ;;  %s2244_s10 = inlined_call_operand.vmem [shape: bf16[128,128], index: 10, kind: output, shape index: {}]  }
   0x1   :  { %s1947_s15 = smov 0   ;;  %s1949_s16 = smov 0  }
   0x2   :  { %s1951_s17 = smov 0  }
   0x3 LB: > { %s29_s18 = sadd.s32 1, %s1881_s16  ;;  %p48_p1 = scmp.ne.s32.totalorder %s1873_s14, %s1869_s13  ;;  %s1885_s17 = sphi %s1951_s17, %s20_s17   ;;  %s1881_s16 = sphi %s1949_s16, %s2248_s16   ;;  %s1877_s15 = sphi %s1947_s15, %s2247_s15   ;;  %s1873_s14 = sphi %s1945_s14, %s2246_s14   ;;  %s1869_s13 = sphi %s1943_s13, %s2245_s13  }
   0x4   : > { %p30_p0 = scmp.ge.s32.totalorder %s29_s18, 2  ;;  %p49_p2 = scmp.eq.s32.totalorder %s1885_s17, 0 }
   0x5   : > { %s41_s20 = sadd.s32 1, %s1873_s14  ;;  %p1454_p5 = scmp.ge.s32.totalorder %s1885_s17, 2 }
   0x6   : > { %s2250_s18 = smov (%p30_p0, %s29_s18), 0  ;;  %p50_p3 = por %p49_p2, %p48_p1 }
   0x7   : > { %s37_s19 = ssub.s32 %s1881_s16, %s2250_s18  ;;  %329 = sbr.rel (%p1454_p5) target bundleno = 32 (0x20), region = 48 }
   0x8   : > { %p39_p4 = scmp.eq.s32.totalorder %s37_s19, 0 }
   0xa   : > { %s1978_s21 = scalar_select %p39_p4, %s1873_s14, %s41_s20  }
   0xc   : > { %332 = sbr.rel (!%p50_p3) target bundleno = 32 (0x20), region = 52  ;;  %s334_s22 = sand.u32 (%p50_p3), 1, %s1873_s14  }
   0xd   : > { %s1456_s23 = sshll.u32 (%p50_p3), %s1881_s16, 2  ;;  %s1455_s24 = sshll.u32 (%p50_p3), %s334_s22, 6 }
   0xe   : > { %s1986_s27 = scalar_lea.vmem (%p50_p3), %s2234_s0, %s1456_s23  ;;  %s336_s28 = scalar_lea.vmem (%p50_p3), [#allocation3], %s1455_s24 }
   0xf   : > { %v358_v0 = vld [vmem:[%s1986_s27] sm:$0xf] (%p50_p3)  ;;  %v360_v1 = vld [vmem:[%s1986_s27 + $0x8] sm:$0xf] (%p50_p3)  ;;  %v362_v2 = vld [vmem:[%s1986_s27 + $0x10] sm:$0xf] (%p50_p3) }
  0x10   : > { %359 = vst [vmem:[%s336_s28] sm:$0xf] (%p50_p3), %v358_v0  ;;  %v364_v3 = vld [vmem:[%s1986_s27 + $0x18] sm:$0xf] (%p50_p3)  ;;  %v366_v4 = vld [vmem:[%s1986_s27 + $0x20] sm:$0xf] (%p50_p3) }
  0x11   : > { %361 = vst [vmem:[%s336_s28 + $0x4] sm:$0xf] %v360_v1  ;;  %v368_v5 = vld [vmem:[%s1986_s27 + $0x28] sm:$0xf]  ;;  %v370_v6 = vld [vmem:[%s1986_s27 + $0x30] sm:$0xf] }
  0x12   : > { %363 = vst [vmem:[%s336_s28 + $0x8] sm:$0xf] %v362_v2  ;;  %v372_v7 = vld [vmem:[%s1986_s27 + $0x38] sm:$0xf]  ;;  %v374_v8 = vld [vmem:[%s1986_s27 + $0x40] sm:$0xf] }
  0x13   : > { %365 = vst [vmem:[%s336_s28 + $0xc] sm:$0xf] %v364_v3  ;;  %v376_v9 = vld [vmem:[%s1986_s27 + $0x48] sm:$0xf]  ;;  %v378_v10 = vld [vmem:[%s1986_s27 + $0x50] sm:$0xf] }
  0x14   : > { %367 = vst [vmem:[%s336_s28 + $0x10] sm:$0xf] %v366_v4  ;;  %v380_v11 = vld [vmem:[%s1986_s27 + $0x58] sm:$0xf]  ;;  %v382_v12 = vld [vmem:[%s1986_s27 + $0x60] sm:$0xf] }
  0x15   : > { %369 = vst [vmem:[%s336_s28 + $0x14] sm:$0xf] %v368_v5  ;;  %v384_v13 = vld [vmem:[%s1986_s27 + $0x68] sm:$0xf]  ;;  %v386_v14 = vld [vmem:[%s1986_s27 + $0x70] sm:$0xf] }
  0x16   : > { %371 = vst [vmem:[%s336_s28 + $0x18] sm:$0xf] %v370_v6  ;;  %v388_v15 = vld [vmem:[%s1986_s27 + $0x78] sm:$0xf] }
  0x17   : > { %373 = vst [vmem:[%s336_s28 + $0x1c] sm:$0xf] %v372_v7 }
  0x18   : > { %375 = vst [vmem:[%s336_s28 + $0x20] sm:$0xf] %v374_v8 }
  0x19   : > { %377 = vst [vmem:[%s336_s28 + $0x24] sm:$0xf] %v376_v9 }
  0x1a   : > { %379 = vst [vmem:[%s336_s28 + $0x28] sm:$0xf] %v378_v10 }
  0x1b   : > { %381 = vst [vmem:[%s336_s28 + $0x2c] sm:$0xf] %v380_v11 }
  0x1c   : > { %383 = vst [vmem:[%s336_s28 + $0x30] sm:$0xf] %v382_v12 }
  0x1d   : > { %385 = vst [vmem:[%s336_s28 + $0x34] sm:$0xf] %v384_v13 }
  0x1e   : > { %387 = vst [vmem:[%s336_s28 + $0x38] sm:$0xf] %v386_v14 }
  0x1f   : > { %389 = vst [vmem:[%s336_s28 + $0x3c] sm:$0xf] %v388_v15 }
  0x20 PF: > { %p1457_p6 = scmp.ge.s32.totalorder %s1885_s17, 1  ;;  %p453_p7 = scmp.lt.s32.totalorder %s1885_s17, 3 }
  0x22   : > { %p454_p8 = pnand %p1457_p6, %p453_p7 }
  0x23   : > { %s460_s29 = sand.u32 (!%p454_p8), 1, %s1869_s13   ;;  %s1459_s30 = sshll.u32 (!%p454_p8), %s1877_s15, 4 }
  0x24   : > { %457 = sbr.rel (%p454_p8) target bundleno = 798 (0x31e), region = 97  ;;  %s1458_s11 = sshll.u32 (!%p454_p8), %s460_s29, 6 }
  0x25   : > { %p509_p9 = scmp.lt.s32.totalorder (!%p454_p8), %s1459_s30, 31  ;;  %s2013_s23 = scalar_lea.vmem (!%p454_p8), [#allocation3], %s1458_s11 }
  0x26   : > { %p1461_p10 = scmp.ne.s32.totalorder (!%p454_p8), %s1877_s15, 0 }
  0x29   : > { %s2252_s30 = smov (!%p509_p9, %s1459_s30), 31  ;;  %529 = sbr.rel (%p1461_p10) target bundleno = 63 (0x3f), region = 105 }
  0x2a   : > { %s1460_s12 = sshll.u32 %s2252_s30, 2 }
  0x2b   : > { %s2011_s22 = scalar_lea.vmem %s2235_s1, %s1460_s12 }
  0x2e   : > { %v1887_v16 = vmov 0.0  }
  0x2f   : > { %530 = vst [vmem:[#allocation2 + $0x30] sm:$0xff] %v1887_v16 }
  0x30   : > { %531 = vst [vmem:[#allocation2] sm:$0xff] %v1887_v16 }
  0x31   : > { %532 = vst [vmem:[#allocation2 + $0x58] sm:$0xff] %v1887_v16 }
  0x32   : > { %533 = vst [vmem:[#allocation2 + $0x18] sm:$0xff] %v1887_v16 }
  0x33   : > { %534 = vst [vmem:[#allocation2 + $0x50] sm:$0xff] %v1887_v16 }
  0x34   : > { %535 = vst [vmem:[#allocation2 + $0x68] sm:$0xff] %v1887_v16 }
  0x35   : > { %536 = vst [vmem:[#allocation2 + $0x8] sm:$0xff] %v1887_v16 }
  0x36   : > { %537 = vst [vmem:[#allocation2 + $0x48] sm:$0xff] %v1887_v16 }
  0x37   : > { %538 = vst [vmem:[#allocation2 + $0x40] sm:$0xff] %v1887_v16 }
  0x38   : > { %539 = vst [vmem:[#allocation2 + $0x20] sm:$0xff] %v1887_v16 }
  0x39   : > { %540 = vst [vmem:[#allocation2 + $0x10] sm:$0xff] %v1887_v16 }
  0x3a   : > { %541 = vst [vmem:[#allocation2 + $0x38] sm:$0xff] %v1887_v16 }
  0x3b   : > { %542 = vst [vmem:[#allocation2 + $0x60] sm:$0xff] %v1887_v16 }
  0x3c   : > { %543 = vst [vmem:[#allocation2 + $0x70] sm:$0xff] %v1887_v16 }
  0x3d   : > { %544 = vst [vmem:[#allocation2 + $0x78] sm:$0xff] %v1887_v16 }
  0x3e   : > { %545 = vst [vmem:[#allocation2 + $0x28] sm:$0xff] %v1887_v16 }
  0x3f PF: > { %v1674_v17 = vld [vmem:[%s2011_s22 + $0x38] sm:$0xff]  ;;  %v1673_v18 = vld [vmem:[%s2011_s22 + $0x30] sm:$0xff]  ;;  %v1672_v19 = vld [vmem:[%s2011_s22 + $0x28] sm:$0xff]  ;;  %p1526_p11 = scmp.ne.s32.totalorder %s1877_s15, 1 }
  0x40   : > { %690 = vmatpush.bf16.msra.mxu0 %v1674_v17  ;;  %1754 = vmatpush.bf16.msra.mxu1 %v1674_v17  ;;  %v1671_v20 = vld [vmem:[%s2011_s22 + $0x20] sm:$0xff]  ;;  %v1670_v21 = vld [vmem:[%s2011_s22 + $0x18] sm:$0xff]  ;;  %v1669_v22 = vld [vmem:[%s2011_s22 + $0x10] sm:$0xff] }
  0x41   : > { %1755 = vmatpush.bf16.msra.mxu2 %v1674_v17  ;;  %1756 = vmatpush.bf16.msra.mxu3 %v1674_v17  ;;  %v1668_v23 = vld [vmem:[%s2011_s22 + $0x8] sm:$0xff]  ;;  %v1667_v24 = vld [vmem:[%s2011_s22] sm:$0xff]  ;;  %v1661_v26 = vld [vmem:[%s2013_s23 + $0x10] sm:$0xff] }
  0x42   : > { %v1659_v25 = vld [vmem:[%s2013_s23] sm:$0xff]  ;;  %v1665_v28 = vld [vmem:[%s2013_s23 + $0x30] sm:$0xff]  ;;  %v1660_v29 = vld [vmem:[%s2013_s23 + $0x8] sm:$0xff] }
  0x43   : > { %v1663_v27 = vld [vmem:[%s2013_s23 + $0x20] sm:$0xff]  ;;  %v1662_v30 = vld [vmem:[%s2013_s23 + $0x18] sm:$0xff]  ;;  %v1664_v31 = vld [vmem:[%s2013_s23 + $0x28] sm:$0xff] }
  0x44   : > { %691 = vmatpush.bf16.msra.mxu0 %v1673_v18  ;;  %1757 = vmatpush.bf16.msra.mxu1 %v1673_v18  ;;  %v1666_v32 = vld [vmem:[%s2013_s23 + $0x38] sm:$0xff]  ;;  %v546_v33 = vld [vmem:[#allocation2 + $0x30] sm:$0xff]  ;;  %v554_v39 = vld [vmem:[#allocation2 + $0x40] sm:$0xff] }
  0x45   : > { %1758 = vmatpush.bf16.msra.mxu2 %v1673_v18  ;;  %1759 = vmatpush.bf16.msra.mxu3 %v1673_v18  ;;  %v550_v34 = vld [vmem:[#allocation2 + $0x50] sm:$0xff]  ;;  %v558_v40 = vld [vmem:[#allocation2 + $0x60] sm:$0xff]  ;;  %v551_v42 = vld [vmem:[#allocation2 + $0x68] sm:$0xff] }
  0x46   : > { %v547_v41 = vld [vmem:[#allocation2] sm:$0xff]  ;;  %v559_v52 = vld [vmem:[#allocation2 + $0x70] sm:$0xff]  ;;  %v548_v53 = vld [vmem:[#allocation2 + $0x58] sm:$0xff] }
  0x47   : > { %v555_v51 = vld [vmem:[#allocation2 + $0x20] sm:$0xff]  ;;  %v552_v54 = vld [vmem:[#allocation2 + $0x8] sm:$0xff]  ;;  %v556_v63 = vld [vmem:[#allocation2 + $0x10] sm:$0xff] }
  0x48   : > { %692 = vmatpush.bf16.msra.mxu0 %v1672_v19  ;;  %1760 = vmatpush.bf16.msra.mxu1 %v1672_v19  ;;  %v560_v0 = vld [vmem:[#allocation2 + $0x78] sm:$0xff]  ;;  %v553_v2 = vld [vmem:[#allocation2 + $0x48] sm:$0xff] }
  0x49   : > { %1761 = vmatpush.bf16.msra.mxu2 %v1672_v19  ;;  %1762 = vmatpush.bf16.msra.mxu3 %v1672_v19  ;;  %v549_v1 = vld [vmem:[#allocation2 + $0x18] sm:$0xff]  ;;  %v561_v12 = vld [vmem:[#allocation2 + $0x28] sm:$0xff] }
  0x4a   : > { %v557_v11 = vld [vmem:[#allocation2 + $0x38] sm:$0xff] }
  0x4c   : > { %693 = vmatpush.bf16.msra.mxu0 %v1671_v20  ;;  %1763 = vmatpush.bf16.msra.mxu1 %v1671_v20 }
  0x4d   : > { %1764 = vmatpush.bf16.msra.mxu2 %v1671_v20  ;;  %1765 = vmatpush.bf16.msra.mxu3 %v1671_v20 }
  0x50   : > { %694 = vmatpush.bf16.msra.mxu0 %v1670_v21  ;;  %1766 = vmatpush.bf16.msra.mxu1 %v1670_v21 }
  0x51   : > { %1767 = vmatpush.bf16.msra.mxu2 %v1670_v21  ;;  %1768 = vmatpush.bf16.msra.mxu3 %v1670_v21 }
  0x54   : > { %695 = vmatpush.bf16.msra.mxu0 %v1669_v22  ;;  %1769 = vmatpush.bf16.msra.mxu1 %v1669_v22 }
  0x55   : > { %1770 = vmatpush.bf16.msra.mxu2 %v1669_v22  ;;  %1771 = vmatpush.bf16.msra.mxu3 %v1669_v22 }
  0x58   : > { %696 = vmatpush.bf16.msra.mxu0 %v1668_v23  ;;  %1772 = vmatpush.bf16.msra.mxu1 %v1668_v23 }
  0x59   : > { %1773 = vmatpush.bf16.msra.mxu2 %v1668_v23  ;;  %1774 = vmatpush.bf16.msra.mxu3 %v1668_v23 }
  0x5c   : > { %697 = vmatpush.bf16.msra.mxu0 %v1667_v24  ;;  %1775 = vmatpush.bf16.msra.mxu1 %v1667_v24 }
  0x5d   : > { %1776 = vmatpush.bf16.msra.mxu2 %v1667_v24  ;;  %1777 = vmatpush.bf16.msra.mxu3 %v1667_v24 }
  0x5f   : > { %698 = vmatmul.bf16.vlgmr.msra.gmra.mxu0 %v1659_v25  ;;  %708 = vmatmul.bf16.vlgmr.msra.gmra.mxu1 %v1661_v26 }
  0x60   : > { %718 = vmatmul.bf16.vlgmr.msra.gmra.mxu2 %v1663_v27  ;;  %728 = vmatmul.bf16.vlgmr.msra.gmra.mxu3 %v1665_v28 }
  0x6f   : > { %703 = vmatmul.bf16.gmra.mxu0 %v1660_v29  ;;  %713 = vmatmul.bf16.gmra.mxu1 %v1662_v30 }
  0x70   : > { %723 = vmatmul.bf16.gmra.mxu2 %v1664_v31  ;;  %733 = vmatmul.bf16.gmra.mxu3 %v1666_v32 }
  0xdc   : > { %v699_v35 = vpop.f32.mrf.mxu0  ;;  %v709_v36 = vpop.f32.mrf.mxu1 }
  0xdd   : > { %v739_v37 = vadd.f32 %v699_v35, %v546_v33  ;;  %v743_v38 = vadd.f32 %v709_v36, %v550_v34 }
  0xdf   : > { %755 = vst [vmem:[#allocation2 + $0x30] sm:$0xff] %v739_v37 }
  0xe0   : > { %759 = vst [vmem:[#allocation2 + $0x50] sm:$0xff] %v743_v38 }
  0xe3   : > { %v719_v43 = vpop.f32.mrf.mxu2  ;;  %v729_v44 = vpop.f32.mrf.mxu3 }
  0xe4   : > { %v747_v45 = vadd.f32 %v719_v43, %v554_v39  ;;  %v751_v46 = vadd.f32 %v729_v44, %v558_v40  ;;  %v701_v47 = vpop.f32.mrf.mxu0  ;;  %v711_v48 = vpop.f32.mrf.mxu1 }
  0xe5   : > { %v740_v49 = vadd.f32 %v701_v47, %v547_v41  ;;  %v744_v50 = vadd.f32 %v711_v48, %v551_v42 }
  0xe6   : > { %763 = vst [vmem:[#allocation2 + $0x40] sm:$0xff] %v747_v45 }
  0xe7   : > { %767 = vst [vmem:[#allocation2 + $0x60] sm:$0xff] %v751_v46 }
  0xe8   : > { %756 = vst [vmem:[#allocation2] sm:$0xff] %v740_v49 }
  0xe9   : > { %760 = vst [vmem:[#allocation2 + $0x68] sm:$0xff] %v744_v50 }
  0xeb   : > { %v721_v55 = vpop.f32.mrf.mxu2  ;;  %v731_v56 = vpop.f32.mrf.mxu3 }
  0xec   : > { %v748_v57 = vadd.f32 %v721_v55, %v555_v51  ;;  %v752_v58 = vadd.f32 %v731_v56, %v559_v52  ;;  %v704_v59 = vpop.f32.mrf.mxu0  ;;  %v714_v60 = vpop.f32.mrf.mxu1 }
  0xed   : > { %v741_v61 = vadd.f32 %v704_v59, %v548_v53  ;;  %v745_v62 = vadd.f32 %v714_v60, %v552_v54 }
  0xee   : > { %764 = vst [vmem:[#allocation2 + $0x20] sm:$0xff] %v748_v57 }
  0xef   : > { %768 = vst [vmem:[#allocation2 + $0x70] sm:$0xff] %v752_v58 }
  0xf0   : > { %757 = vst [vmem:[#allocation2 + $0x58] sm:$0xff] %v741_v61 }
  0xf1   : > { %761 = vst [vmem:[#allocation2 + $0x8] sm:$0xff] %v745_v62 }
  0xf3   : > { %v724_v3 = vpop.f32.mrf.mxu2  ;;  %v734_v4 = vpop.f32.mrf.mxu3 }
  0xf4   : > { %v749_v5 = vadd.f32 %v724_v3, %v556_v63  ;;  %v753_v6 = vadd.f32 %v734_v4, %v560_v0  ;;  %v706_v7 = vpop.f32.mrf.mxu0  ;;  %v716_v8 = vpop.f32.mrf.mxu1 }
  0xf5   : > { %v742_v9 = vadd.f32 %v706_v7, %v549_v1  ;;  %v746_v10 = vadd.f32 %v716_v8, %v553_v2 }
  0xf6   : > { %765 = vst [vmem:[#allocation2 + $0x10] sm:$0xff] %v749_v5 }
  0xf7   : > { %769 = vst [vmem:[#allocation2 + $0x78] sm:$0xff] %v753_v6 }
  0xf8   : > { %758 = vst [vmem:[#allocation2 + $0x18] sm:$0xff] %v742_v9 }
  0xf9   : > { %762 = vst [vmem:[#allocation2 + $0x48] sm:$0xff] %v746_v10 }
  0xfb   : > { %v726_v13 = vpop.f32.mrf.mxu2  ;;  %v736_v14 = vpop.f32.mrf.mxu3  ;;  %774 = sbr.rel (%p1526_p11) target bundleno = 798 (0x31e), region = 109 }
  0xfc   : > { %v750_v15 = vadd.f32 %v726_v13, %v557_v11  ;;  %v754_v16 = vadd.f32 %v736_v14, %v561_v12 }
  0xfe   : > { %766 = vst [vmem:[#allocation2 + $0x38] sm:$0xff] %v750_v15 }
  0xff   : > { %770 = vst [vmem:[#allocation2 + $0x28] sm:$0xff] %v754_v16 }
 0x100   : > { %v1690_v17 = vld [vmem:[%s2238_s4 + $0x38] sm:$0xff]  ;;  %v1689_v18 = vld [vmem:[%s2238_s4 + $0x30] sm:$0xff]  ;;  %v1688_v19 = vld [vmem:[%s2238_s4 + $0x28] sm:$0xff] }
 0x101   : > { %907 = vmatpush.bf16.msra.mxu0 %v1690_v17  ;;  %1778 = vmatpush.bf16.msra.mxu3 %v1690_v17  ;;  %v1687_v20 = vld [vmem:[%s2238_s4 + $0x20] sm:$0xff]  ;;  %v1686_v21 = vld [vmem:[%s2238_s4 + $0x18] sm:$0xff]  ;;  %v1685_v22 = vld [vmem:[%s2238_s4 + $0x10] sm:$0xff] }
 0x102   : > { %v1684_v23 = vld [vmem:[%s2238_s4 + $0x8] sm:$0xff]  ;;  %v1683_v24 = vld [vmem:[%s2238_s4] sm:$0xff]  ;;  %v1681_v26 = vld [vmem:[%s2236_s2 + $0x30] sm:$0xff] }
 0x103   : > { %v1675_v25 = vld [vmem:[%s2236_s2] sm:$0xff]  ;;  %v1676_v27 = vld [vmem:[%s2236_s2 + $0x8] sm:$0xff]  ;;  %v1682_v28 = vld [vmem:[%s2236_s2 + $0x38] sm:$0xff] }
 0x104   : > { %v1677_v29 = vld [vmem:[%s2236_s2 + $0x10] sm:$0xff]  ;;  %v1678_v30 = vld [vmem:[%s2236_s2 + $0x18] sm:$0xff]  ;;  %v1696_v33 = vld [vmem:[%s2240_s6 + $0x28] sm:$0xff] }
 0x105   : > { %908 = vmatpush.bf16.msra.mxu0 %v1689_v18  ;;  %1779 = vmatpush.bf16.msra.mxu3 %v1689_v18  ;;  %v1698_v31 = vld [vmem:[%s2240_s6 + $0x38] sm:$0xff]  ;;  %v1697_v32 = vld [vmem:[%s2240_s6 + $0x30] sm:$0xff]  ;;  %v1695_v34 = vld [vmem:[%s2240_s6 + $0x20] sm:$0xff] }
 0x106   : > { %1084 = vmatpush.bf16.msra.mxu1 %v1698_v31  ;;  %v1679_v35 = vld [vmem:[%s2236_s2 + $0x20] sm:$0xff]  ;;  %v1680_v36 = vld [vmem:[%s2236_s2 + $0x28] sm:$0xff]  ;;  %v1694_v37 = vld [vmem:[%s2240_s6 + $0x18] sm:$0xff] }
 0x107   : > { %v1693_v38 = vld [vmem:[%s2240_s6 + $0x10] sm:$0xff]  ;;  %v1692_v39 = vld [vmem:[%s2240_s6 + $0x8] sm:$0xff]  ;;  %v1691_v40 = vld [vmem:[%s2240_s6] sm:$0xff] }
 0x108   : > { %v2108_v42 = vld [vmem:[%s2239_s5] ss:$0 sm:$0xff]  ;;  %v976_v50 = vld [vmem:[#allocation2 + $0x30] sm:$0xff]  ;;  %v978_v8 = vld [vmem:[#allocation2 + $0x58] sm:$0xff] }
 0x109   : > { %909 = vmatpush.bf16.msra.mxu0 %v1688_v19  ;;  %1780 = vmatpush.bf16.msra.mxu3 %v1688_v19  ;;  %v2114_v44 = vld [vmem:[%s2237_s3] ss:$0 sm:$0xff]  ;;  %v989_v61 = vld [vmem:[#allocation2 + $0x70] sm:$0xff]  ;;  %v979_v9 = vld [vmem:[#allocation2 + $0x18] sm:$0xff] }
 0x10a   : > { %1085 = vmatpush.bf16.msra.mxu1 %v1697_v32  ;;  %v977_v51 = vld [vmem:[#allocation2] sm:$0xff]  ;;  %v990_v15 = vld [vmem:[#allocation2 + $0x78] sm:$0xff]  ;;  %v991_v19 = vld [vmem:[#allocation2 + $0x28] sm:$0xff] }
 0x10b   : > { %v988_v56 = vld [vmem:[#allocation2 + $0x60] sm:$0xff] }
 0x10d   : > { %910 = vmatpush.bf16.msra.mxu0 %v1687_v20  ;;  %1781 = vmatpush.bf16.msra.mxu3 %v1687_v20 }
 0x10e   : > { %1086 = vmatpush.bf16.msra.mxu1 %v1696_v33 }
 0x111   : > { %911 = vmatpush.bf16.msra.mxu0 %v1686_v21  ;;  %1782 = vmatpush.bf16.msra.mxu3 %v1686_v21 }
 0x112   : > { %1087 = vmatpush.bf16.msra.mxu1 %v1695_v34 }
 0x115   : > { %912 = vmatpush.bf16.msra.mxu0 %v1685_v22  ;;  %1783 = vmatpush.bf16.msra.mxu3 %v1685_v22 }
 0x116   : > { %1088 = vmatpush.bf16.msra.mxu1 %v1694_v37 }
 0x119   : > { %913 = vmatpush.bf16.msra.mxu0 %v1684_v23  ;;  %1784 = vmatpush.bf16.msra.mxu3 %v1684_v23 }
 0x11a   : > { %1089 = vmatpush.bf16.msra.mxu1 %v1693_v38 }
 0x11d   : > { %914 = vmatpush.bf16.msra.mxu0 %v1683_v24  ;;  %1785 = vmatpush.bf16.msra.mxu3 %v1683_v24 }
 0x11e   : > { %1090 = vmatpush.bf16.msra.mxu1 %v1692_v39 }
 0x120   : > { %915 = vmatmul.bf16.vlgmr.msra.gmra.mxu0 %v1675_v25  ;;  %945 = vmatmul.bf16.vlgmr.msra.gmra.mxu3 %v1681_v26 }
 0x121   : > { %1786 = vmatpush.bf16.msrb.mxu3 %v1698_v31 }
 0x122   : > { %1091 = vmatpush.bf16.msra.mxu1 %v1691_v40 }
 0x125   : > { %1787 = vmatpush.bf16.msrb.mxu3 %v1697_v32 }
 0x129   : > { %1788 = vmatpush.bf16.msrb.mxu3 %v1696_v33 }
 0x12d   : > { %1789 = vmatpush.bf16.msrb.mxu3 %v1695_v34 }
 0x130   : > { %920 = vmatmul.bf16.gmra.mxu0 %v1676_v27  ;;  %950 = vmatmul.bf16.gmra.mxu3 %v1682_v28  ;;  %v980_v28 = vld [vmem:[#allocation2 + $0x50] sm:$0xff] }
 0x131   : > { %1790 = vmatpush.bf16.msrb.mxu3 %v1694_v37 }
 0x135   : > { %1791 = vmatpush.bf16.msrb.mxu3 %v1693_v38 }
 0x139   : > { %1792 = vmatpush.bf16.msrb.mxu3 %v1692_v39  ;;  %v982_v39 = vld [vmem:[#allocation2 + $0x8] sm:$0xff] }
 0x13d   : > { %1793 = vmatpush.bf16.msrb.mxu3 %v1691_v40  ;;  %v983_v40 = vld [vmem:[#allocation2 + $0x48] sm:$0xff] }
 0x140   : > { %925 = vmatmul.bf16.gmra.mxu0 %v1677_v29  ;;  %v981_v29 = vld [vmem:[#allocation2 + $0x68] sm:$0xff] }
 0x150   : > { %930 = vmatmul.bf16.gmra.mxu0 %v1678_v30 }
 0x160   : > { %935 = vmatmul.bf16.gmra.mxu0 %v1679_v35 }
 0x170   : > { %940 = vmatmul.bf16.gmra.mxu0 %v1680_v36 }
 0x19d   : > { %v916_v41 = vpop.f32.mrf.mxu0 }
 0x19e   : > { %v917_v43 = vadd.f32 %v2108_v42, %v916_v41 }
 0x1a0   : > { %v960_v47 = vmul.f32 %v2114_v44, %v917_v43 }
 0x1a2   : > { %v992_v53 = vadd.f32 %v976_v50, %v960_v47 }
 0x1a3   : > { %v946_v45 = vpop.f32.mrf.mxu3 }
 0x1a4   : > { %v947_v49 = vadd.f32 %v2108_v42, %v946_v45 }
 0x1a5   : > { %v918_v46 = vpop.f32.mrf.mxu0 }
 0x1a6   : > { %v919_v48 = vadd.f32 %v2108_v42, %v918_v46  ;;  %v972_v55 = vmul.f32 %v2114_v44, %v947_v49  ;;  %v1705_v49 = vld [vmem:[%s2242_s8 + $0x30] sm:$0xff] }
 0x1a8   : > { %v961_v52 = vmul.f32 %v2114_v44, %v919_v48  ;;  %v1004_v62 = vadd.f32 %v988_v56, %v972_v55  ;;  %v1706_v48 = vld [vmem:[%s2242_s8 + $0x38] sm:$0xff]  ;;  %v984_v55 = vld [vmem:[#allocation2 + $0x40] sm:$0xff] }
 0x1a9   : > { %1225 = vmatpush.bf16.msra.mxu2 %v1706_v48  ;;  %1794 = vmatpush.bf16.msra.mxu3 %v1706_v48  ;;  %v985_v56 = vld [vmem:[#allocation2 + $0x20] sm:$0xff] }
 0x1aa   : > { %v993_v54 = vadd.f32 %v977_v51, %v961_v52  ;;  %v1704_v51 = vld [vmem:[%s2242_s8 + $0x28] sm:$0xff] }
 0x1ab   : > { %v948_v57 = vpop.f32.mrf.mxu3 }
 0x1ac   : > { %v1008_v58 = vpack.c.bf16 %v993_v54, %v992_v53  ;;  %v949_v59 = vadd.f32 %v2108_v42, %v948_v57 }
 0x1ad   : > { %v921_v60 = vpop.f32.mrf.mxu0  ;;  %1226 = vmatpush.bf16.msra.mxu2 %v1705_v49  ;;  %1795 = vmatpush.bf16.msra.mxu3 %v1705_v49 }
 0x1ae   : > { %1092 = vmatmul.bf16.vlgmr.msra.gmra.mxu1 %v1008_v58  ;;  %v973_v63 = vmul.f32 %v2114_v44, %v949_v59  ;;  %v922_v1 = vadd.f32 %v2108_v42, %v921_v60  ;;  %v1703_v58 = vld [vmem:[%s2242_s8 + $0x20] sm:$0xff] }
 0x1b0   : > { %v1005_v0 = vadd.f32 %v989_v61, %v973_v63  ;;  %v962_v5 = vmul.f32 %v2114_v44, %v922_v1 }
 0x1b1   : > { %1227 = vmatpush.bf16.msra.mxu2 %v1704_v51  ;;  %1796 = vmatpush.bf16.msra.mxu3 %v1704_v51 }
 0x1b2   : > { %v1014_v2 = vpack.c.bf16 %v1005_v0, %v1004_v62  ;;  %v994_v11 = vadd.f32 %v978_v8, %v962_v5 }
 0x1b3   : > { %v951_v3 = vpop.f32.mrf.mxu3 }
 0x1b4   : > { %1122 = vmatmul.bf16.vlgmr.msrb.gmra.mxu3 %v1014_v2  ;;  %v952_v7 = vadd.f32 %v2108_v42, %v951_v3  ;;  %v986_v3 = vld [vmem:[#allocation2 + $0x10] sm:$0xff] }
 0x1b5   : > { %v923_v4 = vpop.f32.mrf.mxu0  ;;  %1228 = vmatpush.bf16.msra.mxu2 %v1703_v58  ;;  %1797 = vmatpush.bf16.msra.mxu3 %v1703_v58 }
 0x1b6   : > { %v924_v6 = vadd.f32 %v2108_v42, %v923_v4  ;;  %v974_v13 = vmul.f32 %v2114_v44, %v952_v7  ;;  %v987_v4 = vld [vmem:[#allocation2 + $0x38] sm:$0xff] }
 0x1b8   : > { %v963_v10 = vmul.f32 %v2114_v44, %v924_v6  ;;  %v1006_v21 = vadd.f32 %v990_v15, %v974_v13 }
 0x1ba   : > { %v995_v12 = vadd.f32 %v979_v9, %v963_v10  ;;  %v1702_v9 = vld [vmem:[%s2242_s8 + $0x18] sm:$0xff]  ;;  %v1701_v10 = vld [vmem:[%s2242_s8 + $0x10] sm:$0xff] }
 0x1bb   : > { %v953_v14 = vpop.f32.mrf.mxu3  ;;  %1229 = vmatpush.bf16.msra.mxu2 %v1702_v9  ;;  %1798 = vmatpush.bf16.msra.mxu3 %v1702_v9 }
 0x1bc   : > { %v1009_v16 = vpack.c.bf16 %v995_v12, %v994_v11  ;;  %v954_v17 = vadd.f32 %v2108_v42, %v953_v14  ;;  %v1845_v12 = vld [vmem:[%s2241_s7] ss:$0 sm:$0xff] }
 0x1bd   : > { %v926_v18 = vpop.f32.mrf.mxu0 }
 0x1be   : > { %1097 = vmatmul.bf16.gmra.mxu1 %v1009_v16  ;;  %v975_v20 = vmul.f32 %v2114_v44, %v954_v17  ;;  %v927_v23 = vadd.f32 %v2108_v42, %v926_v18 }
 0x1bf   : > { %1230 = vmatpush.bf16.msra.mxu2 %v1701_v10  ;;  %1799 = vmatpush.bf16.msra.mxu3 %v1701_v10 }
 0x1c0   : > { %v1007_v22 = vadd.f32 %v991_v19, %v975_v20  ;;  %v964_v26 = vmul.f32 %v2114_v44, %v927_v23 }
 0x1c2   : > { %v1015_v24 = vpack.c.bf16 %v1007_v22, %v1006_v21  ;;  %v996_v31 = vadd.f32 %v980_v28, %v964_v26 }
 0x1c4   : > { %1127 = vmatmul.bf16.gmra.mxu3 %v1015_v24 }
 0x1c5   : > { %v928_v25 = vpop.f32.mrf.mxu0 }
 0x1c6   : > { %v929_v27 = vadd.f32 %v2108_v42, %v928_v25 }
 0x1c8   : > { %v965_v30 = vmul.f32 %v2114_v44, %v929_v27 }
 0x1ca   : > { %v997_v32 = vadd.f32 %v981_v29, %v965_v30 }
 0x1cc   : > { %v1010_v33 = vpack.c.bf16 %v997_v32, %v996_v31 }
 0x1cd   : > { %v931_v34 = vpop.f32.mrf.mxu0 }
 0x1ce   : > { %1102 = vmatmul.bf16.gmra.mxu1 %v1010_v33  ;;  %v932_v35 = vadd.f32 %v2108_v42, %v931_v34 }
 0x1d0   : > { %v966_v37 = vmul.f32 %v2114_v44, %v932_v35 }
 0x1d2   : > { %v998_v43 = vadd.f32 %v982_v39, %v966_v37 }
 0x1d5   : > { %v933_v36 = vpop.f32.mrf.mxu0 }
 0x1d6   : > { %v934_v38 = vadd.f32 %v2108_v42, %v933_v36 }
 0x1d8   : > { %v967_v41 = vmul.f32 %v2114_v44, %v934_v38 }
 0x1da   : > { %v999_v45 = vadd.f32 %v983_v40, %v967_v41 }
 0x1dc   : > { %v1011_v46 = vpack.c.bf16 %v999_v45, %v998_v43 }
 0x1dd   : > { %v936_v47 = vpop.f32.mrf.mxu0 }
 0x1de   : > { %1107 = vmatmul.bf16.gmra.mxu1 %v1011_v46  ;;  %v937_v50 = vadd.f32 %v2108_v42, %v936_v47 }
 0x1e0   : > { %v968_v53 = vmul.f32 %v2114_v44, %v937_v50 }
 0x1e2   : > { %v1000_v59 = vadd.f32 %v984_v55, %v968_v53 }
 0x1e5   : > { %v938_v52 = vpop.f32.mrf.mxu0 }
 0x1e6   : > { %v939_v54 = vadd.f32 %v2108_v42, %v938_v52 }
 0x1e8   : > { %v969_v57 = vmul.f32 %v2114_v44, %v939_v54 }
 0x1ea   : > { %v1001_v60 = vadd.f32 %v985_v56, %v969_v57 }
 0x1ec   : > { %v1012_v61 = vpack.c.bf16 %v1001_v60, %v1000_v59 }
 0x1ed   : > { %v941_v62 = vpop.f32.mrf.mxu0 }
 0x1ee   : > { %1112 = vmatmul.bf16.gmra.mxu1 %v1012_v61  ;;  %v942_v63 = vadd.f32 %v2108_v42, %v941_v62 }
 0x1f0   : > { %v970_v1 = vmul.f32 %v2114_v44, %v942_v63 }
 0x1f2   : > { %v1002_v6 = vadd.f32 %v986_v3, %v970_v1 }
 0x1f5   : > { %v943_v0 = vpop.f32.mrf.mxu0 }
 0x1f6   : > { %v944_v2 = vadd.f32 %v2108_v42, %v943_v0  ;;  %v1700_v42 = vld [vmem:[%s2242_s8 + $0x8] sm:$0xff] }
 0x1f7   : > { %1231 = vmatpush.bf16.msra.mxu2 %v1700_v42  ;;  %1800 = vmatpush.bf16.msra.mxu3 %v1700_v42 }
 0x1f8   : > { %v971_v5 = vmul.f32 %v2114_v44, %v944_v2  ;;  %v1699_v44 = vld [vmem:[%s2242_s8] sm:$0xff] }
 0x1fa   : > { %v1003_v7 = vadd.f32 %v987_v4, %v971_v5 }
 0x1fb   : > { %1232 = vmatpush.bf16.msra.mxu2 %v1699_v44  ;;  %1801 = vmatpush.bf16.msra.mxu3 %v1699_v44 }
 0x1fc   : > { %v1013_v8 = vpack.c.bf16 %v1003_v7, %v1002_v6  ;;  %v2177_v7 = vld [vmem:[%s2243_s9] ss:$0 sm:$0xff] }
 0x1fe   : > { %1117 = vmatmul.bf16.gmra.mxu1 %v1013_v8 }
 0x22b   : > { %v1093_v11 = vpop.f32.mrf.mxu1 }
 0x22c   : > { %v1094_v13 = vadd.f32 %v1845_v12, %v1093_v11 }
 0x22e   : > { %v1133_v16 = vmax.f32 %v1094_v13, 0.0 }
 0x233   : > { %v1095_v14 = vpop.f32.mrf.mxu1 }
 0x234   : > { %v1096_v15 = vadd.f32 %v1845_v12, %v1095_v14 }
 0x236   : > { %v1134_v17 = vmax.f32 %v1096_v15, 0.0 }
 0x237   : > { %v1123_v18 = vpop.f32.mrf.mxu3 }
 0x238   : > { %v1149_v19 = vpack.c.bf16 %v1134_v17, %v1133_v16  ;;  %v1124_v21 = vadd.f32 %v1845_v12, %v1123_v18 }
 0x23a   : > { %1233 = vmatmul.bf16.vlgmr.msra.gmra.mxu2 %v1149_v19  ;;  %v1145_v23 = vmax.f32 %v1124_v21, 0.0 }
 0x23b   : > { %v1098_v20 = vpop.f32.mrf.mxu1 }
 0x23c   : > { %v1099_v25 = vadd.f32 %v1845_v12, %v1098_v20 }
 0x23e   : > { %v1135_v30 = vmax.f32 %v1099_v25, 0.0 }
 0x23f   : > { %v1125_v22 = vpop.f32.mrf.mxu3 }
 0x240   : > { %v1126_v24 = vadd.f32 %v1845_v12, %v1125_v22 }
 0x242   : > { %v1146_v26 = vmax.f32 %v1126_v24, 0.0 }
 0x243   : > { %v1100_v27 = vpop.f32.mrf.mxu1 }
 0x244   : > { %v1101_v28 = vadd.f32 %v1845_v12, %v1100_v27  ;;  %v1155_v29 = vpack.c.bf16 %v1146_v26, %v1145_v23 }
 0x246   : > { %v1136_v31 = vmax.f32 %v1101_v28, 0.0  ;;  %1263 = vmatmul.bf16.vlgmr.msra.gmra.mxu3 %v1155_v29 }
 0x247   : > { %v1128_v32 = vpop.f32.mrf.mxu3 }
 0x248   : > { %v1150_v33 = vpack.c.bf16 %v1136_v31, %v1135_v30  ;;  %v1129_v35 = vadd.f32 %v1845_v12, %v1128_v32 }
 0x24a   : > { %1238 = vmatmul.bf16.gmra.mxu2 %v1150_v33  ;;  %v1147_v37 = vmax.f32 %v1129_v35, 0.0 }
 0x24b   : > { %v1103_v34 = vpop.f32.mrf.mxu1 }
 0x24c   : > { %v1104_v39 = vadd.f32 %v1845_v12, %v1103_v34 }
 0x24e   : > { %v1137_v46 = vmax.f32 %v1104_v39, 0.0 }
 0x24f   : > { %v1130_v36 = vpop.f32.mrf.mxu3 }
 0x250   : > { %v1131_v38 = vadd.f32 %v1845_v12, %v1130_v36 }
 0x252   : > { %v1148_v40 = vmax.f32 %v1131_v38, 0.0 }
 0x253   : > { %v1105_v41 = vpop.f32.mrf.mxu1 }
 0x254   : > { %v1106_v43 = vadd.f32 %v1845_v12, %v1105_v41  ;;  %v1156_v45 = vpack.c.bf16 %v1148_v40, %v1147_v37 }
 0x256   : > { %v1138_v47 = vmax.f32 %v1106_v43, 0.0  ;;  %1268 = vmatmul.bf16.gmra.mxu3 %v1156_v45 }
 0x258   : > { %v1151_v48 = vpack.c.bf16 %v1138_v47, %v1137_v46 }
 0x25a   : > { %1243 = vmatmul.bf16.gmra.mxu2 %v1151_v48 }
 0x25b   : > { %v1108_v49 = vpop.f32.mrf.mxu1 }
 0x25c   : > { %v1109_v50 = vadd.f32 %v1845_v12, %v1108_v49 }
 0x25e   : > { %v1139_v53 = vmax.f32 %v1109_v50, 0.0 }
 0x263   : > { %v1110_v51 = vpop.f32.mrf.mxu1 }
 0x264   : > { %v1111_v52 = vadd.f32 %v1845_v12, %v1110_v51 }
 0x266   : > { %v1140_v54 = vmax.f32 %v1111_v52, 0.0 }
 0x268   : > { %v1152_v55 = vpack.c.bf16 %v1140_v54, %v1139_v53 }
 0x26a   : > { %1248 = vmatmul.bf16.gmra.mxu2 %v1152_v55 }
 0x26b   : > { %v1113_v56 = vpop.f32.mrf.mxu1 }
 0x26c   : > { %v1114_v57 = vadd.f32 %v1845_v12, %v1113_v56 }
 0x26e   : > { %v1141_v60 = vmax.f32 %v1114_v57, 0.0 }
 0x273   : > { %v1115_v58 = vpop.f32.mrf.mxu1 }
 0x274   : > { %v1116_v59 = vadd.f32 %v1845_v12, %v1115_v58 }
 0x276   : > { %v1142_v61 = vmax.f32 %v1116_v59, 0.0 }
 0x278   : > { %v1153_v62 = vpack.c.bf16 %v1142_v61, %v1141_v60 }
 0x27a   : > { %1253 = vmatmul.bf16.gmra.mxu2 %v1153_v62 }
 0x27b   : > { %v1118_v63 = vpop.f32.mrf.mxu1 }
 0x27c   : > { %v1119_v0 = vadd.f32 %v1845_v12, %v1118_v63 }
 0x27e   : > { %v1143_v3 = vmax.f32 %v1119_v0, 0.0 }
 0x283   : > { %v1120_v1 = vpop.f32.mrf.mxu1 }
 0x284   : > { %v1121_v2 = vadd.f32 %v1845_v12, %v1120_v1 }
 0x286   : > { %v1144_v4 = vmax.f32 %v1121_v2, 0.0 }
 0x288   : > { %v1154_v5 = vpack.c.bf16 %v1144_v4, %v1143_v3 }
 0x28a   : > { %1258 = vmatmul.bf16.gmra.mxu2 %v1154_v5 }
 0x2bd   : > { %v1234_v6 = vpop.f32.mrf.mxu2 }
 0x2be   : > { %v1235_v8 = vadd.f32 %v2177_v7, %v1234_v6 }
 0x2c0   : > { %v1290_v10 = vmul.f32 0.01, %v1235_v8  ;;  %vm1274_vm0 = vcmp.ge.f32.partialorder %v1235_v8, 0.0 }
 0x2c2   : > { %v1306_v12 = vsel %vm1274_vm0, %v1235_v8, %v1290_v10 }
 0x2c5   : > { %v1236_v9 = vpop.f32.mrf.mxu2 }
 0x2c6   : > { %v1237_v42 = vadd.f32 %v2177_v7, %v1236_v9 }
 0x2c8   : > { %vm1275_vm1 = vcmp.ge.f32.partialorder %v1237_v42, 0.0  ;;  %v1291_v44 = vmul.f32 0.01, %v1237_v42 }
 0x2c9   : > { %v1264_v11 = vpop.f32.mrf.mxu3 }
 0x2ca   : > { %v1307_v13 = vsel %vm1275_vm1, %v1237_v42, %v1291_v44  ;;  %v1265_v15 = vadd.f32 %v2177_v7, %v1264_v11 }
 0x2cb   : > { %v1710_v14 = vpack.c.bf16 %v1307_v13, %v1306_v12 }
 0x2cc   : > { %v1302_v17 = vmul.f32 0.01, %v1265_v15  ;;  %vm1286_vm2 = vcmp.ge.f32.partialorder %v1265_v15, 0.0 }
 0x2cd   : > { %1711 = vst [vmem:[%s2244_s10] sm:$0xff] %v1710_v14   ;;  %v1239_v16 = vpop.f32.mrf.mxu2 }
 0x2ce   : > { %v1240_v19 = vadd.f32 %v2177_v7, %v1239_v16  ;;  %v1318_v21 = vsel %vm1286_vm2, %v1265_v15, %v1302_v17 }
 0x2d0   : > { %v1292_v24 = vmul.f32 0.01, %v1240_v19  ;;  %vm1276_vm4 = vcmp.ge.f32.partialorder %v1240_v19, 0.0 }
 0x2d1   : > { %v1266_v18 = vpop.f32.mrf.mxu3 }
 0x2d2   : > { %v1267_v20 = vadd.f32 %v2177_v7, %v1266_v18  ;;  %v1308_v30 = vsel %vm1276_vm4, %v1240_v19, %v1292_v24 }
 0x2d4   : > { %vm1287_vm3 = vcmp.ge.f32.partialorder %v1267_v20, 0.0  ;;  %v1303_v22 = vmul.f32 0.01, %v1267_v20 }
 0x2d5   : > { %v1241_v23 = vpop.f32.mrf.mxu2 }
 0x2d6   : > { %v1242_v25 = vadd.f32 %v2177_v7, %v1241_v23  ;;  %v1319_v26 = vsel %vm1287_vm3, %v1267_v20, %v1303_v22 }
 0x2d7   : > { %v1740_v27 = vpack.c.bf16 %v1319_v26, %v1318_v21 }
 0x2d8   : > { %vm1277_vm5 = vcmp.ge.f32.partialorder %v1242_v25, 0.0  ;;  %v1293_v28 = vmul.f32 0.01, %v1242_v25 }
 0x2d9   : > { %1752 = vst [vmem:[%s2244_s10 + $0x30] sm:$0xff] %v1740_v27   ;;  %v1269_v29 = vpop.f32.mrf.mxu3 }
 0x2da   : > { %v1309_v31 = vsel %vm1277_vm5, %v1242_v25, %v1293_v28  ;;  %v1270_v33 = vadd.f32 %v2177_v7, %v1269_v29 }
 0x2db   : > { %v1715_v32 = vpack.c.bf16 %v1309_v31, %v1308_v30 }
 0x2dc   : > { %v1304_v35 = vmul.f32 0.01, %v1270_v33  ;;  %vm1288_vm6 = vcmp.ge.f32.partialorder %v1270_v33, 0.0 }
 0x2dd   : > { %1747 = vst [vmem:[%s2244_s10 + $0x8] sm:$0xff] %v1715_v32   ;;  %v1244_v34 = vpop.f32.mrf.mxu2 }
 0x2de   : > { %v1245_v37 = vadd.f32 %v2177_v7, %v1244_v34  ;;  %v1320_v39 = vsel %vm1288_vm6, %v1270_v33, %v1304_v35 }
 0x2e0   : > { %v1294_v43 = vmul.f32 0.01, %v1245_v37  ;;  %vm1278_vm8 = vcmp.ge.f32.partialorder %v1245_v37, 0.0 }
 0x2e1   : > { %v1271_v36 = vpop.f32.mrf.mxu3 }
 0x2e2   : > { %v1272_v38 = vadd.f32 %v2177_v7, %v1271_v36  ;;  %v1310_v49 = vsel %vm1278_vm8, %v1245_v37, %v1294_v43 }
 0x2e4   : > { %vm1289_vm7 = vcmp.ge.f32.partialorder %v1272_v38, 0.0  ;;  %v1305_v40 = vmul.f32 0.01, %v1272_v38 }
 0x2e5   : > { %v1246_v41 = vpop.f32.mrf.mxu2 }
 0x2e6   : > { %v1247_v45 = vadd.f32 %v2177_v7, %v1246_v41  ;;  %v1321_v46 = vsel %vm1289_vm7, %v1272_v38, %v1305_v40 }
 0x2e7   : > { %v1745_v47 = vpack.c.bf16 %v1321_v46, %v1320_v39 }
 0x2e8   : > { %vm1279_vm9 = vcmp.ge.f32.partialorder %v1247_v45, 0.0  ;;  %v1295_v48 = vmul.f32 0.01, %v1247_v45 }
 0x2e9   : > { %1753 = vst [vmem:[%s2244_s10 + $0x38] sm:$0xff] %v1745_v47  }
 0x2ea   : > { %v1311_v50 = vsel %vm1279_vm9, %v1247_v45, %v1295_v48 }
 0x2eb   : > { %v1720_v51 = vpack.c.bf16 %v1311_v50, %v1310_v49 }
 0x2ed   : > { %1748 = vst [vmem:[%s2244_s10 + $0x10] sm:$0xff] %v1720_v51   ;;  %v1249_v52 = vpop.f32.mrf.mxu2 }
 0x2ee   : > { %v1250_v53 = vadd.f32 %v2177_v7, %v1249_v52 }
 0x2f0   : > { %v1296_v55 = vmul.f32 0.01, %v1250_v53  ;;  %vm1280_vm10 = vcmp.ge.f32.partialorder %v1250_v53, 0.0 }
 0x2f2   : > { %v1312_v58 = vsel %vm1280_vm10, %v1250_v53, %v1296_v55 }
 0x2f5   : > { %v1251_v54 = vpop.f32.mrf.mxu2 }
 0x2f6   : > { %v1252_v56 = vadd.f32 %v2177_v7, %v1251_v54 }
 0x2f8   : > { %vm1281_vm11 = vcmp.ge.f32.partialorder %v1252_v56, 0.0  ;;  %v1297_v57 = vmul.f32 0.01, %v1252_v56 }
 0x2fa   : > { %v1313_v59 = vsel %vm1281_vm11, %v1252_v56, %v1297_v57 }
 0x2fb   : > { %v1725_v60 = vpack.c.bf16 %v1313_v59, %v1312_v58 }
 0x2fd   : > { %1749 = vst [vmem:[%s2244_s10 + $0x18] sm:$0xff] %v1725_v60   ;;  %v1254_v61 = vpop.f32.mrf.mxu2 }
 0x2fe   : > { %v1255_v62 = vadd.f32 %v2177_v7, %v1254_v61 }
 0x300   : > { %v1298_v0 = vmul.f32 0.01, %v1255_v62  ;;  %vm1282_vm12 = vcmp.ge.f32.partialorder %v1255_v62, 0.0 }
 0x302   : > { %v1314_v3 = vsel %vm1282_vm12, %v1255_v62, %v1298_v0 }
 0x305   : > { %v1256_v63 = vpop.f32.mrf.mxu2 }
 0x306   : > { %v1257_v1 = vadd.f32 %v2177_v7, %v1256_v63 }
 0x308   : > { %vm1283_vm13 = vcmp.ge.f32.partialorder %v1257_v1, 0.0  ;;  %v1299_v2 = vmul.f32 0.01, %v1257_v1 }
 0x30a   : > { %v1315_v4 = vsel %vm1283_vm13, %v1257_v1, %v1299_v2 }
 0x30b   : > { %v1730_v5 = vpack.c.bf16 %v1315_v4, %v1314_v3 }
 0x30d   : > { %1750 = vst [vmem:[%s2244_s10 + $0x20] sm:$0xff] %v1730_v5   ;;  %v1259_v6 = vpop.f32.mrf.mxu2 }
 0x30e   : > { %v1260_v8 = vadd.f32 %v2177_v7, %v1259_v6 }
 0x310   : > { %v1300_v10 = vmul.f32 0.01, %v1260_v8  ;;  %vm1284_vm14 = vcmp.ge.f32.partialorder %v1260_v8, 0.0 }
 0x312   : > { %v1316_v11 = vsel %vm1284_vm14, %v1260_v8, %v1300_v10 }
 0x315   : > { %v1261_v9 = vpop.f32.mrf.mxu2 }
 0x316   : > { %v1262_v42 = vadd.f32 %v2177_v7, %v1261_v9 }
 0x318   : > { %vm1285_vm15 = vcmp.ge.f32.partialorder %v1262_v42, 0.0  ;;  %v1301_v44 = vmul.f32 0.01, %v1262_v42 }
 0x31a   : > { %v1317_v12 = vsel %vm1285_vm15, %v1262_v42, %v1301_v44 }
 0x31b   : > { %v1735_v13 = vpack.c.bf16 %v1317_v12, %v1316_v11 }
 0x31d   : > { %1751 = vst [vmem:[%s2244_s10 + $0x28] sm:$0xff] %v1735_v13  }
 0x31e PF: > { %s20_s17 = sadd.s32 1, %s1885_s17   ;;  %s2245_s13 = smov %s1873_s14 }
 0x31f   : > { %p17_p12 = scmp.ge.s32.totalorder %s20_s17, 4   ;;  %s2246_s14 = smov %s1978_s21 }
 0x320   : > { %s2247_s15 = smov %s1881_s16  ;;  %s2248_s16 = smov %s2250_s18 }
 0x321   :  { %19 = sbr.rel (!%p17_p12) target bundleno = 3 (0x3), region = 150 }

</bundles_post_ra>
